<compile_context>
chip_gen: v7x
topology: tpu7x:2x2x1
jax: 0.10.0
libtpu: 0.0.40
codegen_flags: <defaults>
</compile_context>

<pallas_src>
from functools import partial

import jax
import jax.numpy as jnp
from jax.experimental import pallas as pl
from jax.experimental.pallas import tpu as pltpu

_VMEM = pl.BlockSpec(memory_space=pltpu.MemorySpace.VMEM)
_EPS = 1e-5


def _round_up(x, m):
    return ((x + m - 1) // m) * m


# ---------------------------------------------------------------------------
# Single fused Pallas kernel: backbone + pixel projector + instance projector
# ---------------------------------------------------------------------------
def _netwrapper_kernel(rows_ref, bw1_ref, bb1_ref, bw2_ref, bb2_ref,
                       pw1_ref, pb1_ref, pg_ref, pbeta_ref, pw2_ref, pb2_ref,
                       iw1_ref, ib1_ref, ig_ref, ibeta_ref, iw2_ref, ib2_ref,
                       px_ref, inst_ref, feat_sc):
    """Rows = H*W*B (ordered (h, w, b)), channels on the 128-lane axis.

    All intermediates stay in VMEM; matmuls take bf16 operands with f32 accumulation;
    BatchNorm / ReLU stay f32.
    """
    cin = rows_ref.shape[1]
    S = iw1_ref.shape[0]
    B = inst_ref.shape[0]
    hdim = iw1_ref.shape[2]

    # ---- backbone conv1 (1x1, K=cin) as cin VPU broadcast-FMAs + ReLU (off the MXU) ----
    x = rows_ref[...]                                        # (R, cin) f32
    h1 = x[:, 0:1] * bw1_ref[0:1, :]
    for c in range(1, cin):
        h1 = h1 + x[:, c:c + 1] * bw1_ref[c:c + 1, :]
    h1 = jnp.maximum(h1 + bb1_ref[...], 0.0)                 # (R, c1) f32

    # ---- backbone conv2 (1x1) -> feat (children[-2] output captured by both hooks) ----
    feat = jnp.dot(h1.astype(jnp.bfloat16), bw2_ref[...],
                   preferred_element_type=jnp.float32) + bb2_ref[...]
    feat_bf = feat.astype(jnp.bfloat16)
    feat_sc[...] = feat_bf          # staged in VMEM for per-s loads in the instance path

    # ---- pixel projector: 1x1 conv -> BatchNorm2d(train) -> ReLU -> 1x1 conv ----
    ph = jnp.dot(feat_bf, pw1_ref[...],
                 preferred_element_type=jnp.float32) + pb1_ref[...]
    mean = jnp.mean(ph, axis=0, keepdims=True)
    var = jnp.maximum(jnp.mean(ph * ph, axis=0, keepdims=True) - mean * mean, 0.0)
    ph = (ph - mean) * jax.lax.rsqrt(var + _EPS)             # biased train-mode BN stats
    ph = jnp.maximum(ph * pg_ref[...] + pbeta_ref[...], 0.0)
    px_ref[...] = jnp.dot(ph.astype(jnp.bfloat16), pw2_ref[...],
                          preferred_element_type=jnp.float32) + pb2_ref[...]

    # ---- instance projector: Linear(flatten NCHW feat) -> BN1d(train) -> ReLU -> Linear.
    # The big (B, S*C2) x (S*C2, hidden) contraction is done as S small matmuls: rows are
    # (s, b)-ordered so the per-s activation is a contiguous B-row load, and in_w1 was
    # permuted offline to (S, C2, hidden) to reproduce PyTorch's NCHW flatten exactly.
    acc = jnp.zeros((B, hdim), jnp.float32)
    for s in range(S):
        acc = acc + jnp.dot(feat_sc[s * B:(s + 1) * B, :], iw1_ref[s],
                            preferred_element_type=jnp.float32)
    ih = acc + ib1_ref[...]
    imean = jnp.mean(ih, axis=0, keepdims=True)
    d = ih - imean
    ivar = jnp.mean(d * d, axis=0, keepdims=True)            # biased var over B samples
    ih = jnp.maximum(d * jax.lax.rsqrt(ivar + _EPS) * ig_ref[...] + ibeta_ref[...], 0.0)
    inst_ref[...] = jnp.dot(ih.astype(jnp.bfloat16), iw2_ref[...],
                            preferred_element_type=jnp.float32) + ib2_ref[...]


def fused_netwrapper_call(rows, p):
    """One pallas_call for the whole forward; everything fits VMEM at these sizes."""
    R = rows.shape[0]
    c2 = p["bk_w2"].shape[1]
    S = p["in_w1"].shape[0]
    B = R // S
    p_pad = p["px_w2"].shape[1]
    return pl.pallas_call(
        _netwrapper_kernel,
        out_shape=(jax.ShapeDtypeStruct((R, p_pad), jnp.float32),   # pixel proj rows
                   jax.ShapeDtypeStruct((B, p_pad), jnp.float32)),  # instance proj
        in_specs=[_VMEM] * 17,
        out_specs=(_VMEM, _VMEM),
        scratch_shapes=[pltpu.VMEM((R, c2), jnp.bfloat16)],
    )(rows,
      p["bk_w1"], p["bk_b1"], p["bk_w2"], p["bk_b2"],
      p["px_w1"], p["px_b1"], p["px_g"], p["px_beta"], p["px_w2"], p["px_b2"],
      p["in_w1"], p["in_b1"], p["in_g"], p["in_beta"], p["in_w2"], p["in_b2"])


# ---------------------------------------------------------------------------
# Parameters: synthetic PyTorch-layout params, then kernel-facing transformation
# ---------------------------------------------------------------------------
def make_params(key, cin, c1, c2, h, w, proj_size, proj_hidden):
    """Deterministic synthetic params in PyTorch module layout (all f32).

    1x1 convs / Linears stored as (in, out) matrices; in_w1 rows follow the PyTorch
    NCHW flatten order (row index = c*H*W + h*W + w).
    """
    ks = jax.random.split(key, 8)
    s = 0.05
    inst_dim = c2 * h * w
    return {
        "bk_w1": jax.random.normal(ks[0], (cin, c1), jnp.float32) * s,
        "bk_b1": jax.random.normal(ks[1], (1, c1), jnp.float32) * s,
        "bk_w2": jax.random.normal(ks[2], (c1, c2), jnp.float32) * s,
        "bk_b2": jax.random.normal(ks[3], (1, c2), jnp.float32) * s,
        "px_w1": jax.random.normal(ks[4], (c2, proj_hidden), jnp.float32) * s,
        "px_b1": jnp.zeros((1, proj_hidden), jnp.float32),
        "px_g": jnp.ones((1, proj_hidden), jnp.float32),
        "px_beta": jnp.zeros((1, proj_hidden), jnp.float32),
        "px_w2": jax.random.normal(ks[5], (proj_hidden, proj_size), jnp.float32) * s,
        "px_b2": jnp.zeros((1, proj_size), jnp.float32),
        "in_w1": jax.random.normal(ks[6], (inst_dim, proj_hidden), jnp.float32) * s,
        "in_b1": jnp.zeros((1, proj_hidden), jnp.float32),
        "in_g": jnp.ones((1, proj_hidden), jnp.float32),
        "in_beta": jnp.zeros((1, proj_hidden), jnp.float32),
        "in_w2": jax.random.normal(ks[7], (proj_hidden, proj_size), jnp.float32) * s,
        "in_b2": jnp.zeros((1, proj_size), jnp.float32),
    }


def prepare_params(p, c2, h, w, proj_size):
    """PyTorch-layout params -> kernel-facing params (done once, offline).

    * conv1 weight stays f32 (VPU FMA path); other matmul weights cast to bf16 (MXU)
    * in_w1 rows reordered from NCHW-flatten (c,s) to per-spatial blocks (S, C2, hidden)
      so the kernel's per-s accumulation reproduces `feat.flatten(1)` exactly
    * final projection weights/biases zero-padded to a lane-dense (multiple of 128) width
    """
    hidden = p["px_w1"].shape[1]
    p_pad = _round_up(proj_size, 128)
    s = h * w

    def pad_cols(a):
        return jnp.pad(a, ((0, 0), (0, p_pad - a.shape[1])))

    in_w1_scj = p["in_w1"].reshape(c2, s, hidden).transpose(1, 0, 2)   # (S, C2, hidden)

    return {
        "bk_w1": p["bk_w1"],                                    # f32: conv1 runs on VPU
        "bk_b1": p["bk_b1"],
        "bk_w2": p["bk_w2"].astype(jnp.bfloat16), "bk_b2": p["bk_b2"],
        "px_w1": p["px_w1"].astype(jnp.bfloat16),
        "px_b1": p["px_b1"], "px_g": p["px_g"], "px_beta": p["px_beta"],
        "px_w2": pad_cols(p["px_w2"]).astype(jnp.bfloat16),
        "px_b2": pad_cols(p["px_b2"]),
        "in_w1": in_w1_scj.astype(jnp.bfloat16),
        "in_b1": p["in_b1"], "in_g": p["in_g"], "in_beta": p["in_beta"],
        "in_w2": pad_cols(p["in_w2"]).astype(jnp.bfloat16),
        "in_b2": pad_cols(p["in_b2"]),
    }


# ---------------------------------------------------------------------------
# NetWrapper.forward (jitted)
# ---------------------------------------------------------------------------
@partial(jax.jit, static_argnames=("proj_size",))
def netwrapper_forward(x_nchw, kparams, *, proj_size):
    B, Cin, H, W = x_nchw.shape

    # NCHW -> rows ordered (h, w, b) with channels on lanes: row index = (h*W + w)*B + b.
    rows = jnp.transpose(x_nchw, (2, 3, 0, 1)).reshape(H * W * B, Cin)

    # One fused pallas_call: backbone, pixel projector, instance projector.
    # NOTE: AdaptiveAvgPool2d(1) tail output is discarded by NetWrapper -> not computed.
    px_rows, inst_rows = fused_netwrapper_call(rows, kparams)

    pixel_projection = jnp.transpose(
        px_rows[:, :proj_size].reshape(H, W, B, proj_size), (2, 3, 0, 1))
    instance_projection = inst_rows[:, :proj_size]
    return pixel_projection, instance_projection


# ---------------------------------------------------------------------------
if __name__ == "__main__":
    key = jax.random.PRNGKey(0)
    k_x, k_p = jax.random.split(key)

    B, Cin, H, W = 2, 3, 8, 8
    c1, c2 = 16, 32
    projection_size, projection_hidden_size = 64, 128

    x = jax.random.normal(k_x, (B, Cin, H, W), jnp.float32)
    params = make_params(k_p, Cin, c1, c2, H, W, projection_size, projection_hidden_size)
    kparams = prepare_params(params, c2, H, W, projection_size)

    pixel_proj, instance_proj = netwrapper_forward(x, kparams, proj_size=projection_size)
    jax.block_until_ready((pixel_proj, instance_proj))

    assert pixel_proj.shape == (B, projection_size, H, W), pixel_proj.shape
    assert instance_proj.shape == (B, projection_size), instance_proj.shape
    assert jnp.all(jnp.isfinite(pixel_proj)) and jnp.all(jnp.isfinite(instance_proj))

    print("KERNEL_OK")
</pallas_src>

<mosaic_0001>
module attributes {stable_mosaic.version = 11 : i64} {
  func.func @_netwrapper_kernel(%arg0: memref<128x3xf32, #tpu.memory_space<vmem>>, %arg1: memref<3x16xf32, #tpu.memory_space<vmem>>, %arg2: memref<1x16xf32, #tpu.memory_space<vmem>>, %arg3: memref<16x32xbf16, #tpu.memory_space<vmem>>, %arg4: memref<1x32xf32, #tpu.memory_space<vmem>>, %arg5: memref<32x128xbf16, #tpu.memory_space<vmem>>, %arg6: memref<1x128xf32, #tpu.memory_space<vmem>>, %arg7: memref<1x128xf32, #tpu.memory_space<vmem>>, %arg8: memref<1x128xf32, #tpu.memory_space<vmem>>, %arg9: memref<128x128xbf16, #tpu.memory_space<vmem>>, %arg10: memref<1x128xf32, #tpu.memory_space<vmem>>, %arg11: memref<64x32x128xbf16, #tpu.memory_space<vmem>>, %arg12: memref<1x128xf32, #tpu.memory_space<vmem>>, %arg13: memref<1x128xf32, #tpu.memory_space<vmem>>, %arg14: memref<1x128xf32, #tpu.memory_space<vmem>>, %arg15: memref<128x128xbf16, #tpu.memory_space<vmem>>, %arg16: memref<1x128xf32, #tpu.memory_space<vmem>>, %arg17: memref<128x128xf32, #tpu.memory_space<vmem>>, %arg18: memref<2x128xf32, #tpu.memory_space<vmem>>, %arg19: memref<128x32xbf16, #tpu.memory_space<vmem>>) attributes {dimension_semantics = [], scalar_prefetch = 0 : i64, scratch_operands = 1 : i64, tpu.core_type = #tpu.core_type<tc>} {
    %c0 = arith.constant 0 : index
    %c0_0 = arith.constant 0 : index
    %0 = vector.load %arg0[%c0, %c0_0] : memref<128x3xf32, #tpu.memory_space<vmem>>, vector<128x3xf32>
    %1 = vector.extract_strided_slice %0 {offsets = [0, 0], sizes = [128, 1], strides = [1, 1]} : vector<128x3xf32> to vector<128x1xf32>
    %c0_1 = arith.constant 0 : index
    %c0_2 = arith.constant 0 : index
    %2 = vector.load %arg1[%c0_1, %c0_2] : memref<3x16xf32, #tpu.memory_space<vmem>>, vector<1x16xf32>
    %3 = vector.broadcast %1 : vector<128x1xf32> to vector<128x16xf32>
    %4 = vector.broadcast %2 : vector<1x16xf32> to vector<128x16xf32>
    %5 = arith.mulf %3, %4 : vector<128x16xf32>
    %6 = vector.extract_strided_slice %0 {offsets = [0, 1], sizes = [128, 1], strides = [1, 1]} : vector<128x3xf32> to vector<128x1xf32>
    %c1 = arith.constant 1 : index
    %c0_3 = arith.constant 0 : index
    %7 = vector.load %arg1[%c1, %c0_3] : memref<3x16xf32, #tpu.memory_space<vmem>>, vector<1x16xf32>
    %8 = vector.broadcast %6 : vector<128x1xf32> to vector<128x16xf32>
    %9 = vector.broadcast %7 : vector<1x16xf32> to vector<128x16xf32>
    %10 = arith.mulf %8, %9 : vector<128x16xf32>
    %11 = arith.addf %5, %10 : vector<128x16xf32>
    %12 = vector.extract_strided_slice %0 {offsets = [0, 2], sizes = [128, 1], strides = [1, 1]} : vector<128x3xf32> to vector<128x1xf32>
    %c2 = arith.constant 2 : index
    %c0_4 = arith.constant 0 : index
    %13 = vector.load %arg1[%c2, %c0_4] : memref<3x16xf32, #tpu.memory_space<vmem>>, vector<1x16xf32>
    %14 = vector.broadcast %12 : vector<128x1xf32> to vector<128x16xf32>
    %15 = vector.broadcast %13 : vector<1x16xf32> to vector<128x16xf32>
    %16 = arith.mulf %14, %15 : vector<128x16xf32>
    %17 = arith.addf %11, %16 : vector<128x16xf32>
    %c0_5 = arith.constant 0 : index
    %c0_6 = arith.constant 0 : index
    %18 = vector.load %arg2[%c0_5, %c0_6] : memref<1x16xf32, #tpu.memory_space<vmem>>, vector<1x16xf32>
    %19 = vector.broadcast %18 : vector<1x16xf32> to vector<128x16xf32>
    %20 = arith.addf %17, %19 : vector<128x16xf32>
    %cst = arith.constant 0.000000e+00 : f32
    %21 = vector.broadcast %cst : f32 to vector<128x16xf32>
    %22 = arith.maximumf %20, %21 : vector<128x16xf32>
    %23 = arith.truncf %22 : vector<128x16xf32> to vector<128x16xbf16>
    %c0_7 = arith.constant 0 : index
    %c0_8 = arith.constant 0 : index
    %24 = vector.load %arg3[%c0_7, %c0_8] : memref<16x32xbf16, #tpu.memory_space<vmem>>, vector<16x32xbf16>
    %cst_9 = arith.constant dense<0.000000e+00> : vector<128x32xf32>
    %25 = tpu.matmul %23, %24, %cst_9 {dimension_numbers = #tpu.dot_dimension_numbers<[1], [0], [0], [1], [0, 0, 1, 1], [], []>} : vector<128x16xbf16>, vector<16x32xbf16>, vector<128x32xf32> -> vector<128x32xf32>
    %c0_10 = arith.constant 0 : index
    %c0_11 = arith.constant 0 : index
    %26 = vector.load %arg4[%c0_10, %c0_11] : memref<1x32xf32, #tpu.memory_space<vmem>>, vector<1x32xf32>
    %27 = vector.broadcast %26 : vector<1x32xf32> to vector<128x32xf32>
    %28 = arith.addf %25, %27 : vector<128x32xf32>
    %29 = arith.truncf %28 : vector<128x32xf32> to vector<128x32xbf16>
    %c0_12 = arith.constant 0 : index
    %c0_13 = arith.constant 0 : index
    %30 = vector.load %arg19[%c0_12, %c0_13] : memref<128x32xbf16, #tpu.memory_space<vmem>>, vector<128x32xbf16>
    tpu.vector_store %arg19[%c0_12, %c0_13], %29 {strides = array<i32>} : memref<128x32xbf16, #tpu.memory_space<vmem>>, vector<128x32xbf16>,
    %c0_14 = arith.constant 0 : index
    %c0_15 = arith.constant 0 : index
    %31 = vector.load %arg5[%c0_14, %c0_15] : memref<32x128xbf16, #tpu.memory_space<vmem>>, vector<32x128xbf16>
    %cst_16 = arith.constant dense<0.000000e+00> : vector<128x128xf32>
    %32 = tpu.matmul %29, %31, %cst_16 {dimension_numbers = #tpu.dot_dimension_numbers<[1], [0], [0], [1], [0, 0, 1, 1], [], []>} : vector<128x32xbf16>, vector<32x128xbf16>, vector<128x128xf32> -> vector<128x128xf32>
    %c0_17 = arith.constant 0 : index
    %c0_18 = arith.constant 0 : index
    %33 = vector.load %arg6[%c0_17, %c0_18] : memref<1x128xf32, #tpu.memory_space<vmem>>, vector<1x128xf32>
    %34 = vector.broadcast %33 : vector<1x128xf32> to vector<128x128xf32>
    %35 = arith.addf %32, %34 : vector<128x128xf32>
    %cst_19 = arith.constant dense<0.000000e+00> : vector<128xf32>
    %36 = vector.multi_reduction <add>, %35, %cst_19 [0] : vector<128x128xf32> to vector<128xf32>
    %37 = vector.shape_cast %36 : vector<128xf32> to vector<1x128xf32>
    %cst_20 = arith.constant 1.280000e+02 : f32
    %38 = vector.broadcast %cst_20 : f32 to vector<1x128xf32>
    %39 = arith.divf %37, %38 : vector<1x128xf32>
    %40 = arith.mulf %35, %35 : vector<128x128xf32>
    %cst_21 = arith.constant dense<0.000000e+00> : vector<128xf32>
    %41 = vector.multi_reduction <add>, %40, %cst_21 [0] : vector<128x128xf32> to vector<128xf32>
    %42 = vector.shape_cast %41 : vector<128xf32> to vector<1x128xf32>
    %cst_22 = arith.constant 1.280000e+02 : f32
    %43 = vector.broadcast %cst_22 : f32 to vector<1x128xf32>
    %44 = arith.divf %42, %43 : vector<1x128xf32>
    %45 = arith.mulf %39, %39 : vector<1x128xf32>
    %46 = arith.subf %44, %45 : vector<1x128xf32>
    %cst_23 = arith.constant 0.000000e+00 : f32
    %47 = vector.broadcast %cst_23 : f32 to vector<1x128xf32>
    %48 = arith.maximumf %46, %47 : vector<1x128xf32>
    %49 = vector.broadcast %39 : vector<1x128xf32> to vector<128x128xf32>
    %50 = arith.subf %35, %49 : vector<128x128xf32>
    %cst_24 = arith.constant 9.99999974E-6 : f32
    %51 = vector.broadcast %cst_24 : f32 to vector<1x128xf32>
    %52 = arith.addf %48, %51 : vector<1x128xf32>
    %53 = math.rsqrt %52 : vector<1x128xf32>
    %54 = vector.broadcast %53 : vector<1x128xf32> to vector<128x128xf32>
    %55 = arith.mulf %50, %54 : vector<128x128xf32>
    %c0_25 = arith.constant 0 : index
    %c0_26 = arith.constant 0 : index
    %56 = vector.load %arg7[%c0_25, %c0_26] : memref<1x128xf32, #tpu.memory_space<vmem>>, vector<1x128xf32>
    %57 = vector.broadcast %56 : vector<1x128xf32> to vector<128x128xf32>
    %58 = arith.mulf %55, %57 : vector<128x128xf32>
    %c0_27 = arith.constant 0 : index
    %c0_28 = arith.constant 0 : index
    %59 = vector.load %arg8[%c0_27, %c0_28] : memref<1x128xf32, #tpu.memory_space<vmem>>, vector<1x128xf32>
    %60 = vector.broadcast %59 : vector<1x128xf32> to vector<128x128xf32>
    %61 = arith.addf %58, %60 : vector<128x128xf32>
    %cst_29 = arith.constant 0.000000e+00 : f32
    %62 = vector.broadcast %cst_29 : f32 to vector<128x128xf32>
    %63 = arith.maximumf %61, %62 : vector<128x128xf32>
    %64 = arith.truncf %63 : vector<128x128xf32> to vector<128x128xbf16>
    %c0_30 = arith.constant 0 : index
    %c0_31 = arith.constant 0 : index
    %65 = vector.load %arg9[%c0_30, %c0_31] : memref<128x128xbf16, #tpu.memory_space<vmem>>, vector<128x128xbf16>
    %cst_32 = arith.constant dense<0.000000e+00> : vector<128x128xf32>
    %66 = tpu.matmul %64, %65, %cst_32 {dimension_numbers = #tpu.dot_dimension_numbers<[1], [0], [0], [1], [0, 0, 1, 1], [], []>} : vector<128x128xbf16>, vector<128x128xbf16>, vector<128x128xf32> -> vector<128x128xf32>
    %c0_33 = arith.constant 0 : index
    %c0_34 = arith.constant 0 : index
    %67 = vector.load %arg10[%c0_33, %c0_34] : memref<1x128xf32, #tpu.memory_space<vmem>>, vector<1x128xf32>
    %68 = vector.broadcast %67 : vector<1x128xf32> to vector<128x128xf32>
    %69 = arith.addf %66, %68 : vector<128x128xf32>
    %c0_35 = arith.constant 0 : index
    %c0_36 = arith.constant 0 : index
    %70 = vector.load %arg17[%c0_35, %c0_36] : memref<128x128xf32, #tpu.memory_space<vmem>>, vector<128x128xf32>
    tpu.vector_store %arg17[%c0_35, %c0_36], %69 {strides = array<i32>} : memref<128x128xf32, #tpu.memory_space<vmem>>, vector<128x128xf32>,
    %cst_37 = arith.constant 0.000000e+00 : f32
    %71 = vector.broadcast %cst_37 : f32 to vector<2x128xf32>
    %c0_38 = arith.constant 0 : index
    %c0_39 = arith.constant 0 : index
    %72 = vector.load %arg19[%c0_38, %c0_39] : memref<128x32xbf16, #tpu.memory_space<vmem>>, vector<2x32xbf16>
    %c0_40 = arith.constant 0 : index
    %c0_41 = arith.constant 0 : index
    %c0_42 = arith.constant 0 : index
    %73 = vector.load %arg11[%c0_40, %c0_41, %c0_42] : memref<64x32x128xbf16, #tpu.memory_space<vmem>>, vector<1x32x128xbf16>
    %74 = vector.shape_cast %73 : vector<1x32x128xbf16> to vector<32x128xbf16>
    %cst_43 = arith.constant dense<0.000000e+00> : vector<2x128xf32>
    %75 = tpu.matmul %72, %74, %cst_43 {dimension_numbers = #tpu.dot_dimension_numbers<[1], [0], [0], [1], [0, 0, 1, 1], [], []>} : vector<2x32xbf16>, vector<32x128xbf16>, vector<2x128xf32> -> vector<2x128xf32>
    %76 = arith.addf %71, %75 : vector<2x128xf32>
    %c2_44 = arith.constant 2 : index
    %c0_45 = arith.constant 0 : index
    %77 = vector.load %arg19[%c2_44, %c0_45] : memref<128x32xbf16, #tpu.memory_space<vmem>>, vector<2x32xbf16>
    %c1_46 = arith.constant 1 : index
    %c0_47 = arith.constant 0 : index
    %c0_48 = arith.constant 0 : index
    %78 = vector.load %arg11[%c1_46, %c0_47, %c0_48] : memref<64x32x128xbf16, #tpu.memory_space<vmem>>, vector<1x32x128xbf16>
    %79 = vector.shape_cast %78 : vector<1x32x128xbf16> to vector<32x128xbf16>
    %cst_49 = arith.constant dense<0.000000e+00> : vector<2x128xf32>
    %80 = tpu.matmul %77, %79, %cst_49 {dimension_numbers = #tpu.dot_dimension_numbers<[1], [0], [0], [1], [0, 0, 1, 1], [], []>} : vector<2x32xbf16>, vector<32x128xbf16>, vector<2x128xf32> -> vector<2x128xf32>
    %81 = arith.addf %76, %80 : vector<2x128xf32>
    %c4 = arith.constant 4 : index
    %c0_50 = arith.constant 0 : index
    %82 = vector.load %arg19[%c4, %c0_50] : memref<128x32xbf16, #tpu.memory_space<vmem>>, vector<2x32xbf16>
    %c2_51 = arith.constant 2 : index
    %c0_52 = arith.constant 0 : index
    %c0_53 = arith.constant 0 : index
    %83 = vector.load %arg11[%c2_51, %c0_52, %c0_53] : memref<64x32x128xbf16, #tpu.memory_space<vmem>>, vector<1x32x128xbf16>
    %84 = vector.shape_cast %83 : vector<1x32x128xbf16> to vector<32x128xbf16>
    %cst_54 = arith.constant dense<0.000000e+00> : vector<2x128xf32>
    %85 = tpu.matmul %82, %84, %cst_54 {dimension_numbers = #tpu.dot_dimension_numbers<[1], [0], [0], [1], [0, 0, 1, 1], [], []>} : vector<2x32xbf16>, vector<32x128xbf16>, vector<2x128xf32> -> vector<2x128xf32>
    %86 = arith.addf %81, %85 : vector<2x128xf32>
    %c6 = arith.constant 6 : index
    %c0_55 = arith.constant 0 : index
    %87 = vector.load %arg19[%c6, %c0_55] : memref<128x32xbf16, #tpu.memory_space<vmem>>, vector<2x32xbf16>
    %c3 = arith.constant 3 : index
    %c0_56 = arith.constant 0 : index
    %c0_57 = arith.constant 0 : index
    %88 = vector.load %arg11[%c3, %c0_56, %c0_57] : memref<64x32x128xbf16, #tpu.memory_space<vmem>>, vector<1x32x128xbf16>
    %89 = vector.shape_cast %88 : vector<1x32x128xbf16> to vector<32x128xbf16>
    %cst_58 = arith.constant dense<0.000000e+00> : vector<2x128xf32>
    %90 = tpu.matmul %87, %89, %cst_58 {dimension_numbers = #tpu.dot_dimension_numbers<[1], [0], [0], [1], [0, 0, 1, 1], [], []>} : vector<2x32xbf16>, vector<32x128xbf16>, vector<2x128xf32> -> vector<2x128xf32>
    %91 = arith.addf %86, %90 : vector<2x128xf32>
    %c8 = arith.constant 8 : index
    %c0_59 = arith.constant 0 : index
    %92 = vector.load %arg19[%c8, %c0_59] : memref<128x32xbf16, #tpu.memory_space<vmem>>, vector<2x32xbf16>
    %c4_60 = arith.constant 4 : index
    %c0_61 = arith.constant 0 : index
    %c0_62 = arith.constant 0 : index
    %93 = vector.load %arg11[%c4_60, %c0_61, %c0_62] : memref<64x32x128xbf16, #tpu.memory_space<vmem>>, vector<1x32x128xbf16>
    %94 = vector.shape_cast %93 : vector<1x32x128xbf16> to vector<32x128xbf16>
    %cst_63 = arith.constant dense<0.000000e+00> : vector<2x128xf32>
    %95 = tpu.matmul %92, %94, %cst_63 {dimension_numbers = #tpu.dot_dimension_numbers<[1], [0], [0], [1], [0, 0, 1, 1], [], []>} : vector<2x32xbf16>, vector<32x128xbf16>, vector<2x128xf32> -> vector<2x128xf32>
    %96 = arith.addf %91, %95 : vector<2x128xf32>
    %c10 = arith.constant 10 : index
    %c0_64 = arith.constant 0 : index
    %97 = vector.load %arg19[%c10, %c0_64] : memref<128x32xbf16, #tpu.memory_space<vmem>>, vector<2x32xbf16>
    %c5 = arith.constant 5 : index
    %c0_65 = arith.constant 0 : index
    %c0_66 = arith.constant 0 : index
    %98 = vector.load %arg11[%c5, %c0_65, %c0_66] : memref<64x32x128xbf16, #tpu.memory_space<vmem>>, vector<1x32x128xbf16>
    %99 = vector.shape_cast %98 : vector<1x32x128xbf16> to vector<32x128xbf16>
    %cst_67 = arith.constant dense<0.000000e+00> : vector<2x128xf32>
    %100 = tpu.matmul %97, %99, %cst_67 {dimension_numbers = #tpu.dot_dimension_numbers<[1], [0], [0], [1], [0, 0, 1, 1], [], []>} : vector<2x32xbf16>, vector<32x128xbf16>, vector<2x128xf32> -> vector<2x128xf32>
    %101 = arith.addf %96, %100 : vector<2x128xf32>
    %c12 = arith.constant 12 : index
    %c0_68 = arith.constant 0 : index
    %102 = vector.load %arg19[%c12, %c0_68] : memref<128x32xbf16, #tpu.memory_space<vmem>>, vector<2x32xbf16>
    %c6_69 = arith.constant 6 : index
    %c0_70 = arith.constant 0 : index
    %c0_71 = arith.constant 0 : index
    %103 = vector.load %arg11[%c6_69, %c0_70, %c0_71] : memref<64x32x128xbf16, #tpu.memory_space<vmem>>, vector<1x32x128xbf16>
    %104 = vector.shape_cast %103 : vector<1x32x128xbf16> to vector<32x128xbf16>
    %cst_72 = arith.constant dense<0.000000e+00> : vector<2x128xf32>
    %105 = tpu.matmul %102, %104, %cst_72 {dimension_numbers = #tpu.dot_dimension_numbers<[1], [0], [0], [1], [0, 0, 1, 1], [], []>} : vector<2x32xbf16>, vector<32x128xbf16>, vector<2x128xf32> -> vector<2x128xf32>
    %106 = arith.addf %101, %105 : vector<2x128xf32>
    %c14 = arith.constant 14 : index
    %c0_73 = arith.constant 0 : index
    %107 = vector.load %arg19[%c14, %c0_73] : memref<128x32xbf16, #tpu.memory_space<vmem>>, vector<2x32xbf16>
    %c7 = arith.constant 7 : index
    %c0_74 = arith.constant 0 : index
    %c0_75 = arith.constant 0 : index
    %108 = vector.load %arg11[%c7, %c0_74, %c0_75] : memref<64x32x128xbf16, #tpu.memory_space<vmem>>, vector<1x32x128xbf16>
    %109 = vector.shape_cast %108 : vector<1x32x128xbf16> to vector<32x128xbf16>
    %cst_76 = arith.constant dense<0.000000e+00> : vector<2x128xf32>
    %110 = tpu.matmul %107, %109, %cst_76 {dimension_numbers = #tpu.dot_dimension_numbers<[1], [0], [0], [1], [0, 0, 1, 1], [], []>} : vector<2x32xbf16>, vector<32x128xbf16>, vector<2x128xf32> -> vector<2x128xf32>
    %111 = arith.addf %106, %110 : vector<2x128xf32>
    %c16 = arith.constant 16 : index
    %c0_77 = arith.constant 0 : index
    %112 = vector.load %arg19[%c16, %c0_77] : memref<128x32xbf16, #tpu.memory_space<vmem>>, vector<2x32xbf16>
    %c8_78 = arith.constant 8 : index
    %c0_79 = arith.constant 0 : index
    %c0_80 = arith.constant 0 : index
    %113 = vector.load %arg11[%c8_78, %c0_79, %c0_80] : memref<64x32x128xbf16, #tpu.memory_space<vmem>>, vector<1x32x128xbf16>
    %114 = vector.shape_cast %113 : vector<1x32x128xbf16> to vector<32x128xbf16>
    %cst_81 = arith.constant dense<0.000000e+00> : vector<2x128xf32>
    %115 = tpu.matmul %112, %114, %cst_81 {dimension_numbers = #tpu.dot_dimension_numbers<[1], [0], [0], [1], [0, 0, 1, 1], [], []>} : vector<2x32xbf16>, vector<32x128xbf16>, vector<2x128xf32> -> vector<2x128xf32>
    %116 = arith.addf %111, %115 : vector<2x128xf32>
    %c18 = arith.constant 18 : index
    %c0_82 = arith.constant 0 : index
    %117 = vector.load %arg19[%c18, %c0_82] : memref<128x32xbf16, #tpu.memory_space<vmem>>, vector<2x32xbf16>
    %c9 = arith.constant 9 : index
    %c0_83 = arith.constant 0 : index
    %c0_84 = arith.constant 0 : index
    %118 = vector.load %arg11[%c9, %c0_83, %c0_84] : memref<64x32x128xbf16, #tpu.memory_space<vmem>>, vector<1x32x128xbf16>
    %119 = vector.shape_cast %118 : vector<1x32x128xbf16> to vector<32x128xbf16>
    %cst_85 = arith.constant dense<0.000000e+00> : vector<2x128xf32>
    %120 = tpu.matmul %117, %119, %cst_85 {dimension_numbers = #tpu.dot_dimension_numbers<[1], [0], [0], [1], [0, 0, 1, 1], [], []>} : vector<2x32xbf16>, vector<32x128xbf16>, vector<2x128xf32> -> vector<2x128xf32>
    %121 = arith.addf %116, %120 : vector<2x128xf32>
    %c20 = arith.constant 20 : index
    %c0_86 = arith.constant 0 : index
    %122 = vector.load %arg19[%c20, %c0_86] : memref<128x32xbf16, #tpu.memory_space<vmem>>, vector<2x32xbf16>
    %c10_87 = arith.constant 10 : index
    %c0_88 = arith.constant 0 : index
    %c0_89 = arith.constant 0 : index
    %123 = vector.load %arg11[%c10_87, %c0_88, %c0_89] : memref<64x32x128xbf16, #tpu.memory_space<vmem>>, vector<1x32x128xbf16>
    %124 = vector.shape_cast %123 : vector<1x32x128xbf16> to vector<32x128xbf16>
    %cst_90 = arith.constant dense<0.000000e+00> : vector<2x128xf32>
    %125 = tpu.matmul %122, %124, %cst_90 {dimension_numbers = #tpu.dot_dimension_numbers<[1], [0], [0], [1], [0, 0, 1, 1], [], []>} : vector<2x32xbf16>, vector<32x128xbf16>, vector<2x128xf32> -> vector<2x128xf32>
    %126 = arith.addf %121, %125 : vector<2x128xf32>
    %c22 = arith.constant 22 : index
    %c0_91 = arith.constant 0 : index
    %127 = vector.load %arg19[%c22, %c0_91] : memref<128x32xbf16, #tpu.memory_space<vmem>>, vector<2x32xbf16>
    %c11 = arith.constant 11 : index
    %c0_92 = arith.constant 0 : index
    %c0_93 = arith.constant 0 : index
    %128 = vector.load %arg11[%c11, %c0_92, %c0_93] : memref<64x32x128xbf16, #tpu.memory_space<vmem>>, vector<1x32x128xbf16>
    %129 = vector.shape_cast %128 : vector<1x32x128xbf16> to vector<32x128xbf16>
    %cst_94 = arith.constant dense<0.000000e+00> : vector<2x128xf32>
    %130 = tpu.matmul %127, %129, %cst_94 {dimension_numbers = #tpu.dot_dimension_numbers<[1], [0], [0], [1], [0, 0, 1, 1], [], []>} : vector<2x32xbf16>, vector<32x128xbf16>, vector<2x128xf32> -> vector<2x128xf32>
    %131 = arith.addf %126, %130 : vector<2x128xf32>
    %c24 = arith.constant 24 : index
    %c0_95 = arith.constant 0 : index
    %132 = vector.load %arg19[%c24, %c0_95] : memref<128x32xbf16, #tpu.memory_space<vmem>>, vector<2x32xbf16>
    %c12_96 = arith.constant 12 : index
    %c0_97 = arith.constant 0 : index
    %c0_98 = arith.constant 0 : index
    %133 = vector.load %arg11[%c12_96, %c0_97, %c0_98] : memref<64x32x128xbf16, #tpu.memory_space<vmem>>, vector<1x32x128xbf16>
    %134 = vector.shape_cast %133 : vector<1x32x128xbf16> to vector<32x128xbf16>
    %cst_99 = arith.constant dense<0.000000e+00> : vector<2x128xf32>
    %135 = tpu.matmul %132, %134, %cst_99 {dimension_numbers = #tpu.dot_dimension_numbers<[1], [0], [0], [1], [0, 0, 1, 1], [], []>} : vector<2x32xbf16>, vector<32x128xbf16>, vector<2x128xf32> -> vector<2x128xf32>
    %136 = arith.addf %131, %135 : vector<2x128xf32>
    %c26 = arith.constant 26 : index
    %c0_100 = arith.constant 0 : index
    %137 = vector.load %arg19[%c26, %c0_100] : memref<128x32xbf16, #tpu.memory_space<vmem>>, vector<2x32xbf16>
    %c13 = arith.constant 13 : index
    %c0_101 = arith.constant 0 : index
    %c0_102 = arith.constant 0 : index
    %138 = vector.load %arg11[%c13, %c0_101, %c0_102] : memref<64x32x128xbf16, #tpu.memory_space<vmem>>, vector<1x32x128xbf16>
    %139 = vector.shape_cast %138 : vector<1x32x128xbf16> to vector<32x128xbf16>
    %cst_103 = arith.constant dense<0.000000e+00> : vector<2x128xf32>
    %140 = tpu.matmul %137, %139, %cst_103 {dimension_numbers = #tpu.dot_dimension_numbers<[1], [0], [0], [1], [0, 0, 1, 1], [], []>} : vector<2x32xbf16>, vector<32x128xbf16>, vector<2x128xf32> -> vector<2x128xf32>
    %141 = arith.addf %136, %140 : vector<2x128xf32>
    %c28 = arith.constant 28 : index
    %c0_104 = arith.constant 0 : index
    %142 = vector.load %arg19[%c28, %c0_104] : memref<128x32xbf16, #tpu.memory_space<vmem>>, vector<2x32xbf16>
    %c14_105 = arith.constant 14 : index
    %c0_106 = arith.constant 0 : index
    %c0_107 = arith.constant 0 : index
    %143 = vector.load %arg11[%c14_105, %c0_106, %c0_107] : memref<64x32x128xbf16, #tpu.memory_space<vmem>>, vector<1x32x128xbf16>
    %144 = vector.shape_cast %143 : vector<1x32x128xbf16> to vector<32x128xbf16>
    %cst_108 = arith.constant dense<0.000000e+00> : vector<2x128xf32>
    %145 = tpu.matmul %142, %144, %cst_108 {dimension_numbers = #tpu.dot_dimension_numbers<[1], [0], [0], [1], [0, 0, 1, 1], [], []>} : vector<2x32xbf16>, vector<32x128xbf16>, vector<2x128xf32> -> vector<2x128xf32>
    %146 = arith.addf %141, %145 : vector<2x128xf32>
    %c30 = arith.constant 30 : index
    %c0_109 = arith.constant 0 : index
    %147 = vector.load %arg19[%c30, %c0_109] : memref<128x32xbf16, #tpu.memory_space<vmem>>, vector<2x32xbf16>
    %c15 = arith.constant 15 : index
    %c0_110 = arith.constant 0 : index
    %c0_111 = arith.constant 0 : index
    %148 = vector.load %arg11[%c15, %c0_110, %c0_111] : memref<64x32x128xbf16, #tpu.memory_space<vmem>>, vector<1x32x128xbf16>
    %149 = vector.shape_cast %148 : vector<1x32x128xbf16> to vector<32x128xbf16>
    %cst_112 = arith.constant dense<0.000000e+00> : vector<2x128xf32>
    %150 = tpu.matmul %147, %149, %cst_112 {dimension_numbers = #tpu.dot_dimension_numbers<[1], [0], [0], [1], [0, 0, 1, 1], [], []>} : vector<2x32xbf16>, vector<32x128xbf16>, vector<2x128xf32> -> vector<2x128xf32>
    %151 = arith.addf %146, %150 : vector<2x128xf32>
    %c32 = arith.constant 32 : index
    %c0_113 = arith.constant 0 : index
    %152 = vector.load %arg19[%c32, %c0_113] : memref<128x32xbf16, #tpu.memory_space<vmem>>, vector<2x32xbf16>
    %c16_114 = arith.constant 16 : index
    %c0_115 = arith.constant 0 : index
    %c0_116 = arith.constant 0 : index
    %153 = vector.load %arg11[%c16_114, %c0_115, %c0_116] : memref<64x32x128xbf16, #tpu.memory_space<vmem>>, vector<1x32x128xbf16>
    %154 = vector.shape_cast %153 : vector<1x32x128xbf16> to vector<32x128xbf16>
    %cst_117 = arith.constant dense<0.000000e+00> : vector<2x128xf32>
    %155 = tpu.matmul %152, %154, %cst_117 {dimension_numbers = #tpu.dot_dimension_numbers<[1], [0], [0], [1], [0, 0, 1, 1], [], []>} : vector<2x32xbf16>, vector<32x128xbf16>, vector<2x128xf32> -> vector<2x128xf32>
    %156 = arith.addf %151, %155 : vector<2x128xf32>
    %c34 = arith.constant 34 : index
    %c0_118 = arith.constant 0 : index
    %157 = vector.load %arg19[%c34, %c0_118] : memref<128x32xbf16, #tpu.memory_space<vmem>>, vector<2x32xbf16>
    %c17 = arith.constant 17 : index
    %c0_119 = arith.constant 0 : index
    %c0_120 = arith.constant 0 : index
    %158 = vector.load %arg11[%c17, %c0_119, %c0_120] : memref<64x32x128xbf16, #tpu.memory_space<vmem>>, vector<1x32x128xbf16>
    %159 = vector.shape_cast %158 : vector<1x32x128xbf16> to vector<32x128xbf16>
    %cst_121 = arith.constant dense<0.000000e+00> : vector<2x128xf32>
    %160 = tpu.matmul %157, %159, %cst_121 {dimension_numbers = #tpu.dot_dimension_numbers<[1], [0], [0], [1], [0, 0, 1, 1], [], []>} : vector<2x32xbf16>, vector<32x128xbf16>, vector<2x128xf32> -> vector<2x128xf32>
    %161 = arith.addf %156, %160 : vector<2x128xf32>
    %c36 = arith.constant 36 : index
    %c0_122 = arith.constant 0 : index
    %162 = vector.load %arg19[%c36, %c0_122] : memref<128x32xbf16, #tpu.memory_space<vmem>>, vector<2x32xbf16>
    %c18_123 = arith.constant 18 : index
    %c0_124 = arith.constant 0 : index
    %c0_125 = arith.constant 0 : index
    %163 = vector.load %arg11[%c18_123, %c0_124, %c0_125] : memref<64x32x128xbf16, #tpu.memory_space<vmem>>, vector<1x32x128xbf16>
    %164 = vector.shape_cast %163 : vector<1x32x128xbf16> to vector<32x128xbf16>
    %cst_126 = arith.constant dense<0.000000e+00> : vector<2x128xf32>
    %165 = tpu.matmul %162, %164, %cst_126 {dimension_numbers = #tpu.dot_dimension_numbers<[1], [0], [0], [1], [0, 0, 1, 1], [], []>} : vector<2x32xbf16>, vector<32x128xbf16>, vector<2x128xf32> -> vector<2x128xf32>
    %166 = arith.addf %161, %165 : vector<2x128xf32>
    %c38 = arith.constant 38 : index
    %c0_127 = arith.constant 0 : index
    %167 = vector.load %arg19[%c38, %c0_127] : memref<128x32xbf16, #tpu.memory_space<vmem>>, vector<2x32xbf16>
    %c19 = arith.constant 19 : index
    %c0_128 = arith.constant 0 : index
    %c0_129 = arith.constant 0 : index
    %168 = vector.load %arg11[%c19, %c0_128, %c0_129] : memref<64x32x128xbf16, #tpu.memory_space<vmem>>, vector<1x32x128xbf16>
    %169 = vector.shape_cast %168 : vector<1x32x128xbf16> to vector<32x128xbf16>
    %cst_130 = arith.constant dense<0.000000e+00> : vector<2x128xf32>
    %170 = tpu.matmul %167, %169, %cst_130 {dimension_numbers = #tpu.dot_dimension_numbers<[1], [0], [0], [1], [0, 0, 1, 1], [], []>} : vector<2x32xbf16>, vector<32x128xbf16>, vector<2x128xf32> -> vector<2x128xf32>
    %171 = arith.addf %166, %170 : vector<2x128xf32>
    %c40 = arith.constant 40 : index
    %c0_131 = arith.constant 0 : index
    %172 = vector.load %arg19[%c40, %c0_131] : memref<128x32xbf16, #tpu.memory_space<vmem>>, vector<2x32xbf16>
    %c20_132 = arith.constant 20 : index
    %c0_133 = arith.constant 0 : index
    %c0_134 = arith.constant 0 : index
    %173 = vector.load %arg11[%c20_132, %c0_133, %c0_134] : memref<64x32x128xbf16, #tpu.memory_space<vmem>>, vector<1x32x128xbf16>
    %174 = vector.shape_cast %173 : vector<1x32x128xbf16> to vector<32x128xbf16>
    %cst_135 = arith.constant dense<0.000000e+00> : vector<2x128xf32>
    %175 = tpu.matmul %172, %174, %cst_135 {dimension_numbers = #tpu.dot_dimension_numbers<[1], [0], [0], [1], [0, 0, 1, 1], [], []>} : vector<2x32xbf16>, vector<32x128xbf16>, vector<2x128xf32> -> vector<2x128xf32>
    %176 = arith.addf %171, %175 : vector<2x128xf32>
    %c42 = arith.constant 42 : index
    %c0_136 = arith.constant 0 : index
    %177 = vector.load %arg19[%c42, %c0_136] : memref<128x32xbf16, #tpu.memory_space<vmem>>, vector<2x32xbf16>
    %c21 = arith.constant 21 : index
    %c0_137 = arith.constant 0 : index
    %c0_138 = arith.constant 0 : index
    %178 = vector.load %arg11[%c21, %c0_137, %c0_138] : memref<64x32x128xbf16, #tpu.memory_space<vmem>>, vector<1x32x128xbf16>
    %179 = vector.shape_cast %178 : vector<1x32x128xbf16> to vector<32x128xbf16>
    %cst_139 = arith.constant dense<0.000000e+00> : vector<2x128xf32>
    %180 = tpu.matmul %177, %179, %cst_139 {dimension_numbers = #tpu.dot_dimension_numbers<[1], [0], [0], [1], [0, 0, 1, 1], [], []>} : vector<2x32xbf16>, vector<32x128xbf16>, vector<2x128xf32> -> vector<2x128xf32>
    %181 = arith.addf %176, %180 : vector<2x128xf32>
    %c44 = arith.constant 44 : index
    %c0_140 = arith.constant 0 : index
    %182 = vector.load %arg19[%c44, %c0_140] : memref<128x32xbf16, #tpu.memory_space<vmem>>, vector<2x32xbf16>
    %c22_141 = arith.constant 22 : index
    %c0_142 = arith.constant 0 : index
    %c0_143 = arith.constant 0 : index
    %183 = vector.load %arg11[%c22_141, %c0_142, %c0_143] : memref<64x32x128xbf16, #tpu.memory_space<vmem>>, vector<1x32x128xbf16>
    %184 = vector.shape_cast %183 : vector<1x32x128xbf16> to vector<32x128xbf16>
    %cst_144 = arith.constant dense<0.000000e+00> : vector<2x128xf32>
    %185 = tpu.matmul %182, %184, %cst_144 {dimension_numbers = #tpu.dot_dimension_numbers<[1], [0], [0], [1], [0, 0, 1, 1], [], []>} : vector<2x32xbf16>, vector<32x128xbf16>, vector<2x128xf32> -> vector<2x128xf32>
    %186 = arith.addf %181, %185 : vector<2x128xf32>
    %c46 = arith.constant 46 : index
    %c0_145 = arith.constant 0 : index
    %187 = vector.load %arg19[%c46, %c0_145] : memref<128x32xbf16, #tpu.memory_space<vmem>>, vector<2x32xbf16>
    %c23 = arith.constant 23 : index
    %c0_146 = arith.constant 0 : index
    %c0_147 = arith.constant 0 : index
    %188 = vector.load %arg11[%c23, %c0_146, %c0_147] : memref<64x32x128xbf16, #tpu.memory_space<vmem>>, vector<1x32x128xbf16>
    %189 = vector.shape_cast %188 : vector<1x32x128xbf16> to vector<32x128xbf16>
    %cst_148 = arith.constant dense<0.000000e+00> : vector<2x128xf32>
    %190 = tpu.matmul %187, %189, %cst_148 {dimension_numbers = #tpu.dot_dimension_numbers<[1], [0], [0], [1], [0, 0, 1, 1], [], []>} : vector<2x32xbf16>, vector<32x128xbf16>, vector<2x128xf32> -> vector<2x128xf32>
    %191 = arith.addf %186, %190 : vector<2x128xf32>
    %c48 = arith.constant 48 : index
    %c0_149 = arith.constant 0 : index
    %192 = vector.load %arg19[%c48, %c0_149] : memref<128x32xbf16, #tpu.memory_space<vmem>>, vector<2x32xbf16>
    %c24_150 = arith.constant 24 : index
    %c0_151 = arith.constant 0 : index
    %c0_152 = arith.constant 0 : index
    %193 = vector.load %arg11[%c24_150, %c0_151, %c0_152] : memref<64x32x128xbf16, #tpu.memory_space<vmem>>, vector<1x32x128xbf16>
    %194 = vector.shape_cast %193 : vector<1x32x128xbf16> to vector<32x128xbf16>
    %cst_153 = arith.constant dense<0.000000e+00> : vector<2x128xf32>
    %195 = tpu.matmul %192, %194, %cst_153 {dimension_numbers = #tpu.dot_dimension_numbers<[1], [0], [0], [1], [0, 0, 1, 1], [], []>} : vector<2x32xbf16>, vector<32x128xbf16>, vector<2x128xf32> -> vector<2x128xf32>
    %196 = arith.addf %191, %195 : vector<2x128xf32>
    %c50 = arith.constant 50 : index
    %c0_154 = arith.constant 0 : index
    %197 = vector.load %arg19[%c50, %c0_154] : memref<128x32xbf16, #tpu.memory_space<vmem>>, vector<2x32xbf16>
    %c25 = arith.constant 25 : index
    %c0_155 = arith.constant 0 : index
    %c0_156 = arith.constant 0 : index
    %198 = vector.load %arg11[%c25, %c0_155, %c0_156] : memref<64x32x128xbf16, #tpu.memory_space<vmem>>, vector<1x32x128xbf16>
    %199 = vector.shape_cast %198 : vector<1x32x128xbf16> to vector<32x128xbf16>
    %cst_157 = arith.constant dense<0.000000e+00> : vector<2x128xf32>
    %200 = tpu.matmul %197, %199, %cst_157 {dimension_numbers = #tpu.dot_dimension_numbers<[1], [0], [0], [1], [0, 0, 1, 1], [], []>} : vector<2x32xbf16>, vector<32x128xbf16>, vector<2x128xf32> -> vector<2x128xf32>
    %201 = arith.addf %196, %200 : vector<2x128xf32>
    %c52 = arith.constant 52 : index
    %c0_158 = arith.constant 0 : index
    %202 = vector.load %arg19[%c52, %c0_158] : memref<128x32xbf16, #tpu.memory_space<vmem>>, vector<2x32xbf16>
    %c26_159 = arith.constant 26 : index
    %c0_160 = arith.constant 0 : index
    %c0_161 = arith.constant 0 : index
    %203 = vector.load %arg11[%c26_159, %c0_160, %c0_161] : memref<64x32x128xbf16, #tpu.memory_space<vmem>>, vector<1x32x128xbf16>
    %204 = vector.shape_cast %203 : vector<1x32x128xbf16> to vector<32x128xbf16>
    %cst_162 = arith.constant dense<0.000000e+00> : vector<2x128xf32>
    %205 = tpu.matmul %202, %204, %cst_162 {dimension_numbers = #tpu.dot_dimension_numbers<[1], [0], [0], [1], [0, 0, 1, 1], [], []>} : vector<2x32xbf16>, vector<32x128xbf16>, vector<2x128xf32> -> vector<2x128xf32>
    %206 = arith.addf %201, %205 : vector<2x128xf32>
    %c54 = arith.constant 54 : index
    %c0_163 = arith.constant 0 : index
    %207 = vector.load %arg19[%c54, %c0_163] : memref<128x32xbf16, #tpu.memory_space<vmem>>, vector<2x32xbf16>
    %c27 = arith.constant 27 : index
    %c0_164 = arith.constant 0 : index
    %c0_165 = arith.constant 0 : index
    %208 = vector.load %arg11[%c27, %c0_164, %c0_165] : memref<64x32x128xbf16, #tpu.memory_space<vmem>>, vector<1x32x128xbf16>
    %209 = vector.shape_cast %208 : vector<1x32x128xbf16> to vector<32x128xbf16>
    %cst_166 = arith.constant dense<0.000000e+00> : vector<2x128xf32>
    %210 = tpu.matmul %207, %209, %cst_166 {dimension_numbers = #tpu.dot_dimension_numbers<[1], [0], [0], [1], [0, 0, 1, 1], [], []>} : vector<2x32xbf16>, vector<32x128xbf16>, vector<2x128xf32> -> vector<2x128xf32>
    %211 = arith.addf %206, %210 : vector<2x128xf32>
    %c56 = arith.constant 56 : index
    %c0_167 = arith.constant 0 : index
    %212 = vector.load %arg19[%c56, %c0_167] : memref<128x32xbf16, #tpu.memory_space<vmem>>, vector<2x32xbf16>
    %c28_168 = arith.constant 28 : index
    %c0_169 = arith.constant 0 : index
    %c0_170 = arith.constant 0 : index
    %213 = vector.load %arg11[%c28_168, %c0_169, %c0_170] : memref<64x32x128xbf16, #tpu.memory_space<vmem>>, vector<1x32x128xbf16>
    %214 = vector.shape_cast %213 : vector<1x32x128xbf16> to vector<32x128xbf16>
    %cst_171 = arith.constant dense<0.000000e+00> : vector<2x128xf32>
    %215 = tpu.matmul %212, %214, %cst_171 {dimension_numbers = #tpu.dot_dimension_numbers<[1], [0], [0], [1], [0, 0, 1, 1], [], []>} : vector<2x32xbf16>, vector<32x128xbf16>, vector<2x128xf32> -> vector<2x128xf32>
    %216 = arith.addf %211, %215 : vector<2x128xf32>
    %c58 = arith.constant 58 : index
    %c0_172 = arith.constant 0 : index
    %217 = vector.load %arg19[%c58, %c0_172] : memref<128x32xbf16, #tpu.memory_space<vmem>>, vector<2x32xbf16>
    %c29 = arith.constant 29 : index
    %c0_173 = arith.constant 0 : index
    %c0_174 = arith.constant 0 : index
    %218 = vector.load %arg11[%c29, %c0_173, %c0_174] : memref<64x32x128xbf16, #tpu.memory_space<vmem>>, vector<1x32x128xbf16>
    %219 = vector.shape_cast %218 : vector<1x32x128xbf16> to vector<32x128xbf16>
    %cst_175 = arith.constant dense<0.000000e+00> : vector<2x128xf32>
    %220 = tpu.matmul %217, %219, %cst_175 {dimension_numbers = #tpu.dot_dimension_numbers<[1], [0], [0], [1], [0, 0, 1, 1], [], []>} : vector<2x32xbf16>, vector<32x128xbf16>, vector<2x128xf32> -> vector<2x128xf32>
    %221 = arith.addf %216, %220 : vector<2x128xf32>
    %c60 = arith.constant 60 : index
    %c0_176 = arith.constant 0 : index
    %222 = vector.load %arg19[%c60, %c0_176] : memref<128x32xbf16, #tpu.memory_space<vmem>>, vector<2x32xbf16>
    %c30_177 = arith.constant 30 : index
    %c0_178 = arith.constant 0 : index
    %c0_179 = arith.constant 0 : index
    %223 = vector.load %arg11[%c30_177, %c0_178, %c0_179] : memref<64x32x128xbf16, #tpu.memory_space<vmem>>, vector<1x32x128xbf16>
    %224 = vector.shape_cast %223 : vector<1x32x128xbf16> to vector<32x128xbf16>
    %cst_180 = arith.constant dense<0.000000e+00> : vector<2x128xf32>
    %225 = tpu.matmul %222, %224, %cst_180 {dimension_numbers = #tpu.dot_dimension_numbers<[1], [0], [0], [1], [0, 0, 1, 1], [], []>} : vector<2x32xbf16>, vector<32x128xbf16>, vector<2x128xf32> -> vector<2x128xf32>
    %226 = arith.addf %221, %225 : vector<2x128xf32>
    %c62 = arith.constant 62 : index
    %c0_181 = arith.constant 0 : index
    %227 = vector.load %arg19[%c62, %c0_181] : memref<128x32xbf16, #tpu.memory_space<vmem>>, vector<2x32xbf16>
    %c31 = arith.constant 31 : index
    %c0_182 = arith.constant 0 : index
    %c0_183 = arith.constant 0 : index
    %228 = vector.load %arg11[%c31, %c0_182, %c0_183] : memref<64x32x128xbf16, #tpu.memory_space<vmem>>, vector<1x32x128xbf16>
    %229 = vector.shape_cast %228 : vector<1x32x128xbf16> to vector<32x128xbf16>
    %cst_184 = arith.constant dense<0.000000e+00> : vector<2x128xf32>
    %230 = tpu.matmul %227, %229, %cst_184 {dimension_numbers = #tpu.dot_dimension_numbers<[1], [0], [0], [1], [0, 0, 1, 1], [], []>} : vector<2x32xbf16>, vector<32x128xbf16>, vector<2x128xf32> -> vector<2x128xf32>
    %231 = arith.addf %226, %230 : vector<2x128xf32>
    %c64 = arith.constant 64 : index
    %c0_185 = arith.constant 0 : index
    %232 = vector.load %arg19[%c64, %c0_185] : memref<128x32xbf16, #tpu.memory_space<vmem>>, vector<2x32xbf16>
    %c32_186 = arith.constant 32 : index
    %c0_187 = arith.constant 0 : index
    %c0_188 = arith.constant 0 : index
    %233 = vector.load %arg11[%c32_186, %c0_187, %c0_188] : memref<64x32x128xbf16, #tpu.memory_space<vmem>>, vector<1x32x128xbf16>
    %234 = vector.shape_cast %233 : vector<1x32x128xbf16> to vector<32x128xbf16>
    %cst_189 = arith.constant dense<0.000000e+00> : vector<2x128xf32>
    %235 = tpu.matmul %232, %234, %cst_189 {dimension_numbers = #tpu.dot_dimension_numbers<[1], [0], [0], [1], [0, 0, 1, 1], [], []>} : vector<2x32xbf16>, vector<32x128xbf16>, vector<2x128xf32> -> vector<2x128xf32>
    %236 = arith.addf %231, %235 : vector<2x128xf32>
    %c66 = arith.constant 66 : index
    %c0_190 = arith.constant 0 : index
    %237 = vector.load %arg19[%c66, %c0_190] : memref<128x32xbf16, #tpu.memory_space<vmem>>, vector<2x32xbf16>
    %c33 = arith.constant 33 : index
    %c0_191 = arith.constant 0 : index
    %c0_192 = arith.constant 0 : index
    %238 = vector.load %arg11[%c33, %c0_191, %c0_192] : memref<64x32x128xbf16, #tpu.memory_space<vmem>>, vector<1x32x128xbf16>
    %239 = vector.shape_cast %238 : vector<1x32x128xbf16> to vector<32x128xbf16>
    %cst_193 = arith.constant dense<0.000000e+00> : vector<2x128xf32>
    %240 = tpu.matmul %237, %239, %cst_193 {dimension_numbers = #tpu.dot_dimension_numbers<[1], [0], [0], [1], [0, 0, 1, 1], [], []>} : vector<2x32xbf16>, vector<32x128xbf16>, vector<2x128xf32> -> vector<2x128xf32>
    %241 = arith.addf %236, %240 : vector<2x128xf32>
    %c68 = arith.constant 68 : index
    %c0_194 = arith.constant 0 : index
    %242 = vector.load %arg19[%c68, %c0_194] : memref<128x32xbf16, #tpu.memory_space<vmem>>, vector<2x32xbf16>
    %c34_195 = arith.constant 34 : index
    %c0_196 = arith.constant 0 : index
    %c0_197 = arith.constant 0 : index
    %243 = vector.load %arg11[%c34_195, %c0_196, %c0_197] : memref<64x32x128xbf16, #tpu.memory_space<vmem>>, vector<1x32x128xbf16>
    %244 = vector.shape_cast %243 : vector<1x32x128xbf16> to vector<32x128xbf16>
    %cst_198 = arith.constant dense<0.000000e+00> : vector<2x128xf32>
    %245 = tpu.matmul %242, %244, %cst_198 {dimension_numbers = #tpu.dot_dimension_numbers<[1], [0], [0], [1], [0, 0, 1, 1], [], []>} : vector<2x32xbf16>, vector<32x128xbf16>, vector<2x128xf32> -> vector<2x128xf32>
    %246 = arith.addf %241, %245 : vector<2x128xf32>
    %c70 = arith.constant 70 : index
    %c0_199 = arith.constant 0 : index
    %247 = vector.load %arg19[%c70, %c0_199] : memref<128x32xbf16, #tpu.memory_space<vmem>>, vector<2x32xbf16>
    %c35 = arith.constant 35 : index
    %c0_200 = arith.constant 0 : index
    %c0_201 = arith.constant 0 : index
    %248 = vector.load %arg11[%c35, %c0_200, %c0_201] : memref<64x32x128xbf16, #tpu.memory_space<vmem>>, vector<1x32x128xbf16>
    %249 = vector.shape_cast %248 : vector<1x32x128xbf16> to vector<32x128xbf16>
    %cst_202 = arith.constant dense<0.000000e+00> : vector<2x128xf32>
    %250 = tpu.matmul %247, %249, %cst_202 {dimension_numbers = #tpu.dot_dimension_numbers<[1], [0], [0], [1], [0, 0, 1, 1], [], []>} : vector<2x32xbf16>, vector<32x128xbf16>, vector<2x128xf32> -> vector<2x128xf32>
    %251 = arith.addf %246, %250 : vector<2x128xf32>
    %c72 = arith.constant 72 : index
    %c0_203 = arith.constant 0 : index
    %252 = vector.load %arg19[%c72, %c0_203] : memref<128x32xbf16, #tpu.memory_space<vmem>>, vector<2x32xbf16>
    %c36_204 = arith.constant 36 : index
    %c0_205 = arith.constant 0 : index
    %c0_206 = arith.constant 0 : index
    %253 = vector.load %arg11[%c36_204, %c0_205, %c0_206] : memref<64x32x128xbf16, #tpu.memory_space<vmem>>, vector<1x32x128xbf16>
    %254 = vector.shape_cast %253 : vector<1x32x128xbf16> to vector<32x128xbf16>
    %cst_207 = arith.constant dense<0.000000e+00> : vector<2x128xf32>
    %255 = tpu.matmul %252, %254, %cst_207 {dimension_numbers = #tpu.dot_dimension_numbers<[1], [0], [0], [1], [0, 0, 1, 1], [], []>} : vector<2x32xbf16>, vector<32x128xbf16>, vector<2x128xf32> -> vector<2x128xf32>
    %256 = arith.addf %251, %255 : vector<2x128xf32>
    %c74 = arith.constant 74 : index
    %c0_208 = arith.constant 0 : index
    %257 = vector.load %arg19[%c74, %c0_208] : memref<128x32xbf16, #tpu.memory_space<vmem>>, vector<2x32xbf16>
    %c37 = arith.constant 37 : index
    %c0_209 = arith.constant 0 : index
    %c0_210 = arith.constant 0 : index
    %258 = vector.load %arg11[%c37, %c0_209, %c0_210] : memref<64x32x128xbf16, #tpu.memory_space<vmem>>, vector<1x32x128xbf16>
    %259 = vector.shape_cast %258 : vector<1x32x128xbf16> to vector<32x128xbf16>
    %cst_211 = arith.constant dense<0.000000e+00> : vector<2x128xf32>
    %260 = tpu.matmul %257, %259, %cst_211 {dimension_numbers = #tpu.dot_dimension_numbers<[1], [0], [0], [1], [0, 0, 1, 1], [], []>} : vector<2x32xbf16>, vector<32x128xbf16>, vector<2x128xf32> -> vector<2x128xf32>
    %261 = arith.addf %256, %260 : vector<2x128xf32>
    %c76 = arith.constant 76 : index
    %c0_212 = arith.constant 0 : index
    %262 = vector.load %arg19[%c76, %c0_212] : memref<128x32xbf16, #tpu.memory_space<vmem>>, vector<2x32xbf16>
    %c38_213 = arith.constant 38 : index
    %c0_214 = arith.constant 0 : index
    %c0_215 = arith.constant 0 : index
    %263 = vector.load %arg11[%c38_213, %c0_214, %c0_215] : memref<64x32x128xbf16, #tpu.memory_space<vmem>>, vector<1x32x128xbf16>
    %264 = vector.shape_cast %263 : vector<1x32x128xbf16> to vector<32x128xbf16>
    %cst_216 = arith.constant dense<0.000000e+00> : vector<2x128xf32>
    %265 = tpu.matmul %262, %264, %cst_216 {dimension_numbers = #tpu.dot_dimension_numbers<[1], [0], [0], [1], [0, 0, 1, 1], [], []>} : vector<2x32xbf16>, vector<32x128xbf16>, vector<2x128xf32> -> vector<2x128xf32>
    %266 = arith.addf %261, %265 : vector<2x128xf32>
    %c78 = arith.constant 78 : index
    %c0_217 = arith.constant 0 : index
    %267 = vector.load %arg19[%c78, %c0_217] : memref<128x32xbf16, #tpu.memory_space<vmem>>, vector<2x32xbf16>
    %c39 = arith.constant 39 : index
    %c0_218 = arith.constant 0 : index
    %c0_219 = arith.constant 0 : index
    %268 = vector.load %arg11[%c39, %c0_218, %c0_219] : memref<64x32x128xbf16, #tpu.memory_space<vmem>>, vector<1x32x128xbf16>
    %269 = vector.shape_cast %268 : vector<1x32x128xbf16> to vector<32x128xbf16>
    %cst_220 = arith.constant dense<0.000000e+00> : vector<2x128xf32>
    %270 = tpu.matmul %267, %269, %cst_220 {dimension_numbers = #tpu.dot_dimension_numbers<[1], [0], [0], [1], [0, 0, 1, 1], [], []>} : vector<2x32xbf16>, vector<32x128xbf16>, vector<2x128xf32> -> vector<2x128xf32>
    %271 = arith.addf %266, %270 : vector<2x128xf32>
    %c80 = arith.constant 80 : index
    %c0_221 = arith.constant 0 : index
    %272 = vector.load %arg19[%c80, %c0_221] : memref<128x32xbf16, #tpu.memory_space<vmem>>, vector<2x32xbf16>
    %c40_222 = arith.constant 40 : index
    %c0_223 = arith.constant 0 : index
    %c0_224 = arith.constant 0 : index
    %273 = vector.load %arg11[%c40_222, %c0_223, %c0_224] : memref<64x32x128xbf16, #tpu.memory_space<vmem>>, vector<1x32x128xbf16>
    %274 = vector.shape_cast %273 : vector<1x32x128xbf16> to vector<32x128xbf16>
    %cst_225 = arith.constant dense<0.000000e+00> : vector<2x128xf32>
    %275 = tpu.matmul %272, %274, %cst_225 {dimension_numbers = #tpu.dot_dimension_numbers<[1], [0], [0], [1], [0, 0, 1, 1], [], []>} : vector<2x32xbf16>, vector<32x128xbf16>, vector<2x128xf32> -> vector<2x128xf32>
    %276 = arith.addf %271, %275 : vector<2x128xf32>
    %c82 = arith.constant 82 : index
    %c0_226 = arith.constant 0 : index
    %277 = vector.load %arg19[%c82, %c0_226] : memref<128x32xbf16, #tpu.memory_space<vmem>>, vector<2x32xbf16>
    %c41 = arith.constant 41 : index
    %c0_227 = arith.constant 0 : index
    %c0_228 = arith.constant 0 : index
    %278 = vector.load %arg11[%c41, %c0_227, %c0_228] : memref<64x32x128xbf16, #tpu.memory_space<vmem>>, vector<1x32x128xbf16>
    %279 = vector.shape_cast %278 : vector<1x32x128xbf16> to vector<32x128xbf16>
    %cst_229 = arith.constant dense<0.000000e+00> : vector<2x128xf32>
    %280 = tpu.matmul %277, %279, %cst_229 {dimension_numbers = #tpu.dot_dimension_numbers<[1], [0], [0], [1], [0, 0, 1, 1], [], []>} : vector<2x32xbf16>, vector<32x128xbf16>, vector<2x128xf32> -> vector<2x128xf32>
    %281 = arith.addf %276, %280 : vector<2x128xf32>
    %c84 = arith.constant 84 : index
    %c0_230 = arith.constant 0 : index
    %282 = vector.load %arg19[%c84, %c0_230] : memref<128x32xbf16, #tpu.memory_space<vmem>>, vector<2x32xbf16>
    %c42_231 = arith.constant 42 : index
    %c0_232 = arith.constant 0 : index
    %c0_233 = arith.constant 0 : index
    %283 = vector.load %arg11[%c42_231, %c0_232, %c0_233] : memref<64x32x128xbf16, #tpu.memory_space<vmem>>, vector<1x32x128xbf16>
    %284 = vector.shape_cast %283 : vector<1x32x128xbf16> to vector<32x128xbf16>
    %cst_234 = arith.constant dense<0.000000e+00> : vector<2x128xf32>
    %285 = tpu.matmul %282, %284, %cst_234 {dimension_numbers = #tpu.dot_dimension_numbers<[1], [0], [0], [1], [0, 0, 1, 1], [], []>} : vector<2x32xbf16>, vector<32x128xbf16>, vector<2x128xf32> -> vector<2x128xf32>
    %286 = arith.addf %281, %285 : vector<2x128xf32>
    %c86 = arith.constant 86 : index
    %c0_235 = arith.constant 0 : index
    %287 = vector.load %arg19[%c86, %c0_235] : memref<128x32xbf16, #tpu.memory_space<vmem>>, vector<2x32xbf16>
    %c43 = arith.constant 43 : index
    %c0_236 = arith.constant 0 : index
    %c0_237 = arith.constant 0 : index
    %288 = vector.load %arg11[%c43, %c0_236, %c0_237] : memref<64x32x128xbf16, #tpu.memory_space<vmem>>, vector<1x32x128xbf16>
    %289 = vector.shape_cast %288 : vector<1x32x128xbf16> to vector<32x128xbf16>
    %cst_238 = arith.constant dense<0.000000e+00> : vector<2x128xf32>
    %290 = tpu.matmul %287, %289, %cst_238 {dimension_numbers = #tpu.dot_dimension_numbers<[1], [0], [0], [1], [0, 0, 1, 1], [], []>} : vector<2x32xbf16>, vector<32x128xbf16>, vector<2x128xf32> -> vector<2x128xf32>
    %291 = arith.addf %286, %290 : vector<2x128xf32>
    %c88 = arith.constant 88 : index
    %c0_239 = arith.constant 0 : index
    %292 = vector.load %arg19[%c88, %c0_239] : memref<128x32xbf16, #tpu.memory_space<vmem>>, vector<2x32xbf16>
    %c44_240 = arith.constant 44 : index
    %c0_241 = arith.constant 0 : index
    %c0_242 = arith.constant 0 : index
    %293 = vector.load %arg11[%c44_240, %c0_241, %c0_242] : memref<64x32x128xbf16, #tpu.memory_space<vmem>>, vector<1x32x128xbf16>
    %294 = vector.shape_cast %293 : vector<1x32x128xbf16> to vector<32x128xbf16>
    %cst_243 = arith.constant dense<0.000000e+00> : vector<2x128xf32>
    %295 = tpu.matmul %292, %294, %cst_243 {dimension_numbers = #tpu.dot_dimension_numbers<[1], [0], [0], [1], [0, 0, 1, 1], [], []>} : vector<2x32xbf16>, vector<32x128xbf16>, vector<2x128xf32> -> vector<2x128xf32>
    %296 = arith.addf %291, %295 : vector<2x128xf32>
    %c90 = arith.constant 90 : index
    %c0_244 = arith.constant 0 : index
    %297 = vector.load %arg19[%c90, %c0_244] : memref<128x32xbf16, #tpu.memory_space<vmem>>, vector<2x32xbf16>
    %c45 = arith.constant 45 : index
    %c0_245 = arith.constant 0 : index
    %c0_246 = arith.constant 0 : index
    %298 = vector.load %arg11[%c45, %c0_245, %c0_246] : memref<64x32x128xbf16, #tpu.memory_space<vmem>>, vector<1x32x128xbf16>
    %299 = vector.shape_cast %298 : vector<1x32x128xbf16> to vector<32x128xbf16>
    %cst_247 = arith.constant dense<0.000000e+00> : vector<2x128xf32>
    %300 = tpu.matmul %297, %299, %cst_247 {dimension_numbers = #tpu.dot_dimension_numbers<[1], [0], [0], [1], [0, 0, 1, 1], [], []>} : vector<2x32xbf16>, vector<32x128xbf16>, vector<2x128xf32> -> vector<2x128xf32>
    %301 = arith.addf %296, %300 : vector<2x128xf32>
    %c92 = arith.constant 92 : index
    %c0_248 = arith.constant 0 : index
    %302 = vector.load %arg19[%c92, %c0_248] : memref<128x32xbf16, #tpu.memory_space<vmem>>, vector<2x32xbf16>
    %c46_249 = arith.constant 46 : index
    %c0_250 = arith.constant 0 : index
    %c0_251 = arith.constant 0 : index
    %303 = vector.load %arg11[%c46_249, %c0_250, %c0_251] : memref<64x32x128xbf16, #tpu.memory_space<vmem>>, vector<1x32x128xbf16>
    %304 = vector.shape_cast %303 : vector<1x32x128xbf16> to vector<32x128xbf16>
    %cst_252 = arith.constant dense<0.000000e+00> : vector<2x128xf32>
    %305 = tpu.matmul %302, %304, %cst_252 {dimension_numbers = #tpu.dot_dimension_numbers<[1], [0], [0], [1], [0, 0, 1, 1], [], []>} : vector<2x32xbf16>, vector<32x128xbf16>, vector<2x128xf32> -> vector<2x128xf32>
    %306 = arith.addf %301, %305 : vector<2x128xf32>
    %c94 = arith.constant 94 : index
    %c0_253 = arith.constant 0 : index
    %307 = vector.load %arg19[%c94, %c0_253] : memref<128x32xbf16, #tpu.memory_space<vmem>>, vector<2x32xbf16>
    %c47 = arith.constant 47 : index
    %c0_254 = arith.constant 0 : index
    %c0_255 = arith.constant 0 : index
    %308 = vector.load %arg11[%c47, %c0_254, %c0_255] : memref<64x32x128xbf16, #tpu.memory_space<vmem>>, vector<1x32x128xbf16>
    %309 = vector.shape_cast %308 : vector<1x32x128xbf16> to vector<32x128xbf16>
    %cst_256 = arith.constant dense<0.000000e+00> : vector<2x128xf32>
    %310 = tpu.matmul %307, %309, %cst_256 {dimension_numbers = #tpu.dot_dimension_numbers<[1], [0], [0], [1], [0, 0, 1, 1], [], []>} : vector<2x32xbf16>, vector<32x128xbf16>, vector<2x128xf32> -> vector<2x128xf32>
    %311 = arith.addf %306, %310 : vector<2x128xf32>
    %c96 = arith.constant 96 : index
    %c0_257 = arith.constant 0 : index
    %312 = vector.load %arg19[%c96, %c0_257] : memref<128x32xbf16, #tpu.memory_space<vmem>>, vector<2x32xbf16>
    %c48_258 = arith.constant 48 : index
    %c0_259 = arith.constant 0 : index
    %c0_260 = arith.constant 0 : index
    %313 = vector.load %arg11[%c48_258, %c0_259, %c0_260] : memref<64x32x128xbf16, #tpu.memory_space<vmem>>, vector<1x32x128xbf16>
    %314 = vector.shape_cast %313 : vector<1x32x128xbf16> to vector<32x128xbf16>
    %cst_261 = arith.constant dense<0.000000e+00> : vector<2x128xf32>
    %315 = tpu.matmul %312, %314, %cst_261 {dimension_numbers = #tpu.dot_dimension_numbers<[1], [0], [0], [1], [0, 0, 1, 1], [], []>} : vector<2x32xbf16>, vector<32x128xbf16>, vector<2x128xf32> -> vector<2x128xf32>
    %316 = arith.addf %311, %315 : vector<2x128xf32>
    %c98 = arith.constant 98 : index
    %c0_262 = arith.constant 0 : index
    %317 = vector.load %arg19[%c98, %c0_262] : memref<128x32xbf16, #tpu.memory_space<vmem>>, vector<2x32xbf16>
    %c49 = arith.constant 49 : index
    %c0_263 = arith.constant 0 : index
    %c0_264 = arith.constant 0 : index
    %318 = vector.load %arg11[%c49, %c0_263, %c0_264] : memref<64x32x128xbf16, #tpu.memory_space<vmem>>, vector<1x32x128xbf16>
    %319 = vector.shape_cast %318 : vector<1x32x128xbf16> to vector<32x128xbf16>
    %cst_265 = arith.constant dense<0.000000e+00> : vector<2x128xf32>
    %320 = tpu.matmul %317, %319, %cst_265 {dimension_numbers = #tpu.dot_dimension_numbers<[1], [0], [0], [1], [0, 0, 1, 1], [], []>} : vector<2x32xbf16>, vector<32x128xbf16>, vector<2x128xf32> -> vector<2x128xf32>
    %321 = arith.addf %316, %320 : vector<2x128xf32>
    %c100 = arith.constant 100 : index
    %c0_266 = arith.constant 0 : index
    %322 = vector.load %arg19[%c100, %c0_266] : memref<128x32xbf16, #tpu.memory_space<vmem>>, vector<2x32xbf16>
    %c50_267 = arith.constant 50 : index
    %c0_268 = arith.constant 0 : index
    %c0_269 = arith.constant 0 : index
    %323 = vector.load %arg11[%c50_267, %c0_268, %c0_269] : memref<64x32x128xbf16, #tpu.memory_space<vmem>>, vector<1x32x128xbf16>
    %324 = vector.shape_cast %323 : vector<1x32x128xbf16> to vector<32x128xbf16>
    %cst_270 = arith.constant dense<0.000000e+00> : vector<2x128xf32>
    %325 = tpu.matmul %322, %324, %cst_270 {dimension_numbers = #tpu.dot_dimension_numbers<[1], [0], [0], [1], [0, 0, 1, 1], [], []>} : vector<2x32xbf16>, vector<32x128xbf16>, vector<2x128xf32> -> vector<2x128xf32>
    %326 = arith.addf %321, %325 : vector<2x128xf32>
    %c102 = arith.constant 102 : index
    %c0_271 = arith.constant 0 : index
    %327 = vector.load %arg19[%c102, %c0_271] : memref<128x32xbf16, #tpu.memory_space<vmem>>, vector<2x32xbf16>
    %c51 = arith.constant 51 : index
    %c0_272 = arith.constant 0 : index
    %c0_273 = arith.constant 0 : index
    %328 = vector.load %arg11[%c51, %c0_272, %c0_273] : memref<64x32x128xbf16, #tpu.memory_space<vmem>>, vector<1x32x128xbf16>
    %329 = vector.shape_cast %328 : vector<1x32x128xbf16> to vector<32x128xbf16>
    %cst_274 = arith.constant dense<0.000000e+00> : vector<2x128xf32>
    %330 = tpu.matmul %327, %329, %cst_274 {dimension_numbers = #tpu.dot_dimension_numbers<[1], [0], [0], [1], [0, 0, 1, 1], [], []>} : vector<2x32xbf16>, vector<32x128xbf16>, vector<2x128xf32> -> vector<2x128xf32>
    %331 = arith.addf %326, %330 : vector<2x128xf32>
    %c104 = arith.constant 104 : index
    %c0_275 = arith.constant 0 : index
    %332 = vector.load %arg19[%c104, %c0_275] : memref<128x32xbf16, #tpu.memory_space<vmem>>, vector<2x32xbf16>
    %c52_276 = arith.constant 52 : index
    %c0_277 = arith.constant 0 : index
    %c0_278 = arith.constant 0 : index
    %333 = vector.load %arg11[%c52_276, %c0_277, %c0_278] : memref<64x32x128xbf16, #tpu.memory_space<vmem>>, vector<1x32x128xbf16>
    %334 = vector.shape_cast %333 : vector<1x32x128xbf16> to vector<32x128xbf16>
    %cst_279 = arith.constant dense<0.000000e+00> : vector<2x128xf32>
    %335 = tpu.matmul %332, %334, %cst_279 {dimension_numbers = #tpu.dot_dimension_numbers<[1], [0], [0], [1], [0, 0, 1, 1], [], []>} : vector<2x32xbf16>, vector<32x128xbf16>, vector<2x128xf32> -> vector<2x128xf32>
    %336 = arith.addf %331, %335 : vector<2x128xf32>
    %c106 = arith.constant 106 : index
    %c0_280 = arith.constant 0 : index
    %337 = vector.load %arg19[%c106, %c0_280] : memref<128x32xbf16, #tpu.memory_space<vmem>>, vector<2x32xbf16>
    %c53 = arith.constant 53 : index
    %c0_281 = arith.constant 0 : index
    %c0_282 = arith.constant 0 : index
    %338 = vector.load %arg11[%c53, %c0_281, %c0_282] : memref<64x32x128xbf16, #tpu.memory_space<vmem>>, vector<1x32x128xbf16>
    %339 = vector.shape_cast %338 : vector<1x32x128xbf16> to vector<32x128xbf16>
    %cst_283 = arith.constant dense<0.000000e+00> : vector<2x128xf32>
    %340 = tpu.matmul %337, %339, %cst_283 {dimension_numbers = #tpu.dot_dimension_numbers<[1], [0], [0], [1], [0, 0, 1, 1], [], []>} : vector<2x32xbf16>, vector<32x128xbf16>, vector<2x128xf32> -> vector<2x128xf32>
    %341 = arith.addf %336, %340 : vector<2x128xf32>
    %c108 = arith.constant 108 : index
    %c0_284 = arith.constant 0 : index
    %342 = vector.load %arg19[%c108, %c0_284] : memref<128x32xbf16, #tpu.memory_space<vmem>>, vector<2x32xbf16>
    %c54_285 = arith.constant 54 : index
    %c0_286 = arith.constant 0 : index
    %c0_287 = arith.constant 0 : index
    %343 = vector.load %arg11[%c54_285, %c0_286, %c0_287] : memref<64x32x128xbf16, #tpu.memory_space<vmem>>, vector<1x32x128xbf16>
    %344 = vector.shape_cast %343 : vector<1x32x128xbf16> to vector<32x128xbf16>
    %cst_288 = arith.constant dense<0.000000e+00> : vector<2x128xf32>
    %345 = tpu.matmul %342, %344, %cst_288 {dimension_numbers = #tpu.dot_dimension_numbers<[1], [0], [0], [1], [0, 0, 1, 1], [], []>} : vector<2x32xbf16>, vector<32x128xbf16>, vector<2x128xf32> -> vector<2x128xf32>
    %346 = arith.addf %341, %345 : vector<2x128xf32>
    %c110 = arith.constant 110 : index
    %c0_289 = arith.constant 0 : index
    %347 = vector.load %arg19[%c110, %c0_289] : memref<128x32xbf16, #tpu.memory_space<vmem>>, vector<2x32xbf16>
    %c55 = arith.constant 55 : index
    %c0_290 = arith.constant 0 : index
    %c0_291 = arith.constant 0 : index
    %348 = vector.load %arg11[%c55, %c0_290, %c0_291] : memref<64x32x128xbf16, #tpu.memory_space<vmem>>, vector<1x32x128xbf16>
    %349 = vector.shape_cast %348 : vector<1x32x128xbf16> to vector<32x128xbf16>
    %cst_292 = arith.constant dense<0.000000e+00> : vector<2x128xf32>
    %350 = tpu.matmul %347, %349, %cst_292 {dimension_numbers = #tpu.dot_dimension_numbers<[1], [0], [0], [1], [0, 0, 1, 1], [], []>} : vector<2x32xbf16>, vector<32x128xbf16>, vector<2x128xf32> -> vector<2x128xf32>
    %351 = arith.addf %346, %350 : vector<2x128xf32>
    %c112 = arith.constant 112 : index
    %c0_293 = arith.constant 0 : index
    %352 = vector.load %arg19[%c112, %c0_293] : memref<128x32xbf16, #tpu.memory_space<vmem>>, vector<2x32xbf16>
    %c56_294 = arith.constant 56 : index
    %c0_295 = arith.constant 0 : index
    %c0_296 = arith.constant 0 : index
    %353 = vector.load %arg11[%c56_294, %c0_295, %c0_296] : memref<64x32x128xbf16, #tpu.memory_space<vmem>>, vector<1x32x128xbf16>
    %354 = vector.shape_cast %353 : vector<1x32x128xbf16> to vector<32x128xbf16>
    %cst_297 = arith.constant dense<0.000000e+00> : vector<2x128xf32>
    %355 = tpu.matmul %352, %354, %cst_297 {dimension_numbers = #tpu.dot_dimension_numbers<[1], [0], [0], [1], [0, 0, 1, 1], [], []>} : vector<2x32xbf16>, vector<32x128xbf16>, vector<2x128xf32> -> vector<2x128xf32>
    %356 = arith.addf %351, %355 : vector<2x128xf32>
    %c114 = arith.constant 114 : index
    %c0_298 = arith.constant 0 : index
    %357 = vector.load %arg19[%c114, %c0_298] : memref<128x32xbf16, #tpu.memory_space<vmem>>, vector<2x32xbf16>
    %c57 = arith.constant 57 : index
    %c0_299 = arith.constant 0 : index
    %c0_300 = arith.constant 0 : index
    %358 = vector.load %arg11[%c57, %c0_299, %c0_300] : memref<64x32x128xbf16, #tpu.memory_space<vmem>>, vector<1x32x128xbf16>
    %359 = vector.shape_cast %358 : vector<1x32x128xbf16> to vector<32x128xbf16>
    %cst_301 = arith.constant dense<0.000000e+00> : vector<2x128xf32>
    %360 = tpu.matmul %357, %359, %cst_301 {dimension_numbers = #tpu.dot_dimension_numbers<[1], [0], [0], [1], [0, 0, 1, 1], [], []>} : vector<2x32xbf16>, vector<32x128xbf16>, vector<2x128xf32> -> vector<2x128xf32>
    %361 = arith.addf %356, %360 : vector<2x128xf32>
    %c116 = arith.constant 116 : index
    %c0_302 = arith.constant 0 : index
    %362 = vector.load %arg19[%c116, %c0_302] : memref<128x32xbf16, #tpu.memory_space<vmem>>, vector<2x32xbf16>
    %c58_303 = arith.constant 58 : index
    %c0_304 = arith.constant 0 : index
    %c0_305 = arith.constant 0 : index
    %363 = vector.load %arg11[%c58_303, %c0_304, %c0_305] : memref<64x32x128xbf16, #tpu.memory_space<vmem>>, vector<1x32x128xbf16>
    %364 = vector.shape_cast %363 : vector<1x32x128xbf16> to vector<32x128xbf16>
    %cst_306 = arith.constant dense<0.000000e+00> : vector<2x128xf32>
    %365 = tpu.matmul %362, %364, %cst_306 {dimension_numbers = #tpu.dot_dimension_numbers<[1], [0], [0], [1], [0, 0, 1, 1], [], []>} : vector<2x32xbf16>, vector<32x128xbf16>, vector<2x128xf32> -> vector<2x128xf32>
    %366 = arith.addf %361, %365 : vector<2x128xf32>
    %c118 = arith.constant 118 : index
    %c0_307 = arith.constant 0 : index
    %367 = vector.load %arg19[%c118, %c0_307] : memref<128x32xbf16, #tpu.memory_space<vmem>>, vector<2x32xbf16>
    %c59 = arith.constant 59 : index
    %c0_308 = arith.constant 0 : index
    %c0_309 = arith.constant 0 : index
    %368 = vector.load %arg11[%c59, %c0_308, %c0_309] : memref<64x32x128xbf16, #tpu.memory_space<vmem>>, vector<1x32x128xbf16>
    %369 = vector.shape_cast %368 : vector<1x32x128xbf16> to vector<32x128xbf16>
    %cst_310 = arith.constant dense<0.000000e+00> : vector<2x128xf32>
    %370 = tpu.matmul %367, %369, %cst_310 {dimension_numbers = #tpu.dot_dimension_numbers<[1], [0], [0], [1], [0, 0, 1, 1], [], []>} : vector<2x32xbf16>, vector<32x128xbf16>, vector<2x128xf32> -> vector<2x128xf32>
    %371 = arith.addf %366, %370 : vector<2x128xf32>
    %c120 = arith.constant 120 : index
    %c0_311 = arith.constant 0 : index
    %372 = vector.load %arg19[%c120, %c0_311] : memref<128x32xbf16, #tpu.memory_space<vmem>>, vector<2x32xbf16>
    %c60_312 = arith.constant 60 : index
    %c0_313 = arith.constant 0 : index
    %c0_314 = arith.constant 0 : index
    %373 = vector.load %arg11[%c60_312, %c0_313, %c0_314] : memref<64x32x128xbf16, #tpu.memory_space<vmem>>, vector<1x32x128xbf16>
    %374 = vector.shape_cast %373 : vector<1x32x128xbf16> to vector<32x128xbf16>
    %cst_315 = arith.constant dense<0.000000e+00> : vector<2x128xf32>
    %375 = tpu.matmul %372, %374, %cst_315 {dimension_numbers = #tpu.dot_dimension_numbers<[1], [0], [0], [1], [0, 0, 1, 1], [], []>} : vector<2x32xbf16>, vector<32x128xbf16>, vector<2x128xf32> -> vector<2x128xf32>
    %376 = arith.addf %371, %375 : vector<2x128xf32>
    %c122 = arith.constant 122 : index
    %c0_316 = arith.constant 0 : index
    %377 = vector.load %arg19[%c122, %c0_316] : memref<128x32xbf16, #tpu.memory_space<vmem>>, vector<2x32xbf16>
    %c61 = arith.constant 61 : index
    %c0_317 = arith.constant 0 : index
    %c0_318 = arith.constant 0 : index
    %378 = vector.load %arg11[%c61, %c0_317, %c0_318] : memref<64x32x128xbf16, #tpu.memory_space<vmem>>, vector<1x32x128xbf16>
    %379 = vector.shape_cast %378 : vector<1x32x128xbf16> to vector<32x128xbf16>
    %cst_319 = arith.constant dense<0.000000e+00> : vector<2x128xf32>
    %380 = tpu.matmul %377, %379, %cst_319 {dimension_numbers = #tpu.dot_dimension_numbers<[1], [0], [0], [1], [0, 0, 1, 1], [], []>} : vector<2x32xbf16>, vector<32x128xbf16>, vector<2x128xf32> -> vector<2x128xf32>
    %381 = arith.addf %376, %380 : vector<2x128xf32>
    %c124 = arith.constant 124 : index
    %c0_320 = arith.constant 0 : index
    %382 = vector.load %arg19[%c124, %c0_320] : memref<128x32xbf16, #tpu.memory_space<vmem>>, vector<2x32xbf16>
    %c62_321 = arith.constant 62 : index
    %c0_322 = arith.constant 0 : index
    %c0_323 = arith.constant 0 : index
    %383 = vector.load %arg11[%c62_321, %c0_322, %c0_323] : memref<64x32x128xbf16, #tpu.memory_space<vmem>>, vector<1x32x128xbf16>
    %384 = vector.shape_cast %383 : vector<1x32x128xbf16> to vector<32x128xbf16>
    %cst_324 = arith.constant dense<0.000000e+00> : vector<2x128xf32>
    %385 = tpu.matmul %382, %384, %cst_324 {dimension_numbers = #tpu.dot_dimension_numbers<[1], [0], [0], [1], [0, 0, 1, 1], [], []>} : vector<2x32xbf16>, vector<32x128xbf16>, vector<2x128xf32> -> vector<2x128xf32>
    %386 = arith.addf %381, %385 : vector<2x128xf32>
    %c126 = arith.constant 126 : index
    %c0_325 = arith.constant 0 : index
    %387 = vector.load %arg19[%c126, %c0_325] : memref<128x32xbf16, #tpu.memory_space<vmem>>, vector<2x32xbf16>
    %c63 = arith.constant 63 : index
    %c0_326 = arith.constant 0 : index
    %c0_327 = arith.constant 0 : index
    %388 = vector.load %arg11[%c63, %c0_326, %c0_327] : memref<64x32x128xbf16, #tpu.memory_space<vmem>>, vector<1x32x128xbf16>
    %389 = vector.shape_cast %388 : vector<1x32x128xbf16> to vector<32x128xbf16>
    %cst_328 = arith.constant dense<0.000000e+00> : vector<2x128xf32>
    %390 = tpu.matmul %387, %389, %cst_328 {dimension_numbers = #tpu.dot_dimension_numbers<[1], [0], [0], [1], [0, 0, 1, 1], [], []>} : vector<2x32xbf16>, vector<32x128xbf16>, vector<2x128xf32> -> vector<2x128xf32>
    %391 = arith.addf %386, %390 : vector<2x128xf32>
    %c0_329 = arith.constant 0 : index
    %c0_330 = arith.constant 0 : index
    %392 = vector.load %arg12[%c0_329, %c0_330] : memref<1x128xf32, #tpu.memory_space<vmem>>, vector<1x128xf32>
    %393 = vector.broadcast %392 : vector<1x128xf32> to vector<2x128xf32>
    %394 = arith.addf %391, %393 : vector<2x128xf32>
    %cst_331 = arith.constant dense<0.000000e+00> : vector<128xf32>
    %395 = vector.multi_reduction <add>, %394, %cst_331 [0] : vector<2x128xf32> to vector<128xf32>
    %396 = vector.shape_cast %395 : vector<128xf32> to vector<1x128xf32>
    %cst_332 = arith.constant 2.000000e+00 : f32
    %397 = vector.broadcast %cst_332 : f32 to vector<1x128xf32>
    %398 = arith.divf %396, %397 : vector<1x128xf32>
    %399 = vector.broadcast %398 : vector<1x128xf32> to vector<2x128xf32>
    %400 = arith.subf %394, %399 : vector<2x128xf32>
    %401 = arith.mulf %400, %400 : vector<2x128xf32>
    %cst_333 = arith.constant dense<0.000000e+00> : vector<128xf32>
    %402 = vector.multi_reduction <add>, %401, %cst_333 [0] : vector<2x128xf32> to vector<128xf32>
    %403 = vector.shape_cast %402 : vector<128xf32> to vector<1x128xf32>
    %cst_334 = arith.constant 2.000000e+00 : f32
    %404 = vector.broadcast %cst_334 : f32 to vector<1x128xf32>
    %405 = arith.divf %403, %404 : vector<1x128xf32>
    %cst_335 = arith.constant 9.99999974E-6 : f32
    %406 = vector.broadcast %cst_335 : f32 to vector<1x128xf32>
    %407 = arith.addf %405, %406 : vector<1x128xf32>
    %408 = math.rsqrt %407 : vector<1x128xf32>
    %409 = vector.broadcast %408 : vector<1x128xf32> to vector<2x128xf32>
    %410 = arith.mulf %400, %409 : vector<2x128xf32>
    %c0_336 = arith.constant 0 : index
    %c0_337 = arith.constant 0 : index
    %411 = vector.load %arg13[%c0_336, %c0_337] : memref<1x128xf32, #tpu.memory_space<vmem>>, vector<1x128xf32>
    %412 = vector.broadcast %411 : vector<1x128xf32> to vector<2x128xf32>
    %413 = arith.mulf %410, %412 : vector<2x128xf32>
    %c0_338 = arith.constant 0 : index
    %c0_339 = arith.constant 0 : index
    %414 = vector.load %arg14[%c0_338, %c0_339] : memref<1x128xf32, #tpu.memory_space<vmem>>, vector<1x128xf32>
    %415 = vector.broadcast %414 : vector<1x128xf32> to vector<2x128xf32>
    %416 = arith.addf %413, %415 : vector<2x128xf32>
    %cst_340 = arith.constant 0.000000e+00 : f32
    %417 = vector.broadcast %cst_340 : f32 to vector<2x128xf32>
    %418 = arith.maximumf %416, %417 : vector<2x128xf32>
    %419 = arith.truncf %418 : vector<2x128xf32> to vector<2x128xbf16>
    %c0_341 = arith.constant 0 : index
    %c0_342 = arith.constant 0 : index
    %420 = vector.load %arg15[%c0_341, %c0_342] : memref<128x128xbf16, #tpu.memory_space<vmem>>, vector<128x128xbf16>
    %cst_343 = arith.constant dense<0.000000e+00> : vector<2x128xf32>
    %421 = tpu.matmul %419, %420, %cst_343 {dimension_numbers = #tpu.dot_dimension_numbers<[1], [0], [0], [1], [0, 0, 1, 1], [], []>} : vector<2x128xbf16>, vector<128x128xbf16>, vector<2x128xf32> -> vector<2x128xf32>
    %c0_344 = arith.constant 0 : index
    %c0_345 = arith.constant 0 : index
    %422 = vector.load %arg16[%c0_344, %c0_345] : memref<1x128xf32, #tpu.memory_space<vmem>>, vector<1x128xf32>
    %423 = vector.broadcast %422 : vector<1x128xf32> to vector<2x128xf32>
    %424 = arith.addf %421, %423 : vector<2x128xf32>
    %c0_346 = arith.constant 0 : index
    %c0_347 = arith.constant 0 : index
    %425 = vector.load %arg18[%c0_346, %c0_347] : memref<2x128xf32, #tpu.memory_space<vmem>>, vector<2x128xf32>
    tpu.vector_store %arg18[%c0_346, %c0_347], %424 {strides = array<i32>} : memref<2x128xf32, #tpu.memory_space<vmem>>, vector<2x128xf32>,
    return
  }
}

</mosaic_0001>

<bundles_post_ra>
// kernel: netwrapper_forward.1
= control target key start
LH: loop header
LB: loop body
LE: loop exit
PB: predicated region body
PF: predicated region fallthrough
CT: control target
= control target key end

     0   :  { %s7650_s0 = inlined_call_operand.vmem [shape: f32[128,3], index: 0, kind: input, shape index: {}]   ;;  %s7651_s1 = inlined_call_operand.vmem [shape: f32[3,16], index: 1, kind: input, shape index: {}]   ;;  %s7652_s2 = inlined_call_operand.vmem [shape: f32[1,16], index: 2, kind: input, shape index: {}]   ;;  %s7653_s3 = inlined_call_operand.vmem [shape: bf16[16,32], index: 3, kind: input, shape index: {}]   ;;  %s7654_s4 = inlined_call_operand.vmem [shape: f32[1,32], index: 4, kind: input, shape index: {}]   ;;  %s7655_s5 = inlined_call_operand.vmem [shape: bf16[32,128], index: 5, kind: input, shape index: {}]   ;;  %s7656_s6 = inlined_call_operand.vmem [shape: f32[1,128], index: 6, kind: input, shape index: {}]   ;;  %s7657_s7 = inlined_call_operand.vmem [shape: f32[1,128], index: 7, kind: input, shape index: {}]   ;;  %s7658_s8 = inlined_call_operand.vmem [shape: f32[1,128], index: 8, kind: input, shape index: {}]   ;;  %s7659_s9 = inlined_call_operand.vmem [shape: bf16[128,128], index: 9, kind: input, shape index: {}]   ;;  %s7660_s10 = inlined_call_operand.vmem [shape: f32[1,128], index: 10, kind: input, shape index: {}]   ;;  %s7661_s11 = inlined_call_operand.hbm [shape: bf16[64,32,128], index: 11, kind: input, shape index: {}]   ;;  %s7662_s12 = inlined_call_operand.vmem [shape: f32[1,128], index: 12, kind: input, shape index: {}]   ;;  %s7663_s13 = inlined_call_operand.vmem [shape: f32[1,128], index: 13, kind: input, shape index: {}]   ;;  %s7664_s14 = inlined_call_operand.vmem [shape: f32[1,128], index: 14, kind: input, shape index: {}]   ;;  %s7665_s15 = inlined_call_operand.vmem [shape: bf16[128,128], index: 15, kind: input, shape index: {}]   ;;  %s7666_s16 = inlined_call_operand.vmem [shape: f32[1,128], index: 16, kind: input, shape index: {}]   ;;  %s7667_s17 = inlined_call_operand.vmem [shape: f32[128,128], index: 17, kind: output, shape index: {0}]   ;;  %s7668_s18 = inlined_call_operand.hbm [shape: f32[2,128], index: 18, kind: output, shape index: {1}]  }
   0x1   :  { %7671 = sst [smem:[#allocation9_spill]] %s7650_s0 }
   0x2   :  { %7672 = sst [smem:[#allocation10_spill]] %s7651_s1 }
   0x3   :  { %7673 = sst [smem:[#allocation11_spill]] %s7652_s2 }
   0x4   :  { %24 = vsyncpa [#allocation4], 0 }
   0x5   :  { %25 = vsyncpa [#allocation5], 0  ;;  %s6672_s27 = smov [#allocation3]   ;;  %s6624_s0 = scalar_lea.hbm %s7661_s11, 16384 }
   0x6   :  { %s53_s28 = sshll.u32 %s6672_s27, 4  ;;  %p6625_p0 = scmp.ne.s32.totalorder %s7661_s11, %s6624_s0  ;;  %s54_s28 = int_to_ptr.vmem [resolvable:$true] %s53_s28 }
   0x7   :  { %p6628_p1 = scmp.lt.u32.totalorder %s6624_s0, %s7661_s11 }
   0x9   :  { %p6630_p2 = pnand %p6628_p1, %p6625_p0 }
   0xb   :  { %6633 = shalt.err (!%p6630_p2)
}
   0xc   :  { %s6634_s22 = scalar_lea.vmem %s54_s28, 16384  ;;  %p6639_p4 = scmp.lt.s32.totalorder %s54_s28, %s54_s28 }
   0xd   :  { %p6635_p3 = scmp.ne.s32.totalorder %s54_s28, %s6634_s22  ;;  %p6640_p5 = scmp.lt.s32.totalorder %s6634_s22, %s6634_s22 }
   0xf   :  { %p6641_p6 = por %p6640_p5, %p6639_p4 }
  0x11   :  { %p6642_p7 = pnand %p6641_p6, %p6635_p3 }
  0x13   :  { %6645 = shalt.err (!%p6642_p7)
}
  0x14   :  { %s6673_s2 = smov 64   ;;  %s6674_s23 = smov 4  }
  0x15   :  { %59 = dma.hbm_to_vmem [thread:$0]  %s7661_s11, 16384, %s54_s28, [#allocation4], %s6673_s2, %s6673_s2, %s6674_s23  }
  0x16   :  { %6668 = dma.done.wait [#allocation4], 16384  }
  0x17   :  { %6669 = vsyncadd [#allocation4], 4294950912  ;;  %v6675_v0 = vmov 2   ;;  %v6676_v1 = vmov 1   ;;  %s7674_s29 = sld [smem:[#allocation9_spill]]  ;;  %v6677_v7 = vmov 0  }
  0x18   :  { %6454 = vset.pattern.permute.xlu0 %v6675_v0  ;;  %6450 = vset.pattern.permute.xlu1 %v6676_v1  ;;  %v6473_v14 = vld [vmem:[%s7653_s3] sm:$0xff]   ;;  %s7675_s19 = sld [smem:[#allocation10_spill]]  ;;  %s7676_s2 = sld [smem:[#allocation11_spill]]  ;;  %vm455_vm0 = vcmask 130048   ;;  %vm585_vm1 = vcmask 261120   ;;  %vm6679_vm2 = vmmov 0  }
  0x19   :  { %5823 = vmatprep.subr.bf16.mxu0 %v6473_v14  ;;  %vm5175_vm3 = vcmask 1041408  }
  0x1a   :  { %5824 = vmatpush3.bf16.msra.mxu0 %v6473_v14 }
  0x1d   :  { %v75_v2 = vld [vmem:[%s7674_s29 + $0x8] sm:$0xff]  ;;  %v74_v3 = vld [vmem:[%s7674_s29] sm:$0xff]  ;;  %v81_v5 = vld [vmem:[%s7674_s29 + $0x38] sm:$0xff] }
  0x1e   :  { %298 = vperm.xlu0 %6454, %v75_v2   ;;  %193 = vperm.xlu1 %6450, %v74_v3   ;;  %v78_v4 = vld [vmem:[%s7674_s29 + $0x20] sm:$0xff]  ;;  %v77_v6 = vld [vmem:[%s7674_s29 + $0x18] sm:$0xff]  ;;  %v83_v8 = vld [vmem:[%s7674_s29 + $0x48] sm:$0xff] }
  0x1f   :  { %v76_v9 = vld [vmem:[%s7674_s29 + $0x10] sm:$0xff]  ;;  %v79_v10 = vld [vmem:[%s7674_s29 + $0x28] sm:$0xff]  ;;  %v86_v12 = vld [vmem:[%s7674_s29 + $0x60] sm:$0xff] }
  0x20   :  { %v84_v11 = vld [vmem:[%s7674_s29 + $0x50] sm:$0xff]  ;;  %v87_v15 = vld [vmem:[%s7674_s29 + $0x68] sm:$0xff]  ;;  %v82_v16 = vld [vmem:[%s7674_s29 + $0x40] sm:$0xff] }
  0x21   :  { %v80_v13 = vld [vmem:[%s7674_s29 + $0x30] sm:$0xff]  ;;  %v89_v18 = vld [vmem:[%s7674_s29 + $0x78] sm:$0xff]  ;;  %v6867_v28 = vld [vmem:[%s7675_s19 + $0x1] ss:$0 sm:$0xff] }
  0x22   :  { %310 = vperm.xlu0 %6454, %v78_v4   ;;  %197 = vperm.xlu1 %6450, %v75_v2   ;;  %v88_v17 = vld [vmem:[%s7674_s29 + $0x70] sm:$0xff]  ;;  %v85_v19 = vld [vmem:[%s7674_s29 + $0x58] sm:$0xff]  ;;  %v6872_v29 = vld [vmem:[%s7675_s19 + $0x2] ss:$0 sm:$0xff] }
  0x23   :  { %v6877_v30 = vld [vmem:[%s7675_s19] ss:$0 sm:$0xff]  ;;  %s6680_s19 = smov [#allocation6]  }
  0x24   :  { %v6888_v43 = vld [vmem:[%s7676_s2] ss:$0 sm:$0xff]  ;;  %s5336_s11 = sshll.u32 %s6680_s19, 4  ;;  %s5337_s11 = int_to_ptr.vmem [resolvable:$true] %s5336_s11 }
  0x25   :  { %p6651_p9 = scmp.lt.s32.totalorder %s5337_s11, %s5337_s11 }
  0x26   :  { %322 = vperm.xlu0 %6454, %v81_v5   ;;  %6451 = vset.pattern.permute.xlu1 %v6677_v7 }
  0x27   :  { %108 = vperm.xlu1 %6451, %v77_v6  }
  0x2a   :  { %330 = vperm.xlu0 %6454, %v83_v8  }
  0x2b   :  { %6452 = vset.pattern.permute.xlu1 %v6676_v1 }
  0x2c   :  { %205 = vperm.xlu1 %6452, %v77_v6  }
  0x2e   :  { %6465 = vset.pattern.permute.xlu0 %v6677_v7 }
  0x2f   :  { %93 = vperm.xlu0 %6465, %v74_v3  }
  0x30   :  { %6453 = vset.pattern.permute.xlu1 %v6675_v0 }
  0x31   :  { %294 = vperm.xlu1 %6453, %v74_v3  }
  0x33   :  { %98 = vperm.xlu0 %6465, %v75_v2  }
  0x35   :  { %302 = vperm.xlu1 %6453, %v76_v9  }
  0x37   :  { %103 = vperm.xlu0 %6465, %v76_v9  }
  0x39   :  { %306 = vperm.xlu1 %6453, %v77_v6  }
  0x3b   :  { %113 = vperm.xlu0 %6465, %v78_v4  }
  0x3d   :  { %6455 = vset.pattern.permute.xlu1 %v6677_v7 }
  0x3e   :  { %118 = vperm.xlu1 %6455, %v79_v10  }
  0x3f   :  { %138 = vperm.xlu0 %6465, %v83_v8  }
  0x42   :  { %6456 = vset.pattern.permute.xlu1 %v6676_v1 }
  0x43   :  { %143 = vperm.xlu0 %6465, %v84_v11   ;;  %209 = vperm.xlu1 %6456, %v78_v4  }
  0x47   :  { %153 = vperm.xlu0 %6465, %v86_v12   ;;  %6457 = vset.pattern.permute.xlu1 %v6677_v7 }
  0x48   :  { %123 = vperm.xlu1 %6457, %v80_v13  }
  0x4b   :  { %6466 = vset.pattern.permute.xlu0 %v6676_v1 }
  0x4c   :  { %201 = vperm.xlu0 %6466, %v76_v9   ;;  %128 = vperm.xlu1 %6457, %v81_v5  }
  0x50   :  { %213 = vperm.xlu0 %6466, %v79_v10   ;;  %6458 = vset.pattern.permute.xlu1 %v6676_v1 }
  0x51   :  { %221 = vperm.xlu1 %6458, %v81_v5  }
  0x54   :  { %217 = vperm.xlu0 %6466, %v80_v13  }
  0x55   :  { %6459 = vset.pattern.permute.xlu1 %v6675_v0 }
  0x56   :  { %314 = vperm.xlu1 %6459, %v79_v10  }
  0x58   :  { %233 = vperm.xlu0 %6466, %v84_v11  }
  0x5a   :  { %318 = vperm.xlu1 %6459, %v80_v13  }
  0x5c   :  { %245 = vperm.xlu0 %6466, %v87_v15  }
  0x5e   :  { %6460 = vset.pattern.permute.xlu1 %v6677_v7 }
  0x5f   :  { %133 = vperm.xlu1 %6460, %v82_v16  }
  0x60   :  { %249 = vperm.xlu0 %6466, %v88_v17  }
  0x63   :  { %6461 = vset.pattern.permute.xlu1 %v6676_v1 }
  0x64   :  { %225 = vperm.xlu1 %6461, %v82_v16   ;;  %6471 = vset.pattern.permute.xlu0 %v6675_v0 }
  0x65   :  { %342 = vperm.xlu0 %6471, %v86_v12  }
  0x68   :  { %229 = vperm.xlu1 %6461, %v83_v8  }
  0x69   :  { %354 = vperm.xlu0 %6471, %v89_v18  }
  0x6c   :  { %6462 = vset.pattern.permute.xlu1 %v6677_v7 }
  0x6d   :  { %148 = vperm.xlu1 %6462, %v85_v19  }
  0x71   :  { %6463 = vset.pattern.permute.xlu1 %v6676_v1 }
  0x72   :  { %237 = vperm.xlu1 %6463, %v85_v19  }
  0x76   :  { %6464 = vset.pattern.permute.xlu1 %v6675_v0 }
  0x77   :  { %326 = vperm.xlu1 %6464, %v82_v16  }
  0x7b   :  { %334 = vperm.xlu1 %6464, %v84_v11  }
  0x7f   :  { %338 = vperm.xlu1 %6464, %v85_v19  }
  0x83   :  { %6467 = vset.pattern.permute.xlu1 %v6677_v7 }
  0x84   :  { %158 = vperm.xlu1 %6467, %v87_v15  }
  0x88   :  { %6468 = vset.pattern.permute.xlu1 %v6676_v1 }
  0x89   :  { %241 = vperm.xlu1 %6468, %v86_v12  }
  0x8d   :  { %6469 = vset.pattern.permute.xlu1 %v6677_v7 }
  0x8e   :  { %163 = vperm.xlu1 %6469, %v88_v17  }
  0x92   :  { %168 = vperm.xlu1 %6469, %v89_v18  }
  0x96   :  { %6470 = vset.pattern.permute.xlu1 %v6676_v1 }
  0x97   :  { %253 = vperm.xlu1 %6470, %v89_v18  }
  0x9b   :  { %6472 = vset.pattern.permute.xlu1 %v6675_v0 }
  0x9c   :  { %346 = vperm.xlu1 %6472, %v87_v15  }
  0x9d   :  { %v194_v20 = vpop.permute.xlu1 %193  ;;  %v299_v21 = vpop.permute.xlu0 %298 }
  0x9e   :  { %v260_v32 = vmul.f32 %v6867_v28, %v194_v20  ;;  %v362_v38 = vmul.f32 %v6872_v29, %v299_v21 }
  0xa0   :  { %350 = vperm.xlu1 %6472, %v88_v17  }
  0xa1   :  { %v198_v22 = vpop.permute.xlu1 %197  ;;  %v311_v23 = vpop.permute.xlu0 %310 }
  0xa2   :  { %v261_v39 = vmul.f32 %v6867_v28, %v198_v22  ;;  %v365_v10 = vmul.f32 %v6872_v29, %v311_v23 }
  0xa5   :  { %v323_v24 = vpop.permute.xlu0 %322 }
  0xa6   :  { %v109_v25 = vpop.permute.xlu1 %108  ;;  %v368_v19 = vmul.f32 %v6872_v29, %v323_v24 }
  0xa7   :  { %v178_v61 = vmul.f32 %v6877_v30, %v109_v25 }
  0xa9   :  { %v6862_v26 = vpop.permute.xlu0 %330 }
  0xab   :  { %v206_v27 = vpop.permute.xlu1 %205 }
  0xac   :  { %v263_v58 = vmul.f32 %v6867_v28, %v206_v27 }
  0xae   :  { %v94_v31 = vpop.permute.xlu0 %93  ;;  %v279_v63 = vadd.f32 %v263_v58, %v178_v61 }
  0xaf   :  { %v175_v33 = vmul.f32 %v6877_v30, %v94_v31 }
  0xb0   :  { %v295_v34 = vpop.permute.xlu1 %294 }
  0xb1   :  { %v276_v35 = vadd.f32 %v260_v32, %v175_v33  ;;  %v361_v36 = vmul.f32 %v6872_v29, %v295_v34 }
  0xb2   :  { %v99_v37 = vpop.permute.xlu0 %98 }
  0xb3   :  { %v377_v40 = vadd.f32 %v361_v36, %v276_v35  ;;  %v176_v41 = vmul.f32 %v6877_v30, %v99_v37 }
  0xb4   :  { %v303_v42 = vpop.permute.xlu1 %302 }
  0xb5   :  { %v277_v44 = vadd.f32 %v261_v39, %v176_v41  ;;  %v400_v47 = vadd.f32 %v6888_v43, %v377_v40  ;;  %v363_v7 = vmul.f32 %v6872_v29, %v303_v42 }
  0xb6   :  { %v104_v45 = vpop.permute.xlu0 %103 }
  0xb7   :  { %v378_v46 = vadd.f32 %v362_v38, %v277_v44  ;;  %v416_v51 = vmax.f32 %v400_v47, 0.0  ;;  %v177_v0 = vmul.f32 %v6877_v30, %v104_v45 }
  0xb8   :  { %v307_v48 = vpop.permute.xlu1 %306 }
  0xb9   :  { %v401_v49 = vadd.f32 %v6888_v43, %v378_v46  ;;  %v364_v62 = vmul.f32 %v6872_v29, %v307_v48 }
  0xba   :  { %v114_v50 = vpop.permute.xlu0 %113 }
  0xbb   :  { %v417_v52 = vmax.f32 %v401_v49, 0.0  ;;  %v380_v3 = vadd.f32 %v364_v62, %v279_v63  ;;  %v179_v4 = vmul.f32 %v6877_v30, %v114_v50 }
  0xbd   :  { %v119_v53 = vpop.permute.xlu1 %118  ;;  %v432_v54 = vpack.c.bf16 %v417_v52, %v416_v51  ;;  %v403_v11 = vadd.f32 %v6888_v43, %v380_v3 }
  0xbe   :  { %v6892_v55 = vpop.permute.xlu0 %138  ;;  %v180_v20 = vmul.f32 %v6877_v30, %v119_v53 }
  0xbf   :  { %5825 = vmatprep.mubr.msk.bf16.mxu0 %vm455_vm0, %v432_v54  ;;  %v419_v22 = vmax.f32 %v403_v11, 0.0  ;;  %v184_v61 = vmul.f32 %v6877_v30, %v6892_v55 }
  0xc2   :  { %v210_v56 = vpop.permute.xlu1 %209  ;;  %v6895_v57 = vpop.permute.xlu0 %143 }
  0xc3   :  { %v264_v5 = vmul.f32 %v6867_v28, %v210_v56 }
  0xc5   :  { %v280_v12 = vadd.f32 %v264_v5, %v179_v4 }
  0xc6   :  { %v6898_v59 = vpop.permute.xlu0 %153 }
  0xc7   :  { %v124_v60 = vpop.permute.xlu1 %123  ;;  %v381_v23 = vadd.f32 %v365_v10, %v280_v12 }
  0xc8   :  { %v181_v37 = vmul.f32 %v6877_v30, %v124_v60 }
  0xc9   :  { %v404_v36 = vadd.f32 %v6888_v43, %v381_v23 }
  0xcb   :  { %v202_v1 = vpop.permute.xlu0 %201  ;;  %v129_v2 = vpop.permute.xlu1 %128  ;;  %v420_v44 = vmax.f32 %v404_v36, 0.0 }
  0xcc   :  { %v262_v6 = vmul.f32 %v6867_v28, %v202_v1  ;;  %v182_v17 = vmul.f32 %v6877_v30, %v129_v2 }
  0xce   :  { %v278_v8 = vadd.f32 %v262_v6, %v177_v0  ;;  %v370_v0 = vmul.f32 %v6872_v29, %v6862_v26  ;;  %v185_v6 = vmul.f32 %v6877_v30, %v6895_v57 }
  0xcf   :  { %v214_v9 = vpop.permute.xlu0 %213 }
  0xd0   :  { %v379_v13 = vadd.f32 %v363_v7, %v278_v8  ;;  %v222_v14 = vpop.permute.xlu1 %221  ;;  %v265_v18 = vmul.f32 %v6867_v28, %v214_v9 }
  0xd1   :  { %v267_v15 = vmul.f32 %v6867_v28, %v222_v14 }
  0xd2   :  { %v402_v16 = vadd.f32 %v6888_v43, %v379_v13  ;;  %v281_v32 = vadd.f32 %v265_v18, %v180_v20 }
  0xd3   :  { %v218_v21 = vpop.permute.xlu0 %217  ;;  %v283_v27 = vadd.f32 %v267_v15, %v182_v17 }
  0xd4   :  { %v418_v25 = vmax.f32 %v402_v16, 0.0  ;;  %v266_v33 = vmul.f32 %v6867_v28, %v218_v21 }
  0xd5   :  { %v315_v31 = vpop.permute.xlu1 %314  ;;  %v384_v38 = vadd.f32 %v368_v19, %v283_v27 }
  0xd6   :  { %v366_v34 = vmul.f32 %v6872_v29, %v315_v31  ;;  %v433_v35 = vpack.c.bf16 %v419_v22, %v418_v25  ;;  %v282_v40 = vadd.f32 %v266_v33, %v181_v37 }
  0xd7   :  { %v407_v45 = vadd.f32 %v6888_v43, %v384_v38  ;;  %v234_v2 = vpop.permute.xlu0 %233 }
  0xd8   :  { %v382_v24 = vadd.f32 %v366_v34, %v281_v32  ;;  %5826 = vmatmul.mubr.msk.bf16.vlgmr.msra.gmra.mrb[0].mxu0 %vm455_vm0, %v433_v35  ;;  %v270_v8 = vmul.f32 %v6867_v28, %v234_v2 }
  0xd9   :  { %v319_v39 = vpop.permute.xlu1 %318  ;;  %v423_v51 = vmax.f32 %v407_v45, 0.0 }
  0xda   :  { %v405_v41 = vadd.f32 %v6888_v43, %v382_v24  ;;  %v367_v42 = vmul.f32 %v6872_v29, %v319_v39  ;;  %v286_v26 = vadd.f32 %v270_v8, %v185_v6 }
  0xdb   :  { %v246_v35 = vpop.permute.xlu0 %245 }
  0xdc   :  { %v421_v46 = vmax.f32 %v405_v41, 0.0  ;;  %v383_v47 = vadd.f32 %v367_v42, %v282_v40  ;;  %v187_v40 = vmul.f32 %v6877_v30, %v6898_v59 }
  0xde   :  { %v434_v48 = vpack.c.bf16 %v421_v46, %v420_v44  ;;  %v406_v49 = vadd.f32 %v6888_v43, %v383_v47  ;;  %v134_v50 = vpop.permute.xlu1 %133  ;;  %v273_v47 = vmul.f32 %v6867_v28, %v246_v35 }
  0xdf   :  { %v183_v3 = vmul.f32 %v6877_v30, %v134_v50  ;;  %v250_v37 = vpop.permute.xlu0 %249 }
  0xe0   :  { %v422_v52 = vmax.f32 %v406_v49, 0.0  ;;  %5829 = vmatprep.mubr.msk.bf16.mxu0 %vm455_vm0, %v434_v48 }
  0xe2   :  { %v435_v53 = vpack.c.bf16 %v423_v51, %v422_v52 }
  0xe3   :  { %v226_v54 = vpop.permute.xlu1 %225 }
  0xe4   :  { %5830 = vmatmul.mubr.msk.bf16.gmra.mrb[4].mxu0 %vm455_vm0, %v435_v53  ;;  %v268_v1 = vmul.f32 %v6867_v28, %v226_v54  ;;  %v343_v39 = vpop.permute.xlu0 %342 }
  0xe5   :  { %v373_v42 = vmul.f32 %v6872_v29, %v343_v39 }
  0xe6   :  { %v284_v7 = vadd.f32 %v268_v1, %v183_v3 }
  0xe7   :  { %v230_v56 = vpop.permute.xlu1 %229 }
  0xe8   :  { %v269_v60 = vmul.f32 %v6867_v28, %v230_v56  ;;  %v355_v46 = vpop.permute.xlu0 %354 }
  0xe9   :  { %v376_v52 = vmul.f32 %v6872_v29, %v355_v46 }
  0xea   :  { %v285_v62 = vadd.f32 %v269_v60, %v184_v61 }
  0xec   :  { %v149_v58 = vpop.permute.xlu1 %148  ;;  %v386_v4 = vadd.f32 %v370_v0, %v285_v62 }
  0xed   :  { %v186_v16 = vmul.f32 %v6877_v30, %v149_v58  ;;  %v274_v58 = vmul.f32 %v6867_v28, %v250_v37 }
  0xee   :  { %v409_v9 = vadd.f32 %v6888_v43, %v386_v4 }
  0xf0   :  { %v425_v15 = vmax.f32 %v409_v9, 0.0  ;;  %v6474_v9 = vld [vmem:[%s7655_s5] sm:$0xff]  }
  0xf1   :  { %v238_v63 = vpop.permute.xlu1 %237  ;;  %5841 = vmatprep.subr.bf16.mxu1 %v6474_v9 }
  0xf2   :  { %v271_v12 = vmul.f32 %v6867_v28, %v238_v63  ;;  %5842 = vmatpush3.bf16.msra.mxu1 %v6474_v9 }
  0xf4   :  { %v287_v19 = vadd.f32 %v271_v12, %v186_v16 }
  0xf6   :  { %v327_v5 = vpop.permute.xlu1 %326 }
  0xf7   :  { %v369_v55 = vmul.f32 %v6872_v29, %v327_v5 }
  0xf9   :  { %v385_v10 = vadd.f32 %v369_v55, %v284_v7 }
  0xfa   :  { %v335_v11 = vpop.permute.xlu1 %334 }
  0xfb   :  { %v408_v13 = vadd.f32 %v6888_v43, %v385_v10  ;;  %v371_v14 = vmul.f32 %v6872_v29, %v335_v11  ;;  %v5351_v10 = vld [vmem:[%s7654_s4] ss:$0 sm:$0xff] }
  0xfd   :  { %v424_v57 = vmax.f32 %v408_v13, 0.0  ;;  %v387_v17 = vadd.f32 %v371_v14, %v286_v26 }
  0xfe   :  { %v339_v18 = vpop.permute.xlu1 %338 }
  0xff   :  { %v436_v20 = vpack.c.bf16 %v425_v15, %v424_v57  ;;  %v372_v21 = vmul.f32 %v6872_v29, %v339_v18  ;;  %v410_v22 = vadd.f32 %v6888_v43, %v387_v17 }
 0x101   :  { %v388_v23 = vadd.f32 %v372_v21, %v287_v19  ;;  %5833 = vmatprep.mubr.msk.bf16.mxu0 %vm455_vm0, %v436_v20  ;;  %v426_v31 = vmax.f32 %v410_v22, 0.0 }
 0x103   :  { %v411_v25 = vadd.f32 %v6888_v43, %v388_v23  ;;  %v159_v27 = vpop.permute.xlu1 %158 }
 0x104   :  { %v188_v48 = vmul.f32 %v6877_v30, %v159_v27 }
 0x105   :  { %v427_v32 = vmax.f32 %v411_v25, 0.0 }
 0x106   :  { %v289_v54 = vadd.f32 %v273_v47, %v188_v48 }
 0x107   :  { %v437_v33 = vpack.c.bf16 %v427_v32, %v426_v31 }
 0x108   :  { %v242_v34 = vpop.permute.xlu1 %241 }
 0x109   :  { %5834 = vmatmul.mubr.msk.bf16.gmra.mrb[8].mxu0 %vm455_vm0, %v437_v33  ;;  %v272_v24 = vmul.f32 %v6867_v28, %v242_v34 }
 0x10b   :  { %v288_v41 = vadd.f32 %v272_v24, %v187_v40 }
 0x10d   :  { %v164_v36 = vpop.permute.xlu1 %163  ;;  %v389_v50 = vadd.f32 %v373_v42, %v288_v41 }
 0x10e   :  { %v189_v59 = vmul.f32 %v6877_v30, %v164_v36 }
 0x10f   :  { %v412_v60 = vadd.f32 %v6888_v43, %v389_v50 }
 0x110   :  { %v290_v0 = vadd.f32 %v274_v58, %v189_v59  ;;  %v6478_v59 = vld [vmem:[%s7659_s9 + $0x10] sm:$0xff]   ;;  %v6480_v58 = vld [vmem:[%s7659_s9 + $0x20] sm:$0xff]  }
 0x111   :  { %v169_v38 = vpop.permute.xlu1 %168  ;;  %v428_v3 = vmax.f32 %v412_v60, 0.0  ;;  %v6481_v60 = vld [vmem:[%s7659_s9 + $0x28] sm:$0xff]  }
 0x112   :  { %v190_v49 = vmul.f32 %v6877_v30, %v169_v38 }
 0x116   :  { %v254_v44 = vpop.permute.xlu1 %253 }
 0x117   :  { %v275_v45 = vmul.f32 %v6867_v28, %v254_v44 }
 0x119   :  { %v291_v51 = vadd.f32 %v275_v45, %v190_v49 }
 0x11b   :  { %v347_v53 = vpop.permute.xlu1 %346  ;;  %v392_v61 = vadd.f32 %v376_v52, %v291_v51 }
 0x11c   :  { %v374_v56 = vmul.f32 %v6872_v29, %v347_v53  ;;  %v6476_v53 = vld [vmem:[%s7659_s9] sm:$0xff]  }
 0x11d   :  { %v415_v4 = vadd.f32 %v6888_v43, %v392_v61  ;;  %5861 = vmatprep.subr.bf16.mxu0 %v6476_v53  ;;  %v7012_v61 = vld [vmem:[%s7656_s6] ss:$0 sm:$0xff] }
 0x11e   :  { %v390_v62 = vadd.f32 %v374_v56, %v289_v54  ;;  %5862 = vmatpush3.bf16.msra.mxu0 %v6476_v53  ;;  %v6477_v54 = vld [vmem:[%s7659_s9 + $0x8] sm:$0xff]   ;;  %v6479_v56 = vld [vmem:[%s7659_s9 + $0x18] sm:$0xff]  }
 0x11f   :  { %v351_v63 = vpop.permute.xlu1 %350  ;;  %v431_v8 = vmax.f32 %v415_v4, 0.0  ;;  %5863 = vmatprep.subr.bf16.mxu0 %v6477_v54 }
 0x120   :  { %v413_v1 = vadd.f32 %v6888_v43, %v390_v62  ;;  %v375_v2 = vmul.f32 %v6872_v29, %v351_v63  ;;  %v6475_v29 = vld [vmem:[%s7655_s5 + $0x8] sm:$0xff]   ;;  %v6482_v62 = vld [vmem:[%s7659_s9 + $0x30] sm:$0xff]  }
 0x121   :  { %5843 = vmatprep.subr.bf16.mxu1 %v6475_v29 }
 0x122   :  { %v429_v5 = vmax.f32 %v413_v1, 0.0  ;;  %v391_v6 = vadd.f32 %v375_v2, %v290_v0  ;;  %5844 = vmatpush3.bf16.msra.mxu1 %v6475_v29  ;;  %5864 = vmatpush3.bf16.msra.mxu0 %v6477_v54  ;;  %v6483_v0 = vld [vmem:[%s7659_s9 + $0x38] sm:$0xff]  }
 0x123   :  { %6425 = vmatprep.subr.bf16.mxu1 %v6476_v53  ;;  %5865 = vmatprep.subr.bf16.mxu0 %v6478_v59 }
 0x124   :  { %v438_v30 = vpack.c.bf16 %v429_v5, %v428_v3  ;;  %v414_v7 = vadd.f32 %v6888_v43, %v391_v6 }
 0x126   :  { %v430_v28 = vmax.f32 %v414_v7, 0.0  ;;  %5837 = vmatprep.mubr.msk.bf16.mxu0 %vm455_vm0, %v438_v30  ;;  %5866 = vmatpush3.bf16.msra.mxu0 %v6478_v59 }
 0x127   :  { %5867 = vmatprep.subr.bf16.mxu0 %v6479_v56 }
 0x128   :  { %v439_v55 = vpack.c.bf16 %v431_v8, %v430_v28 }
 0x12a   :  { %5838 = vmatmul.mubr.msk.bf16.gmra.mrb[12].mxu0 %vm455_vm0, %v439_v55 }
 0x12b   :  { %5868 = vmatpush3.bf16.msra.mxu0 %v6479_v56 }
 0x12c   :  { %5869 = vmatprep.subr.bf16.mxu0 %v6480_v58 }
 0x12f   :  { %5870 = vmatpush3.bf16.msra.mxu0 %v6480_v58 }
 0x130   :  { %5871 = vmatprep.subr.bf16.mxu0 %v6481_v60 }
 0x133   :  { %5872 = vmatpush3.bf16.msra.mxu0 %v6481_v60 }
 0x134   :  { %5873 = vmatprep.subr.bf16.mxu0 %v6482_v62 }
 0x137   :  { %5874 = vmatpush3.bf16.msra.mxu0 %v6482_v62 }
 0x138   :  { %5875 = vmatprep.subr.bf16.mxu0 %v6483_v0 }
 0x13b   :  { %5876 = vmatpush3.bf16.msra.mxu0 %v6483_v0 }
 0x1ab   :  { %v5827_v43 = vpop.f32.mrb[0].mxu0 }
 0x1ac   :  { %v514_v11 = vpop.f32.mrb[1].mxu0  ;;  %v523_v12 = vadd.f32 %v5827_v43, %v5351_v10 }
 0x1ad   :  { %v5828_v26 = vpop.f32.mrb[2].mxu0  ;;  %v515_v15 = vadd.f32 %v5351_v10, %v514_v11 }
 0x1ae   :  { %v526_v13 = vadd.f32 %v5828_v26, %v5351_v10  ;;  %v517_v14 = vpop.f32.mrb[3].mxu0  ;;  %v6678_v26 = vmov 0.0  }
 0x1af   :  { %v518_v16 = vadd.f32 %v5351_v10, %v517_v14  ;;  %5941 = vmatprep.subr.bf16.mxu0 %v6678_v26 }
 0x1b0   :  { %v578_v57 = vpack.c.bf16 %v526_v13, %v523_v12 }
 0x1b1   :  { %v577_v17 = vpack.c.bf16 %v518_v16, %v515_v15 }
 0x1b2   :  { %587 = vst.msk [vmem:[#allocation2 + $0x8] sm:$0xff] %vm585_vm1, %v578_v57 }
 0x1b3   :  { %586 = vst.msk [vmem:[#allocation2] sm:$0xff] %vm585_vm1, %v577_v17  ;;  %5845 = vmatprep.mubr.msk.bf16.mxu1 %vm585_vm1, %v577_v17 }
 0x1b4   :  { %5846 = vmatmul.mubr.msk.bf16.vlgmr.msra.gmra.mrb[0].mxu1 %vm585_vm1, %v578_v57 }
 0x1b5   :  { %6433 = vmatpush3.bf16.msra.mxu1 %v6476_v53 }
 0x1b6   :  { %6426 = vmatprep.subr.bf16.mxu1 %v6477_v54 }
 0x1b7   :  { %v5831_v18 = vpop.f32.mrb[4].mxu0 }
 0x1b8   :  { %v530_v19 = vpop.f32.mrb[5].mxu0  ;;  %v539_v21 = vadd.f32 %v5831_v18, %v5351_v10 }
 0x1b9   :  { %v5832_v20 = vpop.f32.mrb[6].mxu0  ;;  %v531_v25 = vadd.f32 %v5351_v10, %v530_v19  ;;  %6434 = vmatpush3.bf16.msra.mxu1 %v6477_v54 }
 0x1ba   :  { %v542_v22 = vadd.f32 %v5832_v20, %v5351_v10  ;;  %v533_v23 = vpop.f32.mrb[7].mxu0  ;;  %6427 = vmatprep.subr.bf16.mxu1 %v6478_v59 }
 0x1bb   :  { %v534_v27 = vadd.f32 %v5351_v10, %v533_v23 }
 0x1bc   :  { %v580_v31 = vpack.c.bf16 %v542_v22, %v539_v21 }
 0x1bd   :  { %v579_v32 = vpack.c.bf16 %v534_v27, %v531_v25  ;;  %6435 = vmatpush3.bf16.msra.mxu1 %v6478_v59 }
 0x1be   :  { %589 = vst.msk [vmem:[#allocation2 + $0x18] sm:$0xff] %vm585_vm1, %v580_v31  ;;  %6428 = vmatprep.subr.bf16.mxu1 %v6479_v56 }
 0x1bf   :  { %588 = vst.msk [vmem:[#allocation2 + $0x10] sm:$0xff] %vm585_vm1, %v579_v32  ;;  %5849 = vmatprep.mubr.msk.bf16.mxu1 %vm585_vm1, %v579_v32 }
 0x1c0   :  { %5850 = vmatmul.mubr.msk.bf16.gmra.mrb[4].mxu1 %vm585_vm1, %v580_v31 }
 0x1c1   :  { %6436 = vmatpush3.bf16.msra.mxu1 %v6479_v56 }
 0x1c2   :  { %6429 = vmatprep.subr.bf16.mxu1 %v6480_v58 }
 0x1c5   :  { %6437 = vmatpush3.bf16.msra.mxu1 %v6480_v58 }
 0x1c6   :  { %6430 = vmatprep.subr.bf16.mxu1 %v6481_v60 }
 0x1c9   :  { %6438 = vmatpush3.bf16.msra.mxu1 %v6481_v60 }
 0x1ca   :  { %6431 = vmatprep.subr.bf16.mxu1 %v6482_v62 }
 0x1cd   :  { %6439 = vmatpush3.bf16.msra.mxu1 %v6482_v62 }
 0x1ce   :  { %6432 = vmatprep.subr.bf16.mxu1 %v6483_v0 }
 0x1d1   :  { %6440 = vmatpush3.bf16.msra.mxu1 %v6483_v0 }
 0x1d2   :  { %5893 = vmatprep.subr.bf16.mxu1 %v6678_v26 }
 0x1dc   :  { %v5835_v33 = vpop.f32.mrb[8].mxu0 }
 0x1dd   :  { %v546_v34 = vpop.f32.mrb[9].mxu0  ;;  %v555_v36 = vadd.f32 %v5835_v33, %v5351_v10 }
 0x1de   :  { %v5836_v35 = vpop.f32.mrb[10].mxu0  ;;  %v547_v24 = vadd.f32 %v5351_v10, %v546_v34 }
 0x1df   :  { %v558_v37 = vadd.f32 %v5836_v35, %v5351_v10  ;;  %v549_v38 = vpop.f32.mrb[11].mxu0 }
 0x1e0   :  { %v550_v39 = vadd.f32 %v5351_v10, %v549_v38 }
 0x1e1   :  { %v582_v40 = vpack.c.bf16 %v558_v37, %v555_v36 }
 0x1e2   :  { %v581_v41 = vpack.c.bf16 %v550_v39, %v547_v24 }
 0x1e3   :  { %591 = vst.msk [vmem:[#allocation2 + $0x28] sm:$0xff] %vm585_vm1, %v582_v40 }
 0x1e4   :  { %590 = vst.msk [vmem:[#allocation2 + $0x20] sm:$0xff] %vm585_vm1, %v581_v41  ;;  %5853 = vmatprep.mubr.msk.bf16.mxu1 %vm585_vm1, %v581_v41 }
 0x1e5   :  { %5854 = vmatmul.mubr.msk.bf16.gmra.mrb[8].mxu1 %vm585_vm1, %v582_v40 }
 0x1fd   :  { %v5839_v42 = vpop.f32.mrb[12].mxu0 }
 0x1fe   :  { %v562_v44 = vpop.f32.mrb[13].mxu0  ;;  %v571_v46 = vadd.f32 %v5839_v42, %v5351_v10 }
 0x1ff   :  { %v5840_v45 = vpop.f32.mrb[14].mxu0  ;;  %v563_v49 = vadd.f32 %v5351_v10, %v562_v44 }
 0x200   :  { %v574_v47 = vadd.f32 %v5840_v45, %v5351_v10  ;;  %v565_v48 = vpop.f32.mrb[15].mxu0 }
 0x201   :  { %v566_v50 = vadd.f32 %v5351_v10, %v565_v48 }
 0x202   :  { %v584_v51 = vpack.c.bf16 %v574_v47, %v571_v46 }
 0x203   :  { %v583_v52 = vpack.c.bf16 %v566_v50, %v563_v49 }
 0x204   :  { %593 = vst.msk [vmem:[#allocation2 + $0x38] sm:$0xff] %vm585_vm1, %v584_v51 }
 0x205   :  { %592 = vst.msk [vmem:[#allocation2 + $0x30] sm:$0xff] %vm585_vm1, %v583_v52  ;;  %5857 = vmatprep.mubr.msk.bf16.mxu1 %vm585_vm1, %v583_v52 }
 0x206   :  { %5858 = vmatmul.mubr.msk.bf16.gmra.mrb[12].mxu1 %vm585_vm1, %v584_v51 }
 0x287   :  { %v5847_v63 = vpop.f32.mrb[0].mxu1 }
 0x288   :  { %v675_v1 = vpop.f32.mrb[1].mxu1  ;;  %v7024_v5 = vadd.f32 %v5847_v63, %v7012_v61 }
 0x289   :  { %v7021_v2 = vadd.f32 %v7012_v61, %v675_v1  ;;  %v5848_v3 = vpop.f32.mrb[2].mxu1 }
 0x28a   :  { %v678_v4 = vpop.f32.mrb[3].mxu1  ;;  %v7032_v7 = vadd.f32 %v5848_v3, %v7012_v61  ;;  %v763_v55 = vmul.f32 %v7024_v5, %v7024_v5 }
 0x28b   :  { %v7027_v6 = vadd.f32 %v7012_v61, %v678_v4  ;;  %v761_v30 = vmul.f32 %v7021_v2, %v7021_v2 }
 0x28c   :  { %v764_v43 = vmul.f32 %v7032_v7, %v7032_v7 }
 0x28d   :  { %v738_v8 = vadd.f32 %v7027_v6, %v7021_v2  ;;  %v762_v28 = vmul.f32 %v7027_v6, %v7027_v6 }
 0x28f   :  { %v739_v9 = vadd.f32 %v738_v8, %v7024_v5  ;;  %v777_v29 = vadd.f32 %v762_v28, %v761_v30 }
 0x291   :  { %v778_v10 = vadd.f32 %v777_v29, %v763_v55  ;;  %v740_v11 = vadd.f32 %v739_v9, %v7032_v7 }
 0x293   :  { %v5851_v12 = vpop.f32.mrb[4].mxu1  ;;  %v779_v13 = vadd.f32 %v778_v10, %v764_v43 }
 0x294   :  { %v691_v14 = vpop.f32.mrb[5].mxu1  ;;  %v7050_v17 = vadd.f32 %v5851_v12, %v7012_v61 }
 0x295   :  { %v7047_v15 = vadd.f32 %v7012_v61, %v691_v14  ;;  %v5852_v16 = vpop.f32.mrb[6].mxu1 }
 0x296   :  { %v694_v57 = vpop.f32.mrb[7].mxu1  ;;  %v7059_v22 = vadd.f32 %v5852_v16, %v7012_v61  ;;  %v767_v27 = vmul.f32 %v7050_v17, %v7050_v17 }
 0x297   :  { %v741_v18 = vadd.f32 %v740_v11, %v7047_v15  ;;  %v765_v19 = vmul.f32 %v7047_v15, %v7047_v15  ;;  %v7056_v20 = vadd.f32 %v7012_v61, %v694_v57 }
 0x298   :  { %v768_v33 = vmul.f32 %v7059_v22, %v7059_v22 }
 0x299   :  { %v780_v21 = vadd.f32 %v779_v13, %v765_v19  ;;  %v742_v23 = vadd.f32 %v741_v18, %v7056_v20  ;;  %v766_v25 = vmul.f32 %v7056_v20, %v7056_v20 }
 0x29b   :  { %v743_v31 = vadd.f32 %v742_v23, %v7050_v17  ;;  %v781_v32 = vadd.f32 %v780_v21, %v766_v25 }
 0x29d   :  { %v782_v34 = vadd.f32 %v781_v32, %v767_v27  ;;  %v744_v35 = vadd.f32 %v743_v31, %v7059_v22 }
 0x29f   :  { %v783_v36 = vadd.f32 %v782_v34, %v768_v33 }
 0x2b8   :  { %v5855_v37 = vpop.f32.mrb[8].mxu1 }
 0x2b9   :  { %v707_v38 = vpop.f32.mrb[9].mxu1  ;;  %v7074_v41 = vadd.f32 %v5855_v37, %v7012_v61 }
 0x2ba   :  { %v7071_v24 = vadd.f32 %v7012_v61, %v707_v38  ;;  %v5856_v39 = vpop.f32.mrb[10].mxu1 }
 0x2bb   :  { %v710_v40 = vpop.f32.mrb[11].mxu1  ;;  %v7083_v47 = vadd.f32 %v5856_v39, %v7012_v61  ;;  %v771_v50 = vmul.f32 %v7074_v41, %v7074_v41 }
 0x2bc   :  { %v745_v42 = vadd.f32 %v744_v35, %v7071_v24  ;;  %v769_v44 = vmul.f32 %v7071_v24, %v7071_v24  ;;  %v7080_v45 = vadd.f32 %v7012_v61, %v710_v40 }
 0x2bd   :  { %v772_v53 = vmul.f32 %v7083_v47, %v7083_v47 }
 0x2be   :  { %v784_v46 = vadd.f32 %v783_v36, %v769_v44  ;;  %v746_v48 = vadd.f32 %v745_v42, %v7080_v45  ;;  %v770_v49 = vmul.f32 %v7080_v45, %v7080_v45 }
 0x2c0   :  { %v747_v51 = vadd.f32 %v746_v48, %v7074_v41  ;;  %v785_v52 = vadd.f32 %v784_v46, %v770_v49 }
 0x2c2   :  { %v786_v54 = vadd.f32 %v785_v52, %v771_v50  ;;  %v748_v59 = vadd.f32 %v747_v51, %v7083_v47 }
 0x2c4   :  { %v787_v56 = vadd.f32 %v786_v54, %v772_v53 }
 0x2d9   :  { %v5859_v58 = vpop.f32.mrb[12].mxu1 }
 0x2da   :  { %v723_v60 = vpop.f32.mrb[13].mxu1  ;;  %v732_v1 = vadd.f32 %v5859_v58, %v7012_v61 }
 0x2db   :  { %v724_v62 = vadd.f32 %v7012_v61, %v723_v60  ;;  %v5860_v63 = vpop.f32.mrb[14].mxu1 }
 0x2dc   :  { %v726_v0 = vpop.f32.mrb[15].mxu1  ;;  %v735_v28 = vadd.f32 %v5860_v63, %v7012_v61  ;;  %v775_v29 = vmul.f32 %v732_v1, %v732_v1 }
 0x2dd   :  { %v749_v3 = vadd.f32 %v748_v59, %v724_v62  ;;  %v773_v4 = vmul.f32 %v724_v62, %v724_v62  ;;  %v727_v30 = vadd.f32 %v7012_v61, %v726_v0 }
 0x2de   :  { %v776_v11 = vmul.f32 %v735_v28, %v735_v28 }
 0x2df   :  { %v788_v8 = vadd.f32 %v787_v56, %v773_v4  ;;  %v750_v55 = vadd.f32 %v749_v3, %v727_v30  ;;  %v774_v9 = vmul.f32 %v727_v30, %v727_v30  ;;  %v7144_v56 = vld [vmem:[%s7658_s8] ss:$0 sm:$0xff] }
 0x2e1   :  { %v751_v43 = vadd.f32 %v750_v55, %v732_v1  ;;  %v789_v10 = vadd.f32 %v788_v8, %v774_v9 }
 0x2e3   :  { %v752_v12 = vadd.f32 %v751_v43, %v735_v28  ;;  %v790_v13 = vadd.f32 %v789_v10, %v775_v29 }
 0x2e5   :  { %v753_v14 = vrot.slane %v752_v12, 4  ;;  %v791_v16 = vadd.f32 %v790_v13, %v776_v11 }
 0x2e7   :  { %v754_v57 = vadd.f32 %v753_v14, %v752_v12  ;;  %v792_v18 = vrot.slane %v791_v16, 4 }
 0x2e9   :  { %v755_v19 = vrot.slane %v754_v57, 2  ;;  %v793_v21 = vadd.f32 %v792_v18, %v791_v16 }
 0x2eb   :  { %v756_v23 = vadd.f32 %v755_v19, %v754_v57  ;;  %v794_v25 = vrot.slane %v793_v21, 2 }
 0x2ed   :  { %v757_v27 = vrot.slane %v756_v23, 1  ;;  %v795_v31 = vadd.f32 %v794_v25, %v793_v21 }
 0x2ef   :  { %v758_v32 = vadd.f32 %v757_v27, %v756_v23  ;;  %v796_v61 = vrot.slane %v795_v31, 1 }
 0x2f1   :  { %v7098_v33 = vmul.f32 0.0078125, %v758_v32  ;;  %v797_v34 = vadd.f32 %v796_v61, %v795_v31  ;;  %v6484_v61 = vld [vmem:[#allocation3 + $0x10] sm:$0xff]  }
 0x2f3   :  { %v798_v35 = vmul.f32 0.0078125, %v797_v34  ;;  %v799_v36 = vmul.f32 %v7098_v33, %v7098_v33  ;;  %v815_v37 = vsub.f32 %v727_v30, %v7098_v33  ;;  %v802_v38 = vsub.f32 %v7021_v2, %v7098_v33 }
 0x2f4   :  { %v803_v39 = vsub.f32 %v7027_v6, %v7098_v33  ;;  %v814_v40 = vsub.f32 %v724_v62, %v7098_v33  ;;  %v804_v42 = vsub.f32 %v7024_v5, %v7098_v33  ;;  %v805_v44 = vsub.f32 %v7032_v7, %v7098_v33 }
 0x2f5   :  { %v800_v46 = vsub.f32 %v798_v35, %v799_v36  ;;  %v816_v48 = vsub.f32 %v732_v1, %v7098_v33  ;;  %v817_v49 = vsub.f32 %v735_v28, %v7098_v33  ;;  %v806_v50 = vsub.f32 %v7047_v15, %v7098_v33 }
 0x2f6   :  { %v807_v2 = vsub.f32 %v7056_v20, %v7098_v33  ;;  %v808_v6 = vsub.f32 %v7050_v17, %v7098_v33  ;;  %v809_v5 = vsub.f32 %v7059_v22, %v7098_v33  ;;  %v810_v7 = vsub.f32 %v7071_v24, %v7098_v33  ;;  %v7135_v17 = vld [vmem:[%s7657_s7] ss:$0 sm:$0xff] }
 0x2f7   :  { %v801_v51 = vmax.f32 %v800_v46, 0.0  ;;  %v811_v52 = vsub.f32 %v7080_v45, %v7098_v33  ;;  %v812_v53 = vsub.f32 %v7074_v41, %v7098_v33  ;;  %v813_v15 = vsub.f32 %v7083_v47, %v7098_v33  ;;  %v6489_v46 = vld [vmem:[#allocation3 + $0x60] sm:$0xff]  }
 0x2f9   :  { %v818_v20 = vadd.f32 1e-05, %v801_v51 }
 0x2fb   :  { %6620 = vrsqrt.f32 %v818_v20 }
 0x305   :  { %v7130_v54 = vpop.eup %6620 }
 0x306   :  { %v833_v22 = vmul.f32 %v7130_v54, %v815_v37  ;;  %v820_v24 = vmul.f32 %v7130_v54, %v802_v38  ;;  %v821_v45 = vmul.f32 %v7130_v54, %v803_v39  ;;  %v832_v59 = vmul.f32 %v7130_v54, %v814_v40 }
 0x307   :  { %v822_v58 = vmul.f32 %v7130_v54, %v804_v42  ;;  %v823_v60 = vmul.f32 %v7130_v54, %v805_v44  ;;  %v834_v62 = vmul.f32 %v7130_v54, %v816_v48  ;;  %v835_v63 = vmul.f32 %v7130_v54, %v817_v49 }
 0x308   :  { %v843_v0 = vmul.f32 %v7135_v17, %v820_v24  ;;  %v844_v1 = vmul.f32 %v7135_v17, %v821_v45  ;;  %v855_v3 = vmul.f32 %v7135_v17, %v832_v59  ;;  %v856_v4 = vmul.f32 %v7135_v17, %v833_v22  ;;  %v1095_v59 = vld [vmem:[#allocation2] sm:$0x2] }
 0x309   :  { %v845_v30 = vmul.f32 %v7135_v17, %v822_v58  ;;  %v846_v8 = vmul.f32 %v7135_v17, %v823_v60  ;;  %v857_v28 = vmul.f32 %v7135_v17, %v834_v62  ;;  %v858_v55 = vmul.f32 %v7135_v17, %v835_v63  ;;  %v6491_v62 = vld [vmem:[#allocation3 + $0x68] sm:$0xff]  }
 0x30a   :  { %v866_v9 = vadd.f32 %v7144_v56, %v843_v0  ;;  %v867_v29 = vadd.f32 %v7144_v56, %v844_v1  ;;  %v878_v43 = vadd.f32 %v7144_v56, %v855_v3  ;;  %v879_v10 = vadd.f32 %v7144_v56, %v856_v4  ;;  %v6486_v3 = vld [vmem:[#allocation3] sm:$0xff]  }
 0x30b   :  { %v868_v11 = vadd.f32 %v7144_v56, %v845_v30  ;;  %v869_v12 = vadd.f32 %v7144_v56, %v846_v8  ;;  %v880_v13 = vadd.f32 %v7144_v56, %v857_v28  ;;  %v881_v14 = vadd.f32 %v7144_v56, %v858_v55 }
 0x30c   :  { %v882_v16 = vmax.f32 %v866_v9, 0.0  ;;  %v883_v57 = vmax.f32 %v867_v29, 0.0  ;;  %v894_v18 = vmax.f32 %v878_v43, 0.0  ;;  %v895_v19 = vmax.f32 %v879_v10, 0.0  ;;  %v6487_v9 = vld [vmem:[#allocation3 + $0x8] sm:$0xff]  }
 0x30d   :  { %v884_v21 = vmax.f32 %v868_v11, 0.0  ;;  %v885_v23 = vmax.f32 %v869_v12, 0.0  ;;  %v896_v25 = vmax.f32 %v880_v13, 0.0  ;;  %v897_v27 = vmax.f32 %v881_v14, 0.0  ;;  %v1090_v43 = vld [vmem:[#allocation2] sm:$0x1] }
 0x30e   :  { %v898_v31 = vpack.c.bf16 %v883_v57, %v882_v16  ;;  %v904_v32 = vpack.c.bf16 %v895_v19, %v894_v18  ;;  %v824_v34 = vmul.f32 %v7130_v54, %v806_v50  ;;  %v825_v35 = vmul.f32 %v7130_v54, %v807_v2  ;;  %v6490_v10 = vld [vmem:[#allocation3 + $0x28] sm:$0xff]   ;;  %v1213_v11 = vld [vmem:[#allocation2] sm:$0x4]  ;;  %v1469_v12 = vld [vmem:[#allocation2] sm:$0x40] }
 0x30f   :  { %v899_v36 = vpack.c.bf16 %v885_v23, %v884_v21  ;;  %v905_v37 = vpack.c.bf16 %v897_v27, %v896_v25  ;;  %v826_v38 = vmul.f32 %v7130_v54, %v808_v6  ;;  %v827_v39 = vmul.f32 %v7130_v54, %v809_v5  ;;  %v6485_v5 = vld [vmem:[#allocation3 + $0x18] sm:$0xff]   ;;  %v6492_v13 = vld [vmem:[#allocation3 + $0x30] sm:$0xff]   ;;  %v6493_v14 = vld [vmem:[#allocation3 + $0x80] sm:$0xff]  }
 0x310   :  { %5877 = vmatprep.mubr.bf16.mxu0 %v898_v31  ;;  %5889 = vmatprep.mubr.bf16.mxu1 %v904_v32  ;;  %v847_v40 = vmul.f32 %v7135_v17, %v824_v34  ;;  %v848_v42 = vmul.f32 %v7135_v17, %v825_v35  ;;  %v828_v44 = vmul.f32 %v7130_v54, %v810_v7  ;;  %v1102_v33 = vrot.slane %v1095_v59, 1  ;;  %v6494_v18 = vld [vmem:[#allocation3 + $0x38] sm:$0xff]   ;;  %v6495_v19 = vld [vmem:[#allocation3 + $0x88] sm:$0xff]   ;;  %v1277_v21 = vld [vmem:[#allocation2] sm:$0x8] }
 0x311   :  { %5878 = vmatmul.mubr.bf16.vlgmr.msra.gmra.mrb[16].mxu0 %v899_v36  ;;  %5890 = vmatmul.mubr.bf16.vlgmr.msra.gmra.mrb[16].mxu1 %v905_v37  ;;  %v849_v48 = vmul.f32 %v7135_v17, %v826_v38  ;;  %v850_v49 = vmul.f32 %v7135_v17, %v827_v39  ;;  %v829_v50 = vmul.f32 %v7130_v54, %v811_v52  ;;  %v1220_v16 = vrot.slane %v1213_v11, 2  ;;  %v6496_v23 = vld [vmem:[#allocation3 + $0x40] sm:$0xff]   ;;  %v1597_v31 = vld [vmem:[#allocation2 + $0x8] sm:$0x1]  ;;  %v1723_v35 = vld [vmem:[#allocation2 + $0x8] sm:$0x4] }
 0x312   :  { %5894 = vmatpush3.bf16.msra.mxu1 %v6484_v61  ;;  %v870_v2 = vadd.f32 %v7144_v56, %v847_v40  ;;  %v871_v6 = vadd.f32 %v7144_v56, %v848_v42  ;;  %5897 = vmatprep.mubr.msk.bf16.mxu1 %vm6679_vm2, %v6678_v26  ;;  %v851_v7 = vmul.f32 %v7135_v17, %v828_v44  ;;  %v1476_v57 = vrot.slane %v1469_v12, 6  ;;  %v6497_v25 = vld [vmem:[#allocation3 + $0xa0] sm:$0xff]   ;;  %v6498_v32 = vld [vmem:[#allocation3 + $0x48] sm:$0xff]   ;;  %v6500_v36 = vld [vmem:[#allocation3 + $0x50] sm:$0xff]  }
 0x313   :  { %5895 = vmatprep.subr.bf16.mxu1 %v6678_v26  ;;  %v872_v51 = vadd.f32 %v7144_v56, %v849_v48  ;;  %v873_v20 = vadd.f32 %v7144_v56, %v850_v49  ;;  %v852_v52 = vmul.f32 %v7135_v17, %v829_v50  ;;  %v830_v22 = vmul.f32 %v7130_v54, %v812_v53  ;;  %v6499_v61 = vld [vmem:[#allocation3 + $0xa8] sm:$0xff]   ;;  %v1341_v34 = vld [vmem:[#allocation2] sm:$0x10]  ;;  %v6502_v40 = vld [vmem:[#allocation3 + $0x58] sm:$0xff]  }
 0x314   :  { %v886_v24 = vmax.f32 %v870_v2, 0.0  ;;  %v887_v45 = vmax.f32 %v871_v6, 0.0  ;;  %v874_v58 = vadd.f32 %v7144_v56, %v851_v7  ;;  %v831_v60 = vmul.f32 %v7130_v54, %v813_v15  ;;  %5942 = vmatpush3.bf16.msra.mxu0 %v6489_v46  ;;  %v6501_v37 = vld [vmem:[#allocation3 + $0xc0] sm:$0xff]   ;;  %v6503_v42 = vld [vmem:[#allocation3 + $0xc8] sm:$0xff]   ;;  %v6504_v48 = vld [vmem:[#allocation3 + $0x70] sm:$0xff]  }
 0x315   :  { %v888_v63 = vmax.f32 %v872_v51, 0.0  ;;  %v889_v0 = vmax.f32 %v873_v20, 0.0  ;;  %v875_v1 = vadd.f32 %v7144_v56, %v852_v52  ;;  %v853_v41 = vmul.f32 %v7135_v17, %v830_v22  ;;  %5943 = vmatprep.subr.bf16.mxu0 %v6678_v26  ;;  %v1405_v44 = vld [vmem:[#allocation2] sm:$0x20]  ;;  %v1851_v46 = vld [vmem:[#allocation2 + $0x8] sm:$0x10] }
 0x316   :  { %v900_v53 = vpack.c.bf16 %v887_v45, %v886_v24  ;;  %5896 = vmatpush3.bf16.msra.mxu1 %v6485_v5  ;;  %v890_v4 = vmax.f32 %v874_v58, 0.0  ;;  %v854_v30 = vmul.f32 %v7135_v17, %v831_v60  ;;  %v1284_v27 = vrot.slane %v1277_v21, 3  ;;  %v6505_v49 = vld [vmem:[#allocation3 + $0xe0] sm:$0xff]   ;;  %v6506_v6 = vld [vmem:[#allocation3 + $0x78] sm:$0xff]   ;;  %v6507_v5 = vld [vmem:[#allocation3 + $0xe8] sm:$0xff]  }
 0x317   :  { %5901 = vmatprep.subr.bf16.mxu1 %v6678_v26  ;;  %v901_v47 = vpack.c.bf16 %v889_v0, %v888_v63  ;;  %v891_v15 = vmax.f32 %v875_v1, 0.0  ;;  %v876_v54 = vadd.f32 %v7144_v56, %v853_v41  ;;  %v1348_v38 = vrot.slane %v1341_v34, 4  ;;  %v1533_v7 = vld [vmem:[#allocation2] sm:$0x80]  ;;  %v1979_v51 = vld [vmem:[#allocation2 + $0x8] sm:$0x40] }
 0x318   :  { %5881 = vmatprep.mubr.bf16.mxu0 %v900_v53  ;;  %v877_v8 = vadd.f32 %v7144_v56, %v854_v30  ;;  %5944 = vmatpush3.bf16.msra.mxu0 %v6491_v62  ;;  %v6488_v56 = vld [vmem:[#allocation3 + $0x20] sm:$0xff]   ;;  %v1730_v39 = vrot.slane %v1723_v35, 2  ;;  %v1412_v50 = vrot.slane %v1405_v44, 5  ;;  %v1858_v2 = vrot.slane %v1851_v46, 4  ;;  %v6508_v20 = vld [vmem:[#allocation3 + $0x90] sm:$0xff]   ;;  %v6510_v45 = vld [vmem:[#allocation3 + $0x98] sm:$0xff]  }
 0x319   :  { %5882 = vmatmul.mubr.bf16.gmra.mrb[20].mxu0 %v901_v47  ;;  %5898 = vmatmul.mubr.msk.bf16.vlgmr.msra.gmra.mrb[20].mxu1 %vm585_vm1, %v1102_v33  ;;  %v902_v28 = vpack.c.bf16 %v891_v15, %v890_v4  ;;  %v892_v55 = vmax.f32 %v876_v54, 0.0  ;;  %v6509_v52 = vld [vmem:[#allocation3 + $0x100] sm:$0xff]   ;;  %v1540_v22 = vrot.slane %v1533_v7, 7  ;;  %v1986_v24 = vrot.slane %v1979_v51, 6  ;;  %v6511_v59 = vld [vmem:[#allocation3 + $0x108] sm:$0xff]   ;;  %v6512_v60 = vld [vmem:[#allocation3 + $0xb0] sm:$0xff]  }
 0x31a   :  { %5902 = vmatpush3.bf16.msra.mxu1 %v6486_v3  ;;  %5905 = vmatprep.mubr.msk.bf16.mxu1 %vm6679_vm2, %v6678_v26  ;;  %v893_v17 = vmax.f32 %v877_v8, 0.0  ;;  %v1659_v58 = vld [vmem:[#allocation2 + $0x8] sm:$0x2]  ;;  %v6513_v62 = vld [vmem:[#allocation3 + $0x120] sm:$0xff]   ;;  %v2107_v0 = vld [vmem:[#allocation2 + $0x10] sm:$0x1] }
 0x31b   :  { %5885 = vmatprep.mubr.bf16.mxu0 %v902_v28  ;;  %5903 = vmatprep.subr.bf16.mxu1 %v6678_v26  ;;  %v1666_v63 = vrot.slane %v1659_v58, 1  ;;  %v6514_v1 = vld [vmem:[#allocation3 + $0xb8] sm:$0xff]   ;;  %v6515_v41 = vld [vmem:[#allocation3 + $0x128] sm:$0xff]   ;;  %v2233_v3 = vld [vmem:[#allocation2 + $0x10] sm:$0x4] }
 0x31c   :  { %v903_v29 = vpack.c.bf16 %v893_v17, %v892_v55  ;;  %5957 = vmatprep.subr.bf16.mxu0 %v6678_v26  ;;  %v1787_v53 = vld [vmem:[#allocation2 + $0x8] sm:$0x8]  ;;  %v6516_v4 = vld [vmem:[#allocation3 + $0xd0] sm:$0xff]   ;;  %v6517_v30 = vld [vmem:[#allocation3 + $0x140] sm:$0xff]   ;;  %v2240_v33 = vrot.slane %v2233_v3, 2 }
 0x31d   :  { %v1794_v47 = vrot.slane %v1787_v53, 3  ;;  %v6518_v15 = vld [vmem:[#allocation3 + $0xd8] sm:$0xff]   ;;  %v6519_v54 = vld [vmem:[#allocation3 + $0x148] sm:$0xff]   ;;  %v2361_v28 = vld [vmem:[#allocation2 + $0x10] sm:$0x10] }
 0x31e   :  { %5904 = vmatpush3.bf16.msra.mxu1 %v6487_v9  ;;  %v1915_v8 = vld [vmem:[#allocation2 + $0x8] sm:$0x20]  ;;  %v6520_v55 = vld [vmem:[#allocation3 + $0xf0] sm:$0xff]   ;;  %v6521_v9 = vld [vmem:[#allocation3 + $0x160] sm:$0xff]  }
 0x31f   :  { %5909 = vmatprep.subr.bf16.mxu1 %v6678_v26  ;;  %v1922_v17 = vrot.slane %v1915_v8, 5  ;;  %v2489_v11 = vld [vmem:[#allocation2 + $0x10] sm:$0x40]  ;;  %v2743_v34 = vld [vmem:[#allocation2 + $0x18] sm:$0x4] }
 0x320   :  { %v6524_v12 = vld [vmem:[#allocation3 + $0x110] sm:$0xff]   ;;  %v2871_v44 = vld [vmem:[#allocation2 + $0x18] sm:$0x10]  ;;  %v2999_v7 = vld [vmem:[#allocation2 + $0x18] sm:$0x40] }
 0x321   :  { %5886 = vmatmul.mubr.bf16.gmra.mrb[24].mxu0 %v903_v29  ;;  %5906 = vmatmul.mubr.msk.bf16.vlgmr.msra.gmra.mrb[24].mxu1 %vm585_vm1, %v1090_v43  ;;  %v2368_v29 = vrot.slane %v2361_v28, 4  ;;  %v6523_v43 = vld [vmem:[#allocation3 + $0x168] sm:$0xff]   ;;  %v6528_v21 = vld [vmem:[#allocation3 + $0x130] sm:$0xff]   ;;  %v3253_v53 = vld [vmem:[#allocation2 + $0x20] sm:$0x4] }
 0x322   :  { %5910 = vmatpush3.bf16.msra.mxu1 %v6488_v56  ;;  %5913 = vmatprep.mubr.msk.bf16.mxu1 %vm6679_vm2, %v6678_v26  ;;  %v6522_v56 = vld [vmem:[#allocation3 + $0xf8] sm:$0xff]   ;;  %v6532_v35 = vld [vmem:[#allocation3 + $0x150] sm:$0xff]   ;;  %v3381_v8 = vld [vmem:[#allocation2 + $0x20] sm:$0x10] }
 0x323   :  { %5911 = vmatprep.subr.bf16.mxu1 %v6678_v26  ;;  %5945 = vmatprep.mubr.msk.bf16.mxu0 %vm6679_vm2, %v6678_v26  ;;  %v6536_v46 = vld [vmem:[#allocation3 + $0x170] sm:$0xff]  }
 0x324   :  { %v6540_v51 = vld [vmem:[#allocation3 + $0x190] sm:$0xff]  }
 0x325   :  { %v6544_v58 = vld [vmem:[#allocation3 + $0x1b0] sm:$0xff]  }
 0x326   :  { %5912 = vmatpush3.bf16.msra.mxu1 %v6490_v10  ;;  %v2043_v10 = vld [vmem:[#allocation2 + $0x8] sm:$0x80]  ;;  %v6548_v3 = vld [vmem:[#allocation3 + $0x1d0] sm:$0xff]  }
 0x327   :  { %5917 = vmatprep.subr.bf16.mxu1 %v6678_v26  ;;  %v6552_v28 = vld [vmem:[#allocation3 + $0x1f0] sm:$0xff]  }
 0x329   :  { %5914 = vmatmul.mubr.msk.bf16.vlgmr.msra.gmra.mrb[28].mxu1 %vm585_vm1, %v1220_v16  ;;  %5946 = vmatmul.mubr.msk.bf16.vlgmr.msra.gmra.mrb[28].mxu0 %vm585_vm1, %v1476_v57  ;;  %v2496_v16 = vrot.slane %v2489_v11, 6  ;;  %v6526_v57 = vld [vmem:[#allocation3 + $0x118] sm:$0xff]   ;;  %v6556_v11 = vld [vmem:[#allocation3 + $0x210] sm:$0xff]  }
 0x32a   :  { %5918 = vmatpush3.bf16.msra.mxu1 %v6492_v13  ;;  %5958 = vmatpush3.bf16.msra.mxu0 %v6493_v14  ;;  %v6525_v13 = vld [vmem:[#allocation3 + $0x180] sm:$0xff]   ;;  %v2050_v14 = vrot.slane %v2043_v10, 7 }
 0x32b   :  { %5919 = vmatprep.subr.bf16.mxu1 %v6678_v26  ;;  %5959 = vmatprep.subr.bf16.mxu0 %v6678_v26  ;;  %v3509_v10 = vld [vmem:[#allocation2 + $0x20] sm:$0x40] }
 0x32c   :  { %5921 = vmatprep.mubr.msk.bf16.mxu1 %vm6679_vm2, %v6678_v26  ;;  %5961 = vmatprep.mubr.msk.bf16.mxu0 %vm6679_vm2, %v6678_v26 }
 0x32e   :  { %5920 = vmatpush3.bf16.msra.mxu1 %v6494_v18  ;;  %5960 = vmatpush3.bf16.msra.mxu0 %v6495_v19  ;;  %v6527_v18 = vld [vmem:[#allocation3 + $0x188] sm:$0xff]   ;;  %v2169_v19 = vld [vmem:[#allocation2 + $0x10] sm:$0x2] }
 0x32f   :  { %5925 = vmatprep.subr.bf16.mxu1 %v6678_v26  ;;  %5973 = vmatprep.subr.bf16.mxu0 %v6678_v26 }
 0x331   :  { %5922 = vmatmul.mubr.msk.bf16.vlgmr.msra.gmra.mrb[32].mxu1 %vm585_vm1, %v1284_v27  ;;  %5962 = vmatmul.mubr.msk.bf16.vlgmr.msra.gmra.mrb[32].mxu0 %vm585_vm1, %v1597_v31  ;;  %v2617_v27 = vld [vmem:[#allocation2 + $0x18] sm:$0x1] }
 0x332   :  { %5926 = vmatpush3.bf16.msra.mxu1 %v6496_v23  ;;  %5974 = vmatpush3.bf16.msra.mxu0 %v6497_v25  ;;  %v6529_v23 = vld [vmem:[#allocation3 + $0x1a0] sm:$0xff]   ;;  %v2176_v25 = vrot.slane %v2169_v19, 1  ;;  %v6530_v31 = vld [vmem:[#allocation3 + $0x138] sm:$0xff]   ;;  %v6560_v19 = vld [vmem:[#allocation3 + $0x230] sm:$0xff]  }
 0x333   :  { %5927 = vmatprep.subr.bf16.mxu1 %v6678_v26  ;;  %5975 = vmatprep.subr.bf16.mxu0 %v6678_v26 }
 0x334   :  { %5929 = vmatprep.mubr.msk.bf16.mxu1 %vm6679_vm2, %v6678_v26  ;;  %5977 = vmatprep.mubr.msk.bf16.mxu0 %vm6679_vm2, %v6678_v26 }
 0x336   :  { %5928 = vmatpush3.bf16.msra.mxu1 %v6498_v32  ;;  %5976 = vmatpush3.bf16.msra.mxu0 %v6499_v61  ;;  %v6531_v32 = vld [vmem:[#allocation3 + $0x1a8] sm:$0xff]   ;;  %v2297_v61 = vld [vmem:[#allocation2 + $0x10] sm:$0x8] }
 0x337   :  { %5933 = vmatprep.subr.bf16.mxu1 %v6678_v26  ;;  %5989 = vmatprep.subr.bf16.mxu0 %v6678_v26 }
 0x339   :  { %5930 = vmatmul.mubr.msk.bf16.vlgmr.msra.gmra.mrb[36].mxu1 %vm585_vm1, %v1348_v38  ;;  %5978 = vmatmul.mubr.msk.bf16.vlgmr.msra.gmra.mrb[36].mxu0 %vm585_vm1, %v1730_v39  ;;  %v2750_v38 = vrot.slane %v2743_v34, 2  ;;  %v6534_v39 = vld [vmem:[#allocation3 + $0x158] sm:$0xff]   ;;  %v6564_v34 = vld [vmem:[#allocation3 + $0x250] sm:$0xff]  }
 0x33a   :  { %5934 = vmatpush3.bf16.msra.mxu1 %v6500_v36  ;;  %5990 = vmatpush3.bf16.msra.mxu0 %v6501_v37  ;;  %v6533_v36 = vld [vmem:[#allocation3 + $0x1c0] sm:$0xff]   ;;  %v2304_v37 = vrot.slane %v2297_v61, 3  ;;  %v3763_v61 = vld [vmem:[#allocation2 + $0x28] sm:$0x4] }
 0x33b   :  { %5935 = vmatprep.subr.bf16.mxu1 %v6678_v26  ;;  %5991 = vmatprep.subr.bf16.mxu0 %v6678_v26 }
 0x33c   :  { %5937 = vmatprep.mubr.msk.bf16.mxu1 %vm6679_vm2, %v6678_v26  ;;  %5993 = vmatprep.mubr.msk.bf16.mxu0 %vm6679_vm2, %v6678_v26 }
 0x33e   :  { %5936 = vmatpush3.bf16.msra.mxu1 %v6502_v40  ;;  %5992 = vmatpush3.bf16.msra.mxu0 %v6503_v42  ;;  %v6535_v40 = vld [vmem:[#allocation3 + $0x1c8] sm:$0xff]   ;;  %v2425_v42 = vld [vmem:[#allocation2 + $0x10] sm:$0x20] }
 0x33f   :  { %5949 = vmatprep.subr.bf16.mxu1 %v6678_v26  ;;  %6005 = vmatprep.subr.bf16.mxu0 %v6678_v26 }
 0x341   :  { %5938 = vmatmul.mubr.msk.bf16.vlgmr.msra.gmra.mrb[40].mxu1 %vm585_vm1, %v1412_v50  ;;  %5994 = vmatmul.mubr.msk.bf16.vlgmr.msra.gmra.mrb[40].mxu0 %vm585_vm1, %v1858_v2  ;;  %v2878_v50 = vrot.slane %v2871_v44, 4  ;;  %v6538_v2 = vld [vmem:[#allocation3 + $0x178] sm:$0xff]   ;;  %v6568_v44 = vld [vmem:[#allocation3 + $0x270] sm:$0xff]  }
 0x342   :  { %5950 = vmatpush3.bf16.msra.mxu1 %v6504_v48  ;;  %6006 = vmatpush3.bf16.msra.mxu0 %v6505_v49  ;;  %v6537_v48 = vld [vmem:[#allocation3 + $0x1e0] sm:$0xff]   ;;  %v2432_v49 = vrot.slane %v2425_v42, 5  ;;  %v3891_v42 = vld [vmem:[#allocation2 + $0x28] sm:$0x10] }
 0x343   :  { %5951 = vmatprep.subr.bf16.mxu1 %v6678_v26  ;;  %6007 = vmatprep.subr.bf16.mxu0 %v6678_v26 }
 0x344   :  { %5953 = vmatprep.mubr.msk.bf16.mxu1 %vm6679_vm2, %v6678_v26  ;;  %6009 = vmatprep.mubr.msk.bf16.mxu0 %vm6679_vm2, %v6678_v26 }
 0x346   :  { %5952 = vmatpush3.bf16.msra.mxu1 %v6506_v6  ;;  %6008 = vmatpush3.bf16.msra.mxu0 %v6507_v5  ;;  %v6539_v6 = vld [vmem:[#allocation3 + $0x1e8] sm:$0xff]   ;;  %v2553_v5 = vld [vmem:[#allocation2 + $0x10] sm:$0x80] }
 0x347   :  { %5965 = vmatprep.subr.bf16.mxu1 %v6678_v26  ;;  %6021 = vmatprep.subr.bf16.mxu0 %v6678_v26 }
 0x349   :  { %5954 = vmatmul.mubr.msk.bf16.vlgmr.msra.gmra.mrb[44].mxu1 %vm585_vm1, %v1540_v22  ;;  %6010 = vmatmul.mubr.msk.bf16.vlgmr.msra.gmra.mrb[44].mxu0 %vm585_vm1, %v1986_v24  ;;  %v3006_v22 = vrot.slane %v2999_v7, 6  ;;  %v6542_v24 = vld [vmem:[#allocation3 + $0x198] sm:$0xff]   ;;  %v6572_v7 = vld [vmem:[#allocation3 + $0x290] sm:$0xff]  }
 0x34a   :  { %5966 = vmatpush3.bf16.msra.mxu1 %v6508_v20  ;;  %6022 = vmatpush3.bf16.msra.mxu0 %v6509_v52  ;;  %v6541_v20 = vld [vmem:[#allocation3 + $0x200] sm:$0xff]   ;;  %v2560_v52 = vrot.slane %v2553_v5, 7  ;;  %v4019_v5 = vld [vmem:[#allocation2 + $0x28] sm:$0x40] }
 0x34b   :  { %5967 = vmatprep.subr.bf16.mxu1 %v6678_v26  ;;  %6023 = vmatprep.subr.bf16.mxu0 %v6678_v26 }
 0x34c   :  { %5969 = vmatprep.mubr.msk.bf16.mxu1 %vm6679_vm2, %v6678_v26  ;;  %6025 = vmatprep.mubr.msk.bf16.mxu0 %vm6679_vm2, %v6678_v26 }
 0x34e   :  { %5968 = vmatpush3.bf16.msra.mxu1 %v6510_v45  ;;  %6024 = vmatpush3.bf16.msra.mxu0 %v6511_v59  ;;  %v6543_v45 = vld [vmem:[#allocation3 + $0x208] sm:$0xff]   ;;  %v2679_v59 = vld [vmem:[#allocation2 + $0x18] sm:$0x2] }
 0x34f   :  { %5981 = vmatprep.subr.bf16.mxu1 %v6678_v26  ;;  %6037 = vmatprep.subr.bf16.mxu0 %v6678_v26 }
 0x351   :  { %5970 = vmatmul.mubr.msk.bf16.vlgmr.msra.gmra.mrb[48].mxu1 %vm585_vm1, %v1666_v63  ;;  %6026 = vmatmul.mubr.msk.bf16.vlgmr.msra.gmra.mrb[48].mxu0 %vm585_vm1, %v2107_v0  ;;  %v3127_v63 = vld [vmem:[#allocation2 + $0x20] sm:$0x1]  ;;  %v6546_v0 = vld [vmem:[#allocation3 + $0x1b8] sm:$0xff]  }
 0x352   :  { %5982 = vmatpush3.bf16.msra.mxu1 %v6512_v60  ;;  %6038 = vmatpush3.bf16.msra.mxu0 %v6513_v62  ;;  %v6545_v60 = vld [vmem:[#allocation3 + $0x220] sm:$0xff]   ;;  %v2686_v62 = vrot.slane %v2679_v59, 1  ;;  %v6576_v59 = vld [vmem:[#allocation3 + $0x2b0] sm:$0xff]  }
 0x353   :  { %5983 = vmatprep.subr.bf16.mxu1 %v6678_v26  ;;  %6039 = vmatprep.subr.bf16.mxu0 %v6678_v26 }
 0x354   :  { %5985 = vmatprep.mubr.msk.bf16.mxu1 %vm6679_vm2, %v6678_v26  ;;  %6041 = vmatprep.mubr.msk.bf16.mxu0 %vm6679_vm2, %v6678_v26 }
 0x356   :  { %5984 = vmatpush3.bf16.msra.mxu1 %v6514_v1  ;;  %6040 = vmatpush3.bf16.msra.mxu0 %v6515_v41  ;;  %v6547_v1 = vld [vmem:[#allocation3 + $0x228] sm:$0xff]   ;;  %v2807_v41 = vld [vmem:[#allocation2 + $0x18] sm:$0x8] }
 0x357   :  { %5997 = vmatprep.subr.bf16.mxu1 %v6678_v26  ;;  %6053 = vmatprep.subr.bf16.mxu0 %v6678_v26 }
 0x359   :  { %5986 = vmatmul.mubr.msk.bf16.vlgmr.msra.gmra.mrb[52].mxu1 %vm585_vm1, %v1794_v47  ;;  %6042 = vmatmul.mubr.msk.bf16.vlgmr.msra.gmra.mrb[52].mxu0 %vm585_vm1, %v2240_v33  ;;  %v3260_v47 = vrot.slane %v3253_v53, 2  ;;  %v6550_v33 = vld [vmem:[#allocation3 + $0x1d8] sm:$0xff]   ;;  %v6580_v53 = vld [vmem:[#allocation3 + $0x2d0] sm:$0xff]  }
 0x35a   :  { %5998 = vmatpush3.bf16.msra.mxu1 %v6516_v4  ;;  %6054 = vmatpush3.bf16.msra.mxu0 %v6517_v30  ;;  %v6549_v4 = vld [vmem:[#allocation3 + $0x240] sm:$0xff]   ;;  %v2814_v30 = vrot.slane %v2807_v41, 3  ;;  %v4273_v41 = vld [vmem:[#allocation2 + $0x30] sm:$0x4] }
 0x35b   :  { %5999 = vmatprep.subr.bf16.mxu1 %v6678_v26  ;;  %6055 = vmatprep.subr.bf16.mxu0 %v6678_v26 }
 0x35c   :  { %6001 = vmatprep.mubr.msk.bf16.mxu1 %vm6679_vm2, %v6678_v26  ;;  %6057 = vmatprep.mubr.msk.bf16.mxu0 %vm6679_vm2, %v6678_v26 }
 0x35e   :  { %6000 = vmatpush3.bf16.msra.mxu1 %v6518_v15  ;;  %6056 = vmatpush3.bf16.msra.mxu0 %v6519_v54  ;;  %v6551_v15 = vld [vmem:[#allocation3 + $0x248] sm:$0xff]   ;;  %v2935_v54 = vld [vmem:[#allocation2 + $0x18] sm:$0x20] }
 0x35f   :  { %6013 = vmatprep.subr.bf16.mxu1 %v6678_v26  ;;  %6069 = vmatprep.subr.bf16.mxu0 %v6678_v26 }
 0x361   :  { %6002 = vmatmul.mubr.msk.bf16.vlgmr.msra.gmra.mrb[56].mxu1 %vm585_vm1, %v1922_v17  ;;  %6058 = vmatmul.mubr.msk.bf16.vlgmr.msra.gmra.mrb[56].mxu0 %vm585_vm1, %v2368_v29  ;;  %v3388_v17 = vrot.slane %v3381_v8, 4  ;;  %v6554_v29 = vld [vmem:[#allocation3 + $0x1f8] sm:$0xff]   ;;  %v6584_v8 = vld [vmem:[#allocation3 + $0x2f0] sm:$0xff]  }
 0x362   :  { %6014 = vmatpush3.bf16.msra.mxu1 %v6520_v55  ;;  %6070 = vmatpush3.bf16.msra.mxu0 %v6521_v9  ;;  %v6553_v55 = vld [vmem:[#allocation3 + $0x260] sm:$0xff]   ;;  %v2942_v9 = vrot.slane %v2935_v54, 5  ;;  %v4401_v54 = vld [vmem:[#allocation2 + $0x30] sm:$0x10] }
 0x363   :  { %6015 = vmatprep.subr.bf16.mxu1 %v6678_v26  ;;  %6071 = vmatprep.subr.bf16.mxu0 %v6678_v26 }
 0x364   :  { %6017 = vmatprep.mubr.msk.bf16.mxu1 %vm6679_vm2, %v6678_v26  ;;  %6073 = vmatprep.mubr.msk.bf16.mxu0 %vm6679_vm2, %v6678_v26 }
 0x366   :  { %6016 = vmatpush3.bf16.msra.mxu1 %v6522_v56  ;;  %6072 = vmatpush3.bf16.msra.mxu0 %v6523_v43  ;;  %v6555_v56 = vld [vmem:[#allocation3 + $0x268] sm:$0xff]   ;;  %v3063_v43 = vld [vmem:[#allocation2 + $0x18] sm:$0x80] }
 0x367   :  { %6029 = vmatprep.subr.bf16.mxu1 %v6678_v26  ;;  %6085 = vmatprep.subr.bf16.mxu0 %v6678_v26 }
 0x369   :  { %6018 = vmatmul.mubr.msk.bf16.vlgmr.msra.gmra.mrb[60].mxu1 %vm585_vm1, %v2050_v14  ;;  %6074 = vmatmul.mubr.msk.bf16.vlgmr.msra.gmra.mrb[60].mxu0 %vm585_vm1, %v2496_v16  ;;  %v3516_v14 = vrot.slane %v3509_v10, 6  ;;  %v6558_v16 = vld [vmem:[#allocation3 + $0x218] sm:$0xff]  }
 0x36a   :  { %6030 = vmatpush3.bf16.msra.mxu1 %v6524_v12  ;;  %6086 = vmatpush3.bf16.msra.mxu0 %v6525_v13  ;;  %v6557_v12 = vld [vmem:[#allocation3 + $0x280] sm:$0xff]   ;;  %v3070_v13 = vrot.slane %v3063_v43, 7 }
 0x36b   :  { %6031 = vmatprep.subr.bf16.mxu1 %v6678_v26  ;;  %6087 = vmatprep.subr.bf16.mxu0 %v6678_v26 }
 0x36c   :  { %6033 = vmatprep.mubr.msk.bf16.mxu1 %vm6679_vm2, %v6678_v26  ;;  %6089 = vmatprep.mubr.msk.bf16.mxu0 %vm6679_vm2, %v6678_v26 }
 0x36e   :  { %6032 = vmatpush3.bf16.msra.mxu1 %v6526_v57  ;;  %6088 = vmatpush3.bf16.msra.mxu0 %v6527_v18  ;;  %v6559_v57 = vld [vmem:[#allocation3 + $0x288] sm:$0xff]   ;;  %v3189_v18 = vld [vmem:[#allocation2 + $0x20] sm:$0x2] }
 0x36f   :  { %6045 = vmatprep.subr.bf16.mxu1 %v6678_v26  ;;  %6101 = vmatprep.subr.bf16.mxu0 %v6678_v26 }
 0x371   :  { %6034 = vmatmul.mubr.msk.bf16.vlgmr.msra.gmra.mrb[64].mxu1 %vm585_vm1, %v2176_v25  ;;  %6090 = vmatmul.mubr.msk.bf16.vlgmr.msra.gmra.mrb[64].mxu0 %vm585_vm1, %v2617_v27  ;;  %v3637_v25 = vld [vmem:[#allocation2 + $0x28] sm:$0x1]  ;;  %v6562_v27 = vld [vmem:[#allocation3 + $0x238] sm:$0xff]  }
 0x372   :  { %6046 = vmatpush3.bf16.msra.mxu1 %v6528_v21  ;;  %6102 = vmatpush3.bf16.msra.mxu0 %v6529_v23  ;;  %v6561_v21 = vld [vmem:[#allocation3 + $0x2a0] sm:$0xff]   ;;  %v3196_v23 = vrot.slane %v3189_v18, 1 }
 0x373   :  { %6047 = vmatprep.subr.bf16.mxu1 %v6678_v26  ;;  %6103 = vmatprep.subr.bf16.mxu0 %v6678_v26 }
 0x374   :  { %6049 = vmatprep.mubr.msk.bf16.mxu1 %vm6679_vm2, %v6678_v26  ;;  %6105 = vmatprep.mubr.msk.bf16.mxu0 %vm6679_vm2, %v6678_v26 }
 0x376   :  { %6048 = vmatpush3.bf16.msra.mxu1 %v6530_v31  ;;  %6104 = vmatpush3.bf16.msra.mxu0 %v6531_v32  ;;  %v6563_v31 = vld [vmem:[#allocation3 + $0x2a8] sm:$0xff]   ;;  %v3317_v32 = vld [vmem:[#allocation2 + $0x20] sm:$0x8] }
 0x377   :  { %6061 = vmatprep.subr.bf16.mxu1 %v6678_v26  ;;  %6117 = vmatprep.subr.bf16.mxu0 %v6678_v26 }
 0x379   :  { %6050 = vmatmul.mubr.msk.bf16.vlgmr.msra.gmra.mrb[68].mxu1 %vm585_vm1, %v2304_v37  ;;  %6106 = vmatmul.mubr.msk.bf16.vlgmr.msra.gmra.mrb[68].mxu0 %vm585_vm1, %v2750_v38  ;;  %v3770_v37 = vrot.slane %v3763_v61, 2  ;;  %v6566_v38 = vld [vmem:[#allocation3 + $0x258] sm:$0xff]  }
 0x37a   :  { %6062 = vmatpush3.bf16.msra.mxu1 %v6532_v35  ;;  %6118 = vmatpush3.bf16.msra.mxu0 %v6533_v36  ;;  %v6565_v35 = vld [vmem:[#allocation3 + $0x2c0] sm:$0xff]   ;;  %v3324_v36 = vrot.slane %v3317_v32, 3 }
 0x37b   :  { %6063 = vmatprep.subr.bf16.mxu1 %v6678_v26  ;;  %6119 = vmatprep.subr.bf16.mxu0 %v6678_v26 }
 0x37c   :  { %6065 = vmatprep.mubr.msk.bf16.mxu1 %vm6679_vm2, %v6678_v26  ;;  %6121 = vmatprep.mubr.msk.bf16.mxu0 %vm6679_vm2, %v6678_v26 }
 0x37e   :  { %6064 = vmatpush3.bf16.msra.mxu1 %v6534_v39  ;;  %6120 = vmatpush3.bf16.msra.mxu0 %v6535_v40  ;;  %v6567_v39 = vld [vmem:[#allocation3 + $0x2c8] sm:$0xff]   ;;  %v3445_v40 = vld [vmem:[#allocation2 + $0x20] sm:$0x20] }
 0x37f   :  { %6077 = vmatprep.subr.bf16.mxu1 %v6678_v26  ;;  %6133 = vmatprep.subr.bf16.mxu0 %v6678_v26 }
 0x381   :  { %6066 = vmatmul.mubr.msk.bf16.vlgmr.msra.gmra.mrb[72].mxu1 %vm585_vm1, %v2432_v49  ;;  %6122 = vmatmul.mubr.msk.bf16.vlgmr.msra.gmra.mrb[72].mxu0 %vm585_vm1, %v2878_v50  ;;  %v3898_v49 = vrot.slane %v3891_v42, 4  ;;  %v6570_v50 = vld [vmem:[#allocation3 + $0x278] sm:$0xff]  }
 0x382   :  { %6078 = vmatpush3.bf16.msra.mxu1 %v6536_v46  ;;  %6134 = vmatpush3.bf16.msra.mxu0 %v6537_v48  ;;  %v6569_v46 = vld [vmem:[#allocation3 + $0x2e0] sm:$0xff]   ;;  %v3452_v48 = vrot.slane %v3445_v40, 5  ;;  %v6591_v40 = vld [vmem:[#allocation3 + $0x388] sm:$0xff]  }
 0x383   :  { %6079 = vmatprep.subr.bf16.mxu1 %v6678_v26  ;;  %6135 = vmatprep.subr.bf16.mxu0 %v6678_v26 }
 0x384   :  { %6081 = vmatprep.mubr.msk.bf16.mxu1 %vm6679_vm2, %v6678_v26  ;;  %6137 = vmatprep.mubr.msk.bf16.mxu0 %vm6679_vm2, %v6678_v26 }
 0x386   :  { %6080 = vmatpush3.bf16.msra.mxu1 %v6538_v2  ;;  %6136 = vmatpush3.bf16.msra.mxu0 %v6539_v6  ;;  %v6571_v2 = vld [vmem:[#allocation3 + $0x2e8] sm:$0xff]   ;;  %v3573_v6 = vld [vmem:[#allocation2 + $0x20] sm:$0x80] }
 0x387   :  { %6093 = vmatprep.subr.bf16.mxu1 %v6678_v26  ;;  %6149 = vmatprep.subr.bf16.mxu0 %v6678_v26 }
 0x389   :  { %6082 = vmatmul.mubr.msk.bf16.vlgmr.msra.gmra.mrb[76].mxu1 %vm585_vm1, %v2560_v52  ;;  %6138 = vmatmul.mubr.msk.bf16.vlgmr.msra.gmra.mrb[76].mxu0 %vm585_vm1, %v3006_v22  ;;  %v4026_v52 = vrot.slane %v4019_v5, 6  ;;  %v6574_v22 = vld [vmem:[#allocation3 + $0x298] sm:$0xff]  }
 0x38a   :  { %6094 = vmatpush3.bf16.msra.mxu1 %v6540_v51  ;;  %6150 = vmatpush3.bf16.msra.mxu0 %v6541_v20  ;;  %v6573_v51 = vld [vmem:[#allocation3 + $0x300] sm:$0xff]   ;;  %v3580_v20 = vrot.slane %v3573_v6, 7 }
 0x38b   :  { %6095 = vmatprep.subr.bf16.mxu1 %v6678_v26  ;;  %6151 = vmatprep.subr.bf16.mxu0 %v6678_v26 }
 0x38c   :  { %6097 = vmatprep.mubr.msk.bf16.mxu1 %vm6679_vm2, %v6678_v26  ;;  %6153 = vmatprep.mubr.msk.bf16.mxu0 %vm6679_vm2, %v6678_v26 }
 0x38e   :  { %6096 = vmatpush3.bf16.msra.mxu1 %v6542_v24  ;;  %6152 = vmatpush3.bf16.msra.mxu0 %v6543_v45  ;;  %v6575_v24 = vld [vmem:[#allocation3 + $0x308] sm:$0xff]  }
 0x38f   :  { %6109 = vmatprep.subr.bf16.mxu1 %v6678_v26  ;;  %6165 = vmatprep.subr.bf16.mxu0 %v6678_v26  ;;  %v3699_v45 = vld [vmem:[#allocation2 + $0x28] sm:$0x2] }
 0x391   :  { %6098 = vmatmul.mubr.msk.bf16.vlgmr.msra.gmra.mrb[80].mxu1 %vm585_vm1, %v2686_v62  ;;  %6154 = vmatmul.mubr.msk.bf16.vlgmr.msra.gmra.mrb[80].mxu0 %vm585_vm1, %v3127_v63  ;;  %v4147_v62 = vld [vmem:[#allocation2 + $0x30] sm:$0x1]  ;;  %v6578_v63 = vld [vmem:[#allocation3 + $0x2b8] sm:$0xff]  }
 0x392   :  { %6110 = vmatpush3.bf16.msra.mxu1 %v6544_v58  ;;  %6166 = vmatpush3.bf16.msra.mxu0 %v6545_v60  ;;  %v6577_v58 = vld [vmem:[#allocation3 + $0x320] sm:$0xff]   ;;  %v3706_v60 = vrot.slane %v3699_v45, 1 }
 0x393   :  { %6111 = vmatprep.subr.bf16.mxu1 %v6678_v26  ;;  %6167 = vmatprep.subr.bf16.mxu0 %v6678_v26 }
 0x394   :  { %6113 = vmatprep.mubr.msk.bf16.mxu1 %vm6679_vm2, %v6678_v26  ;;  %6169 = vmatprep.mubr.msk.bf16.mxu0 %vm6679_vm2, %v6678_v26 }
 0x396   :  { %6112 = vmatpush3.bf16.msra.mxu1 %v6546_v0  ;;  %6168 = vmatpush3.bf16.msra.mxu0 %v6547_v1  ;;  %v6579_v0 = vld [vmem:[#allocation3 + $0x328] sm:$0xff]  }
 0x397   :  { %6125 = vmatprep.subr.bf16.mxu1 %v6678_v26  ;;  %6181 = vmatprep.subr.bf16.mxu0 %v6678_v26  ;;  %v3827_v1 = vld [vmem:[#allocation2 + $0x28] sm:$0x8] }
 0x399   :  { %6114 = vmatmul.mubr.msk.bf16.vlgmr.msra.gmra.mrb[84].mxu1 %vm585_vm1, %v2814_v30  ;;  %6170 = vmatmul.mubr.msk.bf16.vlgmr.msra.gmra.mrb[84].mxu0 %vm585_vm1, %v3260_v47  ;;  %v4280_v30 = vrot.slane %v4273_v41, 2  ;;  %v6582_v47 = vld [vmem:[#allocation3 + $0x2d8] sm:$0xff]  }
 0x39a   :  { %6126 = vmatpush3.bf16.msra.mxu1 %v6548_v3  ;;  %6182 = vmatpush3.bf16.msra.mxu0 %v6549_v4  ;;  %v6581_v3 = vld [vmem:[#allocation3 + $0x340] sm:$0xff]   ;;  %v3834_v4 = vrot.slane %v3827_v1, 3  ;;  %v4783_v1 = vld [vmem:[#allocation2 + $0x38] sm:$0x4] }
 0x39b   :  { %6127 = vmatprep.subr.bf16.mxu1 %v6678_v26  ;;  %6183 = vmatprep.subr.bf16.mxu0 %v6678_v26 }
 0x39c   :  { %6129 = vmatprep.mubr.msk.bf16.mxu1 %vm6679_vm2, %v6678_v26  ;;  %6185 = vmatprep.mubr.msk.bf16.mxu0 %vm6679_vm2, %v6678_v26 }
 0x39e   :  { %6128 = vmatpush3.bf16.msra.mxu1 %v6550_v33  ;;  %6184 = vmatpush3.bf16.msra.mxu0 %v6551_v15  ;;  %v6583_v33 = vld [vmem:[#allocation3 + $0x348] sm:$0xff]  }
 0x39f   :  { %6141 = vmatprep.subr.bf16.mxu1 %v6678_v26  ;;  %6197 = vmatprep.subr.bf16.mxu0 %v6678_v26  ;;  %v3955_v15 = vld [vmem:[#allocation2 + $0x28] sm:$0x20] }
 0x3a1   :  { %6130 = vmatmul.mubr.msk.bf16.vlgmr.msra.gmra.mrb[88].mxu1 %vm585_vm1, %v2942_v9  ;;  %6186 = vmatmul.mubr.msk.bf16.vlgmr.msra.gmra.mrb[88].mxu0 %vm585_vm1, %v3388_v17  ;;  %v4408_v9 = vrot.slane %v4401_v54, 4  ;;  %v7449_v17 = vld [vmem:[%s7660_s10] ss:$0 sm:$0xff] }
 0x3a2   :  { %6142 = vmatpush3.bf16.msra.mxu1 %v6552_v28  ;;  %6198 = vmatpush3.bf16.msra.mxu0 %v6553_v55  ;;  %v6585_v28 = vld [vmem:[#allocation3 + $0x360] sm:$0xff]   ;;  %v3962_v55 = vrot.slane %v3955_v15, 5  ;;  %v6596_v15 = vld [vmem:[#allocation3 + $0x350] sm:$0xff]  }
 0x3a3   :  { %6143 = vmatprep.subr.bf16.mxu1 %v6678_v26  ;;  %6199 = vmatprep.subr.bf16.mxu0 %v6678_v26  ;;  %v6597_v54 = vld [vmem:[#allocation3 + $0x3c0] sm:$0xff]  }
 0x3a4   :  { %6145 = vmatprep.mubr.msk.bf16.mxu1 %vm6679_vm2, %v6678_v26  ;;  %6201 = vmatprep.mubr.msk.bf16.mxu0 %vm6679_vm2, %v6678_v26 }
 0x3a6   :  { %6144 = vmatpush3.bf16.msra.mxu1 %v6554_v29  ;;  %6200 = vmatpush3.bf16.msra.mxu0 %v6555_v56  ;;  %v6586_v29 = vld [vmem:[#allocation3 + $0x2f8] sm:$0xff]   ;;  %v6587_v56 = vld [vmem:[#allocation3 + $0x368] sm:$0xff]  }
 0x3a7   :  { %6157 = vmatprep.subr.bf16.mxu1 %v6678_v26  ;;  %6213 = vmatprep.subr.bf16.mxu0 %v6678_v26 }
 0x3a9   :  { %6146 = vmatmul.mubr.msk.bf16.vlgmr.msra.gmra.mrb[92].mxu1 %vm585_vm1, %v3070_v13  ;;  %6202 = vmatmul.mubr.msk.bf16.vlgmr.msra.gmra.mrb[92].mxu0 %vm585_vm1, %v3516_v14 }
 0x3aa   :  { %6158 = vmatpush3.bf16.msra.mxu1 %v6556_v11  ;;  %6214 = vmatpush3.bf16.msra.mxu0 %v6557_v12  ;;  %v4083_v11 = vld [vmem:[#allocation2 + $0x28] sm:$0x80]  ;;  %v4529_v12 = vld [vmem:[#allocation2 + $0x30] sm:$0x40] }
 0x3ab   :  { %6159 = vmatprep.subr.bf16.mxu1 %v6678_v26  ;;  %6215 = vmatprep.subr.bf16.mxu0 %v6678_v26 }
 0x3ac   :  { %6161 = vmatprep.mubr.msk.bf16.mxu1 %vm6679_vm2, %v6678_v26  ;;  %6217 = vmatprep.mubr.msk.bf16.mxu0 %vm6679_vm2, %v6678_v26 }
 0x3ae   :  { %6160 = vmatpush3.bf16.msra.mxu1 %v6558_v16  ;;  %6216 = vmatpush3.bf16.msra.mxu0 %v6559_v57 }
 0x3af   :  { %6173 = vmatprep.subr.bf16.mxu1 %v6678_v26  ;;  %6229 = vmatprep.subr.bf16.mxu0 %v6678_v26 }
 0x3b1   :  { %6162 = vmatmul.mubr.msk.bf16.vlgmr.msra.gmra.mrb[96].mxu1 %vm585_vm1, %v3196_v23  ;;  %6218 = vmatmul.mubr.msk.bf16.vlgmr.msra.gmra.mrb[96].mxu0 %vm585_vm1, %v3637_v25  ;;  %v6588_v25 = vld [vmem:[#allocation3 + $0x310] sm:$0xff]  }
 0x3b2   :  { %6174 = vmatpush3.bf16.msra.mxu1 %v6560_v19  ;;  %6230 = vmatpush3.bf16.msra.mxu0 %v6561_v21 }
 0x3b3   :  { %6175 = vmatprep.subr.bf16.mxu1 %v6678_v26  ;;  %6231 = vmatprep.subr.bf16.mxu0 %v6678_v26 }
 0x3b4   :  { %6177 = vmatprep.mubr.msk.bf16.mxu1 %vm6679_vm2, %v6678_v26  ;;  %6233 = vmatprep.mubr.msk.bf16.mxu0 %vm6679_vm2, %v6678_v26 }
 0x3b6   :  { %6176 = vmatpush3.bf16.msra.mxu1 %v6562_v27  ;;  %6232 = vmatpush3.bf16.msra.mxu0 %v6563_v31  ;;  %v6589_v27 = vld [vmem:[#allocation3 + $0x380] sm:$0xff]  }
 0x3b7   :  { %6189 = vmatprep.subr.bf16.mxu1 %v6678_v26  ;;  %6245 = vmatprep.subr.bf16.mxu0 %v6678_v26 }
 0x3b9   :  { %6178 = vmatmul.mubr.msk.bf16.vlgmr.msra.gmra.mrb[100].mxu1 %vm585_vm1, %v3324_v36  ;;  %6234 = vmatmul.mubr.msk.bf16.vlgmr.msra.gmra.mrb[100].mxu0 %vm585_vm1, %v3770_v37  ;;  %v4536_v36 = vrot.slane %v4529_v12, 6  ;;  %v4465_v12 = vld [vmem:[#allocation2 + $0x30] sm:$0x20] }
 0x3ba   :  { %6190 = vmatpush3.bf16.msra.mxu1 %v6564_v34  ;;  %6246 = vmatpush3.bf16.msra.mxu0 %v6565_v35  ;;  %v4090_v35 = vrot.slane %v4083_v11, 7 }
 0x3bb   :  { %6191 = vmatprep.subr.bf16.mxu1 %v6678_v26  ;;  %6247 = vmatprep.subr.bf16.mxu0 %v6678_v26 }
 0x3bc   :  { %6193 = vmatprep.mubr.msk.bf16.mxu1 %vm6679_vm2, %v6678_v26  ;;  %6249 = vmatprep.mubr.msk.bf16.mxu0 %vm6679_vm2, %v6678_v26 }
 0x3be   :  { %6192 = vmatpush3.bf16.msra.mxu1 %v6566_v38  ;;  %6248 = vmatpush3.bf16.msra.mxu0 %v6567_v39  ;;  %v6590_v39 = vld [vmem:[#allocation3 + $0x318] sm:$0xff]  }
 0x3bf   :  { %6205 = vmatprep.subr.bf16.mxu1 %v6678_v26  ;;  %6261 = vmatprep.subr.bf16.mxu0 %v6678_v26 }
 0x3c1   :  { %6194 = vmatmul.mubr.msk.bf16.vlgmr.msra.gmra.mrb[104].mxu1 %vm585_vm1, %v3452_v48  ;;  %6250 = vmatmul.mubr.msk.bf16.vlgmr.msra.gmra.mrb[104].mxu0 %vm585_vm1, %v3898_v49 }
 0x3c2   :  { %6206 = vmatpush3.bf16.msra.mxu1 %v6568_v44  ;;  %6262 = vmatpush3.bf16.msra.mxu0 %v6569_v46  ;;  %v4209_v46 = vld [vmem:[#allocation2 + $0x30] sm:$0x2] }
 0x3c3   :  { %6207 = vmatprep.subr.bf16.mxu1 %v6678_v26  ;;  %6263 = vmatprep.subr.bf16.mxu0 %v6678_v26 }
 0x3c4   :  { %6209 = vmatprep.mubr.msk.bf16.mxu1 %vm6679_vm2, %v6678_v26  ;;  %6265 = vmatprep.mubr.msk.bf16.mxu0 %vm6679_vm2, %v6678_v26 }
 0x3c6   :  { %6208 = vmatpush3.bf16.msra.mxu1 %v6570_v50  ;;  %6264 = vmatpush3.bf16.msra.mxu0 %v6571_v2 }
 0x3c7   :  { %6221 = vmatprep.subr.bf16.mxu1 %v6678_v26  ;;  %6277 = vmatprep.subr.bf16.mxu0 %v6678_v26 }
 0x3c9   :  { %6210 = vmatmul.mubr.msk.bf16.vlgmr.msra.gmra.mrb[108].mxu1 %vm585_vm1, %v3580_v20  ;;  %6266 = vmatmul.mubr.msk.bf16.vlgmr.msra.gmra.mrb[108].mxu0 %vm585_vm1, %v4026_v52 }
 0x3ca   :  { %6222 = vmatpush3.bf16.msra.mxu1 %v6572_v7  ;;  %6278 = vmatpush3.bf16.msra.mxu0 %v6573_v51  ;;  %v6592_v7 = vld [vmem:[#allocation3 + $0x330] sm:$0xff]   ;;  %v6593_v51 = vld [vmem:[#allocation3 + $0x3a0] sm:$0xff]  }
 0x3cb   :  { %6223 = vmatprep.subr.bf16.mxu1 %v6678_v26  ;;  %6279 = vmatprep.subr.bf16.mxu0 %v6678_v26 }
 0x3cc   :  { %6225 = vmatprep.mubr.msk.bf16.mxu1 %vm6679_vm2, %v6678_v26  ;;  %6281 = vmatprep.mubr.msk.bf16.mxu0 %vm6679_vm2, %v6678_v26 }
 0x3ce   :  { %6224 = vmatpush3.bf16.msra.mxu1 %v6574_v22  ;;  %6280 = vmatpush3.bf16.msra.mxu0 %v6575_v24  ;;  %v4216_v24 = vrot.slane %v4209_v46, 1 }
 0x3cf   :  { %6237 = vmatprep.subr.bf16.mxu1 %v6678_v26  ;;  %6293 = vmatprep.subr.bf16.mxu0 %v6678_v26 }
 0x3d1   :  { %6226 = vmatmul.mubr.msk.bf16.vlgmr.msra.gmra.mrb[112].mxu1 %vm585_vm1, %v3706_v60  ;;  %6282 = vmatmul.mubr.msk.bf16.vlgmr.msra.gmra.mrb[112].mxu0 %vm585_vm1, %v4147_v62  ;;  %v6595_v60 = vld [vmem:[#allocation3 + $0x3a8] sm:$0xff]  }
 0x3d2   :  { %6238 = vmatpush3.bf16.msra.mxu1 %v6576_v59  ;;  %6294 = vmatpush3.bf16.msra.mxu0 %v6577_v58  ;;  %v4657_v59 = vld [vmem:[#allocation2 + $0x38] sm:$0x1] }
 0x3d3   :  { %6239 = vmatprep.subr.bf16.mxu1 %v6678_v26  ;;  %6295 = vmatprep.subr.bf16.mxu0 %v6678_v26  ;;  %v6594_v58 = vld [vmem:[#allocation3 + $0x338] sm:$0xff]  }
 0x3d4   :  { %6241 = vmatprep.mubr.msk.bf16.mxu1 %vm6679_vm2, %v6678_v26  ;;  %6297 = vmatprep.mubr.msk.bf16.mxu0 %vm6679_vm2, %v6678_v26 }
 0x3d6   :  { %6240 = vmatpush3.bf16.msra.mxu1 %v6578_v63  ;;  %6296 = vmatpush3.bf16.msra.mxu0 %v6579_v0  ;;  %v4337_v0 = vld [vmem:[#allocation2 + $0x30] sm:$0x8] }
 0x3d7   :  { %6253 = vmatprep.subr.bf16.mxu1 %v6678_v26  ;;  %6309 = vmatprep.subr.bf16.mxu0 %v6678_v26 }
 0x3d9   :  { %6242 = vmatmul.mubr.msk.bf16.vlgmr.msra.gmra.mrb[116].mxu1 %vm585_vm1, %v3834_v4  ;;  %6298 = vmatmul.mubr.msk.bf16.vlgmr.msra.gmra.mrb[116].mxu0 %vm585_vm1, %v4280_v30 }
 0x3da   :  { %6254 = vmatpush3.bf16.msra.mxu1 %v6580_v53  ;;  %6310 = vmatpush3.bf16.msra.mxu0 %v6581_v3 }
 0x3db   :  { %6255 = vmatprep.subr.bf16.mxu1 %v6678_v26  ;;  %6311 = vmatprep.subr.bf16.mxu0 %v6678_v26 }
 0x3dc   :  { %6257 = vmatprep.mubr.msk.bf16.mxu1 %vm6679_vm2, %v6678_v26  ;;  %6313 = vmatprep.mubr.msk.bf16.mxu0 %vm6679_vm2, %v6678_v26 }
 0x3de   :  { %6256 = vmatpush3.bf16.msra.mxu1 %v6582_v47  ;;  %6312 = vmatpush3.bf16.msra.mxu0 %v6583_v33 }
 0x3df   :  { %6269 = vmatprep.subr.bf16.mxu1 %v6678_v26  ;;  %6325 = vmatprep.subr.bf16.mxu0 %v6678_v26 }
 0x3e1   :  { %6258 = vmatmul.mubr.msk.bf16.vlgmr.msra.gmra.mrb[120].mxu1 %vm585_vm1, %v3962_v55  ;;  %6314 = vmatmul.mubr.msk.bf16.vlgmr.msra.gmra.mrb[120].mxu0 %vm585_vm1, %v4408_v9  ;;  %v4344_v9 = vrot.slane %v4337_v0, 3  ;;  %v6607_v0 = vld [vmem:[#allocation3 + $0x3b8] sm:$0xff]  }
 0x3e2   :  { %6270 = vmatpush3.bf16.msra.mxu1 %v6584_v8  ;;  %6326 = vmatpush3.bf16.msra.mxu0 %v6585_v28 }
 0x3e3   :  { %6271 = vmatprep.subr.bf16.mxu1 %v6678_v26  ;;  %6327 = vmatprep.subr.bf16.mxu0 %v6678_v26 }
 0x3e4   :  { %v5879_v43 = vpop.f32.mrb[16].mxu0  ;;  %v5891_v10 = vpop.f32.mrb[16].mxu1  ;;  %6273 = vmatprep.mubr.msk.bf16.mxu1 %vm6679_vm2, %v6678_v26  ;;  %6329 = vmatprep.mubr.msk.bf16.mxu0 %vm6679_vm2, %v6678_v26 }
 0x3e5   :  { %v1020_v13 = vadd.f32 %v5879_v43, %v7449_v17  ;;  %v1068_v14 = vadd.f32 %v5891_v10, %v7449_v17  ;;  %v1011_v16 = vpop.f32.mrb[17].mxu0  ;;  %v1059_v57 = vpop.f32.mrb[17].mxu1  ;;  %v6598_v43 = vld [vmem:[#allocation3 + $0x358] sm:$0xff]   ;;  %v6599_v10 = vld [vmem:[#allocation3 + $0x3c8] sm:$0xff]  }
 0x3e6   :  { %v1012_v18 = vadd.f32 %v7449_v17, %v1011_v16  ;;  %v1060_v19 = vadd.f32 %v7449_v17, %v1059_v57  ;;  %6272 = vmatpush3.bf16.msra.mxu1 %v6586_v29  ;;  %v5880_v21 = vpop.f32.mrb[18].mxu0  ;;  %v5892_v23 = vpop.f32.mrb[18].mxu1  ;;  %6328 = vmatpush3.bf16.msra.mxu0 %v6587_v56  ;;  %v4790_v29 = vrot.slane %v4783_v1, 2 }
 0x3e7   :  { %1076 = vst [vmem:[%s7667_s17 + $0x10] sm:$0xff] %v1020_v13  ;;  %1088 = vst [vmem:[%s7667_s17 + $0x70] sm:$0xff] %v1068_v14  ;;  %v1023_v31 = vadd.f32 %v5880_v21, %v7449_v17  ;;  %v1071_v32 = vadd.f32 %v5892_v23, %v7449_v17  ;;  %v1014_v61 = vpop.f32.mrb[19].mxu0  ;;  %v1062_v34 = vpop.f32.mrb[19].mxu1  ;;  %6285 = vmatprep.subr.bf16.mxu1 %v6678_v26  ;;  %6341 = vmatprep.subr.bf16.mxu0 %v6678_v26  ;;  %v4911_v13 = vld [vmem:[#allocation2 + $0x38] sm:$0x10] }
 0x3e8   :  { %1074 = vst [vmem:[%s7667_s17] sm:$0xff] %v1012_v18  ;;  %1086 = vst [vmem:[%s7667_s17 + $0x60] sm:$0xff] %v1060_v19  ;;  %v1015_v37 = vadd.f32 %v7449_v17, %v1014_v61  ;;  %v1063_v38 = vadd.f32 %v7449_v17, %v1062_v34  ;;  %v6600_v21 = vld [vmem:[#allocation3 + $0x370] sm:$0xff]   ;;  %v6601_v23 = vld [vmem:[#allocation3 + $0x3e0] sm:$0xff]  }
 0x3e9   :  { %1077 = vst [vmem:[%s7667_s17 + $0x18] sm:$0xff] %v1023_v31  ;;  %1089 = vst [vmem:[%s7667_s17 + $0x78] sm:$0xff] %v1071_v32  ;;  %6274 = vmatmul.mubr.msk.bf16.vlgmr.msra.gmra.mrb[124].mxu1 %vm585_vm1, %v4090_v35  ;;  %6330 = vmatmul.mubr.msk.bf16.vlgmr.msra.gmra.mrb[124].mxu0 %vm585_vm1, %v4536_v36  ;;  %v4472_v31 = vrot.slane %v4465_v12, 5  ;;  %v4918_v32 = vrot.slane %v4911_v13, 4  ;;  %v6602_v61 = vld [vmem:[#allocation3 + $0x378] sm:$0xff]   ;;  %v6603_v34 = vld [vmem:[#allocation3 + $0x3e8] sm:$0xff]  }
 0x3ea   :  { %1075 = vst [vmem:[%s7667_s17 + $0x8] sm:$0xff] %v1015_v37  ;;  %1087 = vst [vmem:[%s7667_s17 + $0x68] sm:$0xff] %v1063_v38  ;;  %6286 = vmatpush3.bf16.msra.mxu1 %v6588_v25  ;;  %6342 = vmatpush3.bf16.msra.mxu0 %v6589_v27  ;;  %v4593_v37 = vld [vmem:[#allocation2 + $0x30] sm:$0x80]  ;;  %v5039_v38 = vld [vmem:[#allocation2 + $0x38] sm:$0x40] }
 0x3eb   :  { %6287 = vmatprep.subr.bf16.mxu1 %v6678_v26  ;;  %6343 = vmatprep.subr.bf16.mxu0 %v6678_v26 }
 0x3ec   :  { %v5883_v42 = vpop.f32.mrb[20].mxu0  ;;  %v1152_v44 = vpop.f32.mrb[20].mxu1  ;;  %6289 = vmatprep.mubr.msk.bf16.mxu1 %vm6679_vm2, %v6678_v26  ;;  %6345 = vmatprep.mubr.msk.bf16.mxu0 %vm6679_vm2, %v6678_v26 }
 0x3ed   :  { %v1036_v48 = vadd.f32 %v5883_v42, %v7449_v17  ;;  %v1027_v49 = vpop.f32.mrb[21].mxu0  ;;  %v5899_v50 = vpop.f32.mrb[21].mxu1 }
 0x3ee   :  { %v1028_v2 = vadd.f32 %v7449_v17, %v1027_v49  ;;  %6288 = vmatpush3.bf16.msra.mxu1 %v6590_v39  ;;  %v5884_v6 = vpop.f32.mrb[22].mxu0  ;;  %v1155_v5 = vpop.f32.mrb[22].mxu1  ;;  %6344 = vmatpush3.bf16.msra.mxu0 %v6591_v40 }
 0x3ef   :  { %1080 = vst [vmem:[%s7667_s17 + $0x30] sm:$0xff] %v1036_v48  ;;  %v1039_v20 = vadd.f32 %v5884_v6, %v7449_v17  ;;  %v1030_v52 = vpop.f32.mrb[23].mxu0  ;;  %v5900_v22 = vpop.f32.mrb[23].mxu1  ;;  %6301 = vmatprep.subr.bf16.mxu1 %v6678_v26  ;;  %6357 = vmatprep.subr.bf16.mxu0 %v6678_v26  ;;  %v6604_v48 = vld [vmem:[#allocation3 + $0x390] sm:$0xff]   ;;  %v5046_v6 = vrot.slane %v5039_v38, 6  ;;  %v6605_v5 = vld [vmem:[#allocation3 + $0x398] sm:$0xff]  }
 0x3f0   :  { %1078 = vst [vmem:[%s7667_s17 + $0x20] sm:$0xff] %v1028_v2  ;;  %v1031_v45 = vadd.f32 %v7449_v17, %v1030_v52  ;;  %v4600_v2 = vrot.slane %v4593_v37, 7 }
 0x3f1   :  { %1081 = vst [vmem:[%s7667_s17 + $0x38] sm:$0xff] %v1039_v20  ;;  %6290 = vmatmul.mubr.msk.bf16.vlgmr.msra.gmra.mrb[128].mxu1 %vm585_vm1, %v4216_v24  ;;  %6346 = vmatmul.mubr.msk.bf16.vlgmr.msra.gmra.mrb[128].mxu0 %vm585_vm1, %v4657_v59  ;;  %v4719_v20 = vld [vmem:[#allocation2 + $0x38] sm:$0x2] }
 0x3f2   :  { %1079 = vst [vmem:[%s7667_s17 + $0x28] sm:$0xff] %v1031_v45  ;;  %6302 = vmatpush3.bf16.msra.mxu1 %v6592_v7  ;;  %6358 = vmatpush3.bf16.msra.mxu0 %v6593_v51 }
 0x3f3   :  { %6303 = vmatprep.subr.bf16.mxu1 %v6678_v26  ;;  %6359 = vmatprep.subr.bf16.mxu0 %v6678_v26 }
 0x3f4   :  { %v5887_v62 = vpop.f32.mrb[24].mxu0  ;;  %v1207_v63 = vpop.f32.mrb[24].mxu1  ;;  %6305 = vmatprep.mubr.msk.bf16.mxu1 %vm6679_vm2, %v6678_v26  ;;  %6361 = vmatprep.mubr.msk.bf16.mxu0 %vm6679_vm2, %v6678_v26 }
 0x3f5   :  { %v1052_v41 = vadd.f32 %v5887_v62, %v7449_v17  ;;  %v1208_v53 = vadd.f32 %v1207_v63, %v1152_v44  ;;  %v1043_v3 = vpop.f32.mrb[25].mxu0  ;;  %v5907_v4 = vpop.f32.mrb[25].mxu1  ;;  %v4726_v63 = vrot.slane %v4719_v20, 1 }
 0x3f6   :  { %v1044_v30 = vadd.f32 %v7449_v17, %v1043_v3  ;;  %6304 = vmatpush3.bf16.msra.mxu1 %v6594_v58  ;;  %v5888_v47 = vpop.f32.mrb[26].mxu0  ;;  %v1210_v33 = vpop.f32.mrb[26].mxu1  ;;  %6360 = vmatpush3.bf16.msra.mxu0 %v6595_v60  ;;  %v6606_v58 = vld [vmem:[#allocation3 + $0x3b0] sm:$0xff]  }
 0x3f7   :  { %1084 = vst [vmem:[%s7667_s17 + $0x50] sm:$0xff] %v1052_v41  ;;  %v1055_v8 = vadd.f32 %v5888_v47, %v7449_v17  ;;  %v1046_v28 = vpop.f32.mrb[27].mxu0  ;;  %v5908_v55 = vpop.f32.mrb[27].mxu1  ;;  %6317 = vmatprep.subr.bf16.mxu1 %v6678_v26  ;;  %6373 = vmatprep.subr.bf16.mxu0 %v6678_v26 }
 0x3f8   :  { %1082 = vst [vmem:[%s7667_s17 + $0x40] sm:$0xff] %v1044_v30  ;;  %v1047_v56 = vadd.f32 %v7449_v17, %v1046_v28 }
 0x3f9   :  { %1085 = vst [vmem:[%s7667_s17 + $0x58] sm:$0xff] %v1055_v8  ;;  %6306 = vmatmul.mubr.msk.bf16.vlgmr.msra.gmra.mrb[132].mxu1 %vm585_vm1, %v4344_v9  ;;  %6362 = vmatmul.mubr.msk.bf16.vlgmr.msra.gmra.mrb[132].mxu0 %vm585_vm1, %v4790_v29  ;;  %v6609_v9 = vld [vmem:[#allocation3 + $0x3d8] sm:$0xff]  }
 0x3fa   :  { %1083 = vst [vmem:[%s7667_s17 + $0x48] sm:$0xff] %v1047_v56  ;;  %6318 = vmatpush3.bf16.msra.mxu1 %v6596_v15  ;;  %6374 = vmatpush3.bf16.msra.mxu0 %v6597_v54  ;;  %v6608_v15 = vld [vmem:[#allocation3 + $0x3d0] sm:$0xff]  }
 0x3fb   :  { %6319 = vmatprep.subr.bf16.mxu1 %v6678_v26  ;;  %6375 = vmatprep.subr.bf16.mxu0 %v6678_v26 }
 0x3fc   :  { %v1270_v17 = vpop.f32.mrb[28].mxu1  ;;  %v7547_v11 = vpop.f32.mrb[28].mxu0  ;;  %6321 = vmatprep.mubr.msk.bf16.mxu1 %vm6679_vm2, %v6678_v26  ;;  %6377 = vmatprep.mubr.msk.bf16.mxu0 %vm6679_vm2, %v6678_v26 }
 0x3fd   :  { %v1276_v14 = vadd.f32 %v1270_v17, %v1208_v53  ;;  %v5915_v16 = vpop.f32.mrb[29].mxu1  ;;  %v5947_v57 = vpop.f32.mrb[29].mxu0  ;;  %v4847_v53 = vld [vmem:[#allocation2 + $0x38] sm:$0x8] }
 0x3fe   :  { %6320 = vmatpush3.bf16.msra.mxu1 %v6598_v43  ;;  %v1273_v18 = vpop.f32.mrb[30].mxu1  ;;  %v1529_v19 = vpop.f32.mrb[30].mxu0  ;;  %6376 = vmatpush3.bf16.msra.mxu0 %v6599_v10  ;;  %v4854_v28 = vrot.slane %v4847_v53, 3  ;;  %v4975_v43 = vld [vmem:[#allocation2 + $0x38] sm:$0x20]  ;;  %v6610_v16 = vld [vmem:[#allocation3 + $0x3f0] sm:$0xff]  }
 0x3ff   :  { %v5916_v25 = vpop.f32.mrb[31].mxu1  ;;  %v5948_v27 = vpop.f32.mrb[31].mxu0  ;;  %6333 = vmatprep.subr.bf16.mxu1 %v6678_v26  ;;  %6389 = vmatprep.subr.bf16.mxu0 %v6678_v26  ;;  %v4982_v18 = vrot.slane %v4975_v43, 5 }
 0x400   :  { %v5103_v27 = vld [vmem:[#allocation2 + $0x38] sm:$0x80] }
 0x401   :  { %6322 = vmatmul.mubr.msk.bf16.vlgmr.msra.gmra.mrb[136].mxu1 %vm585_vm1, %v4472_v31  ;;  %6378 = vmatmul.mubr.msk.bf16.vlgmr.msra.gmra.mrb[136].mxu0 %vm585_vm1, %v4918_v32  ;;  %v5110_v38 = vrot.slane %v5103_v27, 7 }
 0x402   :  { %6334 = vmatpush3.bf16.msra.mxu1 %v6600_v21  ;;  %6390 = vmatpush3.bf16.msra.mxu0 %v6601_v23  ;;  %v6611_v21 = vld [vmem:[#allocation3 + $0x3f8] sm:$0xff]  }
 0x403   :  { %6335 = vmatprep.subr.bf16.mxu1 %v6678_v26  ;;  %6391 = vmatprep.subr.bf16.mxu0 %v6678_v26 }
 0x404   :  { %v1334_v35 = vpop.f32.mrb[32].mxu1  ;;  %v7559_v36 = vpop.f32.mrb[32].mxu0  ;;  %6337 = vmatprep.mubr.msk.bf16.mxu1 %vm6679_vm2, %v6678_v26  ;;  %6393 = vmatprep.mubr.msk.bf16.mxu0 %vm6679_vm2, %v6678_v26 }
 0x405   :  { %v1340_v39 = vadd.f32 %v1334_v35, %v1276_v14  ;;  %v5923_v40 = vpop.f32.mrb[33].mxu1  ;;  %v5963_v42 = vpop.f32.mrb[33].mxu0 }
 0x406   :  { %6336 = vmatpush3.bf16.msra.mxu1 %v6602_v61  ;;  %v1337_v44 = vpop.f32.mrb[34].mxu1  ;;  %v1655_v46 = vpop.f32.mrb[34].mxu0  ;;  %6392 = vmatpush3.bf16.msra.mxu0 %v6603_v34 }
 0x407   :  { %v5924_v49 = vpop.f32.mrb[35].mxu1  ;;  %v5964_v50 = vpop.f32.mrb[35].mxu0  ;;  %6349 = vmatprep.subr.bf16.mxu1 %v6678_v26  ;;  %6405 = vmatprep.subr.bf16.mxu0 %v6678_v26 }
 0x409   :  { %6338 = vmatmul.mubr.msk.bf16.vlgmr.msra.gmra.mrb[140].mxu1 %vm585_vm1, %v4600_v2  ;;  %6394 = vmatmul.mubr.msk.bf16.vlgmr.msra.gmra.mrb[140].mxu0 %vm585_vm1, %v5046_v6 }
 0x40a   :  { %6350 = vmatpush3.bf16.msra.mxu1 %v6604_v48  ;;  %6353 = vmatprep.mubr.msk.bf16.mxu1 %vm6679_vm2, %v6678_v26 }
 0x40b   :  { %6351 = vmatprep.subr.bf16.mxu1 %v6678_v26  ;;  %6421 = vmatprep.mubr.msk.bf16.mxu0 %vm6679_vm2, %v6678_v26 }
 0x40c   :  { %v1398_v7 = vpop.f32.mrb[36].mxu1  ;;  %v7574_v51 = vpop.f32.mrb[36].mxu0 }
 0x40d   :  { %v1404_v52 = vadd.f32 %v1398_v7, %v1340_v39  ;;  %v5931_v22 = vpop.f32.mrb[37].mxu1  ;;  %v5979_v24 = vpop.f32.mrb[37].mxu0 }
 0x40e   :  { %6352 = vmatpush3.bf16.msra.mxu1 %v6605_v5  ;;  %v1401_v45 = vpop.f32.mrb[38].mxu1  ;;  %v1783_v59 = vpop.f32.mrb[38].mxu0 }
 0x40f   :  { %v5932_v60 = vpop.f32.mrb[39].mxu1  ;;  %v5980_v62 = vpop.f32.mrb[39].mxu0  ;;  %6365 = vmatprep.subr.bf16.mxu1 %v6678_v26 }
 0x411   :  { %6354 = vmatmul.mubr.msk.bf16.vlgmr.msra.gmra.mrb[144].mxu1 %vm585_vm1, %v4726_v63 }
 0x412   :  { %6366 = vmatpush3.bf16.msra.mxu1 %v6606_v58  ;;  %6369 = vmatprep.mubr.msk.bf16.mxu1 %vm6679_vm2, %v6678_v26 }
 0x413   :  { %6367 = vmatprep.subr.bf16.mxu1 %v6678_v26 }
 0x414   :  { %v1462_v1 = vpop.f32.mrb[40].mxu1  ;;  %v1908_v41 = vpop.f32.mrb[40].mxu0 }
 0x415   :  { %v1468_v3 = vadd.f32 %v1462_v1, %v1404_v52  ;;  %v5939_v4 = vpop.f32.mrb[41].mxu1  ;;  %v5995_v30 = vpop.f32.mrb[41].mxu0 }
 0x416   :  { %6368 = vmatpush3.bf16.msra.mxu1 %v6607_v0  ;;  %v1465_v47 = vpop.f32.mrb[42].mxu1  ;;  %v1911_v33 = vpop.f32.mrb[42].mxu0 }
 0x417   :  { %v5940_v54 = vpop.f32.mrb[43].mxu1  ;;  %v5996_v8 = vpop.f32.mrb[43].mxu0  ;;  %6381 = vmatprep.subr.bf16.mxu1 %v6678_v26  ;;  %v1532_v55 = vadd.f32 %v7547_v11, %v1468_v3 }
 0x419   :  { %6370 = vmatmul.mubr.msk.bf16.vlgmr.msra.gmra.mrb[148].mxu1 %vm585_vm1, %v4854_v28 }
 0x41a   :  { %6382 = vmatpush3.bf16.msra.mxu1 %v6608_v15  ;;  %6385 = vmatprep.mubr.msk.bf16.mxu1 %vm6679_vm2, %v6678_v26 }
 0x41b   :  { %6383 = vmatprep.subr.bf16.mxu1 %v6678_v26 }
 0x41c   :  { %v1590_v29 = vpop.f32.mrb[44].mxu1  ;;  %v2036_v56 = vpop.f32.mrb[44].mxu0 }
 0x41d   :  { %v1596_v10 = vadd.f32 %v1590_v29, %v1532_v55  ;;  %v5955_v17 = vpop.f32.mrb[45].mxu1  ;;  %v6011_v12 = vpop.f32.mrb[45].mxu0 }
 0x41e   :  { %6384 = vmatpush3.bf16.msra.mxu1 %v6609_v9  ;;  %v1593_v13 = vpop.f32.mrb[46].mxu1  ;;  %v2039_v14 = vpop.f32.mrb[46].mxu0 }
 0x41f   :  { %v5956_v11 = vpop.f32.mrb[47].mxu1  ;;  %v6012_v57 = vpop.f32.mrb[47].mxu0  ;;  %6397 = vmatprep.subr.bf16.mxu1 %v6678_v26  ;;  %v1658_v19 = vadd.f32 %v7559_v36, %v1596_v10 }
 0x421   :  { %6386 = vmatmul.mubr.msk.bf16.vlgmr.msra.gmra.mrb[152].mxu1 %vm585_vm1, %v4982_v18 }
 0x422   :  { %6398 = vmatpush3.bf16.msra.mxu1 %v6610_v16  ;;  %6401 = vmatprep.mubr.msk.bf16.mxu1 %vm6679_vm2, %v6678_v26 }
 0x423   :  { %6399 = vmatprep.subr.bf16.mxu1 %v6678_v26 }
 0x424   :  { %v1716_v23 = vpop.f32.mrb[48].mxu1  ;;  %v2162_v25 = vpop.f32.mrb[48].mxu0 }
 0x425   :  { %v1722_v31 = vadd.f32 %v1716_v23, %v1658_v19  ;;  %v5971_v32 = vpop.f32.mrb[49].mxu1  ;;  %v6027_v61 = vpop.f32.mrb[49].mxu0 }
 0x426   :  { %6400 = vmatpush3.bf16.msra.mxu1 %v6611_v21  ;;  %v1719_v34 = vpop.f32.mrb[50].mxu1  ;;  %v2165_v35 = vpop.f32.mrb[50].mxu0 }
 0x427   :  { %v5972_v37 = vpop.f32.mrb[51].mxu1  ;;  %v6028_v36 = vpop.f32.mrb[51].mxu0  ;;  %v1786_v39 = vadd.f32 %v7574_v51, %v1722_v31 }
 0x429   :  { %6402 = vmatmul.mubr.msk.bf16.vlgmr.msra.gmra.mrb[156].mxu1 %vm585_vm1, %v5110_v38 }
 0x42c   :  { %v1844_v40 = vpop.f32.mrb[52].mxu1  ;;  %v2290_v42 = vpop.f32.mrb[52].mxu0 }
 0x42d   :  { %v1850_v44 = vadd.f32 %v1844_v40, %v1786_v39  ;;  %v5987_v46 = vpop.f32.mrb[53].mxu1  ;;  %v6043_v48 = vpop.f32.mrb[53].mxu0 }
 0x42e   :  { %v1847_v49 = vpop.f32.mrb[54].mxu1  ;;  %v2293_v50 = vpop.f32.mrb[54].mxu0 }
 0x42f   :  { %v5988_v2 = vpop.f32.mrb[55].mxu1  ;;  %v6044_v6 = vpop.f32.mrb[55].mxu0  ;;  %v1914_v5 = vadd.f32 %v1908_v41, %v1850_v44 }
 0x434   :  { %v1972_v7 = vpop.f32.mrb[56].mxu1  ;;  %v2418_v20 = vpop.f32.mrb[56].mxu0 }
 0x435   :  { %v1978_v52 = vadd.f32 %v1972_v7, %v1914_v5  ;;  %v6003_v22 = vpop.f32.mrb[57].mxu1  ;;  %v6059_v24 = vpop.f32.mrb[57].mxu0 }
 0x436   :  { %v1975_v45 = vpop.f32.mrb[58].mxu1  ;;  %v2421_v59 = vpop.f32.mrb[58].mxu0 }
 0x437   :  { %v6004_v51 = vpop.f32.mrb[59].mxu1  ;;  %v6060_v58 = vpop.f32.mrb[59].mxu0  ;;  %v2042_v60 = vadd.f32 %v2036_v56, %v1978_v52 }
 0x43c   :  { %v2100_v62 = vpop.f32.mrb[60].mxu1  ;;  %v2546_v63 = vpop.f32.mrb[60].mxu0 }
 0x43d   :  { %v2106_v0 = vadd.f32 %v2100_v62, %v2042_v60  ;;  %v6019_v1 = vpop.f32.mrb[61].mxu1  ;;  %v6075_v53 = vpop.f32.mrb[61].mxu0 }
 0x43e   :  { %v2103_v3 = vpop.f32.mrb[62].mxu1  ;;  %v2549_v4 = vpop.f32.mrb[62].mxu0 }
 0x43f   :  { %v6020_v30 = vpop.f32.mrb[63].mxu1  ;;  %v6076_v47 = vpop.f32.mrb[63].mxu0  ;;  %v2168_v41 = vadd.f32 %v2162_v25, %v2106_v0 }
 0x444   :  { %v2226_v33 = vpop.f32.mrb[64].mxu1  ;;  %v2672_v15 = vpop.f32.mrb[64].mxu0 }
 0x445   :  { %v2232_v54 = vadd.f32 %v2226_v33, %v2168_v41  ;;  %v6035_v8 = vpop.f32.mrb[65].mxu1  ;;  %v6091_v28 = vpop.f32.mrb[65].mxu0 }
 0x446   :  { %v2229_v55 = vpop.f32.mrb[66].mxu1  ;;  %v2675_v9 = vpop.f32.mrb[66].mxu0 }
 0x447   :  { %v6036_v29 = vpop.f32.mrb[67].mxu1  ;;  %v6092_v43 = vpop.f32.mrb[67].mxu0  ;;  %v2296_v56 = vadd.f32 %v2290_v42, %v2232_v54 }
 0x44c   :  { %v2354_v10 = vpop.f32.mrb[68].mxu1  ;;  %v2800_v17 = vpop.f32.mrb[68].mxu0 }
 0x44d   :  { %v2360_v12 = vadd.f32 %v2354_v10, %v2296_v56  ;;  %v6051_v13 = vpop.f32.mrb[69].mxu1  ;;  %v6107_v14 = vpop.f32.mrb[69].mxu0 }
 0x44e   :  { %v2357_v16 = vpop.f32.mrb[70].mxu1  ;;  %v2803_v11 = vpop.f32.mrb[70].mxu0 }
 0x44f   :  { %v6052_v57 = vpop.f32.mrb[71].mxu1  ;;  %v6108_v18 = vpop.f32.mrb[71].mxu0  ;;  %v2424_v19 = vadd.f32 %v2418_v20, %v2360_v12 }
 0x454   :  { %v2482_v21 = vpop.f32.mrb[72].mxu1  ;;  %v2928_v23 = vpop.f32.mrb[72].mxu0 }
 0x455   :  { %v2488_v25 = vadd.f32 %v2482_v21, %v2424_v19  ;;  %v6067_v27 = vpop.f32.mrb[73].mxu1  ;;  %v6123_v31 = vpop.f32.mrb[73].mxu0 }
 0x456   :  { %v2485_v32 = vpop.f32.mrb[74].mxu1  ;;  %v2931_v61 = vpop.f32.mrb[74].mxu0 }
 0x457   :  { %v6068_v34 = vpop.f32.mrb[75].mxu1  ;;  %v6124_v35 = vpop.f32.mrb[75].mxu0  ;;  %v2552_v37 = vadd.f32 %v2546_v63, %v2488_v25 }
 0x45c   :  { %v2610_v36 = vpop.f32.mrb[76].mxu1  ;;  %v3056_v38 = vpop.f32.mrb[76].mxu0 }
 0x45d   :  { %v2616_v39 = vadd.f32 %v2610_v36, %v2552_v37  ;;  %v6083_v40 = vpop.f32.mrb[77].mxu1  ;;  %v6139_v42 = vpop.f32.mrb[77].mxu0 }
 0x45e   :  { %v2613_v44 = vpop.f32.mrb[78].mxu1  ;;  %v3059_v46 = vpop.f32.mrb[78].mxu0 }
 0x45f   :  { %v6084_v48 = vpop.f32.mrb[79].mxu1  ;;  %v6140_v49 = vpop.f32.mrb[79].mxu0  ;;  %v2678_v50 = vadd.f32 %v2672_v15, %v2616_v39 }
 0x464   :  { %v2736_v2 = vpop.f32.mrb[80].mxu1  ;;  %v3182_v6 = vpop.f32.mrb[80].mxu0 }
 0x465   :  { %v2742_v5 = vadd.f32 %v2736_v2, %v2678_v50  ;;  %v6099_v7 = vpop.f32.mrb[81].mxu1  ;;  %v6155_v20 = vpop.f32.mrb[81].mxu0 }
 0x466   :  { %v2739_v52 = vpop.f32.mrb[82].mxu1  ;;  %v3185_v22 = vpop.f32.mrb[82].mxu0 }
 0x467   :  { %v6100_v24 = vpop.f32.mrb[83].mxu1  ;;  %v6156_v45 = vpop.f32.mrb[83].mxu0  ;;  %v2806_v59 = vadd.f32 %v2800_v17, %v2742_v5 }
 0x46c   :  { %v2864_v51 = vpop.f32.mrb[84].mxu1  ;;  %v3310_v58 = vpop.f32.mrb[84].mxu0 }
 0x46d   :  { %v2870_v60 = vadd.f32 %v2864_v51, %v2806_v59  ;;  %v6115_v62 = vpop.f32.mrb[85].mxu1  ;;  %v6171_v63 = vpop.f32.mrb[85].mxu0 }
 0x46e   :  { %v2867_v0 = vpop.f32.mrb[86].mxu1  ;;  %v3313_v1 = vpop.f32.mrb[86].mxu0 }
 0x46f   :  { %v6116_v53 = vpop.f32.mrb[87].mxu1  ;;  %v6172_v3 = vpop.f32.mrb[87].mxu0  ;;  %v2934_v4 = vadd.f32 %v2928_v23, %v2870_v60 }
 0x474   :  { %v2992_v30 = vpop.f32.mrb[88].mxu1  ;;  %v3438_v47 = vpop.f32.mrb[88].mxu0 }
 0x475   :  { %v2998_v41 = vadd.f32 %v2992_v30, %v2934_v4  ;;  %v6131_v33 = vpop.f32.mrb[89].mxu1  ;;  %v6187_v15 = vpop.f32.mrb[89].mxu0 }
 0x476   :  { %v2995_v54 = vpop.f32.mrb[90].mxu1  ;;  %v3441_v8 = vpop.f32.mrb[90].mxu0 }
 0x477   :  { %v6132_v28 = vpop.f32.mrb[91].mxu1  ;;  %v6188_v55 = vpop.f32.mrb[91].mxu0  ;;  %v3062_v9 = vadd.f32 %v3056_v38, %v2998_v41 }
 0x478   :  { %v6612_v28 = vld [vmem:[%s7665_s15] sm:$0xff]   ;;  %v6613_v55 = vld [vmem:[%s7665_s15 + $0x8] sm:$0xff]  }
 0x479   :  { %6406 = vmatpush3.bf16.msra.mxu0 %v6612_v28 }
 0x47a   :  { %6407 = vmatprep.subr.bf16.mxu0 %v6678_v26 }
 0x47c   :  { %v3120_v29 = vpop.f32.mrb[92].mxu1  ;;  %v3566_v43 = vpop.f32.mrb[92].mxu0 }
 0x47d   :  { %v3126_v56 = vadd.f32 %v3120_v29, %v3062_v9  ;;  %v6147_v10 = vpop.f32.mrb[93].mxu1  ;;  %v6203_v17 = vpop.f32.mrb[93].mxu0  ;;  %6408 = vmatpush3.bf16.msra.mxu0 %v6613_v55 }
 0x47e   :  { %v3123_v12 = vpop.f32.mrb[94].mxu1  ;;  %v3569_v13 = vpop.f32.mrb[94].mxu0  ;;  %6409 = vmatprep.subr.bf16.mxu0 %v6678_v26 }
 0x47f   :  { %v6148_v14 = vpop.f32.mrb[95].mxu1  ;;  %v6204_v16 = vpop.f32.mrb[95].mxu0  ;;  %v3188_v11 = vadd.f32 %v3182_v6, %v3126_v56 }
 0x484   :  { %v3246_v57 = vpop.f32.mrb[96].mxu1  ;;  %v3692_v18 = vpop.f32.mrb[96].mxu0 }
 0x485   :  { %v3252_v19 = vadd.f32 %v3246_v57, %v3188_v11  ;;  %v6163_v21 = vpop.f32.mrb[97].mxu1  ;;  %v6219_v23 = vpop.f32.mrb[97].mxu0  ;;  %v6614_v11 = vld [vmem:[%s7665_s15 + $0x10] sm:$0xff]   ;;  %v6615_v57 = vld [vmem:[%s7665_s15 + $0x18] sm:$0xff]  }
 0x486   :  { %v3249_v25 = vpop.f32.mrb[98].mxu1  ;;  %v3695_v27 = vpop.f32.mrb[98].mxu0  ;;  %6410 = vmatpush3.bf16.msra.mxu0 %v6614_v11 }
 0x487   :  { %v6164_v31 = vpop.f32.mrb[99].mxu1  ;;  %v6220_v32 = vpop.f32.mrb[99].mxu0  ;;  %v3316_v61 = vadd.f32 %v3310_v58, %v3252_v19  ;;  %6411 = vmatprep.subr.bf16.mxu0 %v6678_v26  ;;  %v6616_v27 = vld [vmem:[%s7665_s15 + $0x20] sm:$0xff]  }
 0x48a   :  { %6412 = vmatpush3.bf16.msra.mxu0 %v6615_v57 }
 0x48b   :  { %6413 = vmatprep.subr.bf16.mxu0 %v6678_v26 }
 0x48c   :  { %v3374_v34 = vpop.f32.mrb[100].mxu1  ;;  %v3820_v35 = vpop.f32.mrb[100].mxu0 }
 0x48d   :  { %v3380_v37 = vadd.f32 %v3374_v34, %v3316_v61  ;;  %v6179_v36 = vpop.f32.mrb[101].mxu1  ;;  %v6235_v38 = vpop.f32.mrb[101].mxu0 }
 0x48e   :  { %v3377_v39 = vpop.f32.mrb[102].mxu1  ;;  %v3823_v40 = vpop.f32.mrb[102].mxu0  ;;  %6414 = vmatpush3.bf16.msra.mxu0 %v6616_v27 }
 0x48f   :  { %v6180_v42 = vpop.f32.mrb[103].mxu1  ;;  %v6236_v44 = vpop.f32.mrb[103].mxu0  ;;  %v3444_v46 = vadd.f32 %v3438_v47, %v3380_v37  ;;  %v6617_v37 = vld [vmem:[%s7665_s15 + $0x28] sm:$0xff]   ;;  %6415 = vmatprep.subr.bf16.mxu0 %v6678_v26 }
 0x490   :  { %v6618_v44 = vld [vmem:[%s7665_s15 + $0x30] sm:$0xff]  }
 0x492   :  { %6416 = vmatpush3.bf16.msra.mxu0 %v6617_v37 }
 0x493   :  { %6417 = vmatprep.subr.bf16.mxu0 %v6678_v26 }
 0x494   :  { %v3502_v48 = vpop.f32.mrb[104].mxu1  ;;  %v3948_v49 = vpop.f32.mrb[104].mxu0 }
 0x495   :  { %v3508_v50 = vadd.f32 %v3502_v48, %v3444_v46  ;;  %v6195_v2 = vpop.f32.mrb[105].mxu1  ;;  %v6251_v6 = vpop.f32.mrb[105].mxu0 }
 0x496   :  { %v3505_v5 = vpop.f32.mrb[106].mxu1  ;;  %v3951_v7 = vpop.f32.mrb[106].mxu0  ;;  %6418 = vmatpush3.bf16.msra.mxu0 %v6618_v44  ;;  %v6619_v6 = vld [vmem:[%s7665_s15 + $0x38] sm:$0xff]  }
 0x497   :  { %v6196_v20 = vpop.f32.mrb[107].mxu1  ;;  %v6252_v52 = vpop.f32.mrb[107].mxu0  ;;  %v3572_v22 = vadd.f32 %v3566_v43, %v3508_v50  ;;  %6419 = vmatprep.subr.bf16.mxu0 %v6678_v26 }
 0x49a   :  { %6420 = vmatpush3.bf16.msra.mxu0 %v6619_v6 }
 0x49c   :  { %v3630_v24 = vpop.f32.mrb[108].mxu1  ;;  %v4076_v45 = vpop.f32.mrb[108].mxu0 }
 0x49d   :  { %v3636_v59 = vadd.f32 %v3630_v24, %v3572_v22  ;;  %v6211_v51 = vpop.f32.mrb[109].mxu1  ;;  %v6267_v58 = vpop.f32.mrb[109].mxu0 }
 0x49e   :  { %v3633_v60 = vpop.f32.mrb[110].mxu1  ;;  %v4079_v62 = vpop.f32.mrb[110].mxu0 }
 0x49f   :  { %v6212_v63 = vpop.f32.mrb[111].mxu1  ;;  %v6268_v0 = vpop.f32.mrb[111].mxu0  ;;  %v3698_v1 = vadd.f32 %v3692_v18, %v3636_v59 }
 0x4a4   :  { %v3756_v53 = vpop.f32.mrb[112].mxu1  ;;  %v4202_v3 = vpop.f32.mrb[112].mxu0 }
 0x4a5   :  { %v3762_v4 = vadd.f32 %v3756_v53, %v3698_v1  ;;  %v6227_v30 = vpop.f32.mrb[113].mxu1  ;;  %v6283_v47 = vpop.f32.mrb[113].mxu0 }
 0x4a6   :  { %v3759_v41 = vpop.f32.mrb[114].mxu1  ;;  %v4205_v33 = vpop.f32.mrb[114].mxu0 }
 0x4a7   :  { %v6228_v15 = vpop.f32.mrb[115].mxu1  ;;  %v6284_v54 = vpop.f32.mrb[115].mxu0  ;;  %v3826_v8 = vadd.f32 %v3820_v35, %v3762_v4 }
 0x4ac   :  { %v3884_v9 = vpop.f32.mrb[116].mxu1  ;;  %v4330_v29 = vpop.f32.mrb[116].mxu0 }
 0x4ad   :  { %v3890_v43 = vadd.f32 %v3884_v9, %v3826_v8  ;;  %v6243_v56 = vpop.f32.mrb[117].mxu1  ;;  %v6299_v10 = vpop.f32.mrb[117].mxu0 }
 0x4ae   :  { %v3887_v17 = vpop.f32.mrb[118].mxu1  ;;  %v4333_v12 = vpop.f32.mrb[118].mxu0 }
 0x4af   :  { %v6244_v13 = vpop.f32.mrb[119].mxu1  ;;  %v6300_v14 = vpop.f32.mrb[119].mxu0  ;;  %v3954_v16 = vadd.f32 %v3948_v49, %v3890_v43 }
 0x4b4   :  { %v4012_v18 = vpop.f32.mrb[120].mxu1  ;;  %v4458_v19 = vpop.f32.mrb[120].mxu0 }
 0x4b5   :  { %v4018_v21 = vadd.f32 %v4012_v18, %v3954_v16  ;;  %v6259_v23 = vpop.f32.mrb[121].mxu1  ;;  %v6315_v25 = vpop.f32.mrb[121].mxu0 }
 0x4b6   :  { %v4015_v31 = vpop.f32.mrb[122].mxu1  ;;  %v4461_v32 = vpop.f32.mrb[122].mxu0 }
 0x4b7   :  { %v6260_v61 = vpop.f32.mrb[123].mxu1  ;;  %v6316_v34 = vpop.f32.mrb[123].mxu0  ;;  %v4082_v35 = vadd.f32 %v4076_v45, %v4018_v21 }
 0x4bc   :  { %v4140_v36 = vpop.f32.mrb[124].mxu1  ;;  %v4586_v38 = vpop.f32.mrb[124].mxu0 }
 0x4bd   :  { %v4146_v39 = vadd.f32 %v4140_v36, %v4082_v35  ;;  %v6275_v40 = vpop.f32.mrb[125].mxu1  ;;  %v6331_v42 = vpop.f32.mrb[125].mxu0 }
 0x4be   :  { %v4143_v46 = vpop.f32.mrb[126].mxu1  ;;  %v4589_v48 = vpop.f32.mrb[126].mxu0 }
 0x4bf   :  { %v6276_v49 = vpop.f32.mrb[127].mxu1  ;;  %v6332_v50 = vpop.f32.mrb[127].mxu0  ;;  %v4208_v2 = vadd.f32 %v4202_v3, %v4146_v39  ;;  %v5575_v48 = vld [vmem:[%s7662_s12] ss:$0 sm:$0xff] }
 0x4c4   :  { %v4266_v5 = vpop.f32.mrb[128].mxu1  ;;  %v4712_v7 = vpop.f32.mrb[128].mxu0 }
 0x4c5   :  { %v4272_v20 = vadd.f32 %v4266_v5, %v4208_v2  ;;  %v6291_v52 = vpop.f32.mrb[129].mxu1  ;;  %v6347_v22 = vpop.f32.mrb[129].mxu0 }
 0x4c6   :  { %v4269_v24 = vpop.f32.mrb[130].mxu1  ;;  %v4715_v45 = vpop.f32.mrb[130].mxu0 }
 0x4c7   :  { %v6292_v59 = vpop.f32.mrb[131].mxu1  ;;  %v6348_v51 = vpop.f32.mrb[131].mxu0  ;;  %v4336_v58 = vadd.f32 %v4330_v29, %v4272_v20 }
 0x4cc   :  { %v4394_v60 = vpop.f32.mrb[132].mxu1  ;;  %v4840_v62 = vpop.f32.mrb[132].mxu0 }
 0x4cd   :  { %v4400_v63 = vadd.f32 %v4394_v60, %v4336_v58  ;;  %v6307_v0 = vpop.f32.mrb[133].mxu1  ;;  %v6363_v1 = vpop.f32.mrb[133].mxu0 }
 0x4ce   :  { %v4397_v53 = vpop.f32.mrb[134].mxu1  ;;  %v4843_v3 = vpop.f32.mrb[134].mxu0 }
 0x4cf   :  { %v6308_v4 = vpop.f32.mrb[135].mxu1  ;;  %v6364_v26 = vpop.f32.mrb[135].mxu0  ;;  %v4464_v30 = vadd.f32 %v4458_v19, %v4400_v63 }
 0x4d4   :  { %v4522_v47 = vpop.f32.mrb[136].mxu1  ;;  %v4968_v41 = vpop.f32.mrb[136].mxu0 }
 0x4d5   :  { %v4528_v33 = vadd.f32 %v4522_v47, %v4464_v30  ;;  %v6323_v15 = vpop.f32.mrb[137].mxu1  ;;  %v6379_v54 = vpop.f32.mrb[137].mxu0 }
 0x4d6   :  { %v4525_v8 = vpop.f32.mrb[138].mxu1  ;;  %v4971_v28 = vpop.f32.mrb[138].mxu0  ;;  %v5577_v15 = vld [vmem:[%s7664_s14] ss:$0 sm:$0xff] }
 0x4d7   :  { %v6324_v55 = vpop.f32.mrb[139].mxu1  ;;  %v6380_v9 = vpop.f32.mrb[139].mxu0  ;;  %v4592_v29 = vadd.f32 %v4586_v38, %v4528_v33 }
 0x4d8   :  { %v5578_v9 = vld [vmem:[%s7666_s16] ss:$0 sm:$0xff] }
 0x4dc   :  { %v4650_v43 = vpop.f32.mrb[140].mxu1  ;;  %v5096_v56 = vpop.f32.mrb[140].mxu0 }
 0x4dd   :  { %v4656_v10 = vadd.f32 %v4650_v43, %v4592_v29  ;;  %v6339_v17 = vpop.f32.mrb[141].mxu1  ;;  %v6395_v12 = vpop.f32.mrb[141].mxu0 }
 0x4de   :  { %v4653_v13 = vpop.f32.mrb[142].mxu1  ;;  %v5099_v14 = vpop.f32.mrb[142].mxu0 }
 0x4df   :  { %v6340_v16 = vpop.f32.mrb[143].mxu1  ;;  %v6396_v11 = vpop.f32.mrb[143].mxu0  ;;  %v4718_v57 = vadd.f32 %v4712_v7, %v4656_v10 }
 0x4e4   :  { %v4776_v18 = vpop.f32.mrb[144].mxu1 }
 0x4e5   :  { %v4782_v19 = vadd.f32 %v4776_v18, %v4718_v57  ;;  %v6355_v21 = vpop.f32.mrb[145].mxu1 }
 0x4e6   :  { %v4779_v23 = vpop.f32.mrb[146].mxu1 }
 0x4e7   :  { %v6356_v25 = vpop.f32.mrb[147].mxu1  ;;  %v4846_v27 = vadd.f32 %v4840_v62, %v4782_v19 }
 0x4ec   :  { %v4904_v31 = vpop.f32.mrb[148].mxu1 }
 0x4ed   :  { %v4910_v32 = vadd.f32 %v4904_v31, %v4846_v27  ;;  %v6371_v61 = vpop.f32.mrb[149].mxu1 }
 0x4ee   :  { %v4907_v34 = vpop.f32.mrb[150].mxu1 }
 0x4ef   :  { %v6372_v35 = vpop.f32.mrb[151].mxu1  ;;  %v4974_v37 = vadd.f32 %v4968_v41, %v4910_v32  ;;  %v5576_v41 = vld [vmem:[%s7663_s13] ss:$0 sm:$0xff]  ;;  %s6646_s13 = scalar_lea.vmem %s5337_s11, 32 }
 0x4f0   :  { %p6647_p8 = scmp.ne.s32.totalorder %s5337_s11, %s6646_s13  ;;  %p6652_p10 = scmp.lt.s32.totalorder %s6646_s13, %s6646_s13 }
 0x4f2   :  { %p6653_p11 = por %p6652_p10, %p6651_p9 }
 0x4f4   :  { %v5032_v36 = vpop.f32.mrb[152].mxu1  ;;  %p6654_p12 = pnand %p6653_p11, %p6647_p8 }
 0x4f5   :  { %v5038_v38 = vadd.f32 %v5032_v36, %v4974_v37  ;;  %v6387_v39 = vpop.f32.mrb[153].mxu1 }
 0x4f6   :  { %v5035_v40 = vpop.f32.mrb[154].mxu1 }
 0x4f7   :  { %v6388_v42 = vpop.f32.mrb[155].mxu1  ;;  %v5102_v44 = vadd.f32 %v5096_v56, %v5038_v38 }
 0x4fc   :  { %v5160_v46 = vpop.f32.mrb[156].mxu1 }
 0x4fd   :  { %v5166_v49 = vadd.f32 %v5160_v46, %v5102_v44  ;;  %v6403_v50 = vpop.f32.mrb[157].mxu1 }
 0x4fe   :  { %v5163_v2 = vpop.f32.mrb[158].mxu1 }
 0x4ff   :  { %v5174_v6 = vadd.f32 %v5575_v48, %v5166_v49  ;;  %v6404_v5 = vpop.f32.mrb[159].mxu1 }
 0x501   :  { %v5176_v7 = vsel %vm5175_vm3, %v5174_v6, 0.0 }
 0x502   :  { %v5177_v20 = vrot.slane %v5176_v7, 4 }
 0x504   :  { %v5178_v52 = vadd.f32 %v5177_v20, %v5176_v7 }
 0x506   :  { %v5179_v22 = vrot.slane %v5178_v52, 2 }
 0x508   :  { %v5180_v24 = vadd.f32 %v5179_v22, %v5178_v52 }
 0x50a   :  { %v5181_v45 = vrot.slane %v5180_v24, 1 }
 0x50c   :  { %v5182_v59 = vadd.f32 %v5181_v45, %v5180_v24 }
 0x50e   :  { %v5184_v51 = vmul.f32 0.5, %v5182_v59 }
 0x510   :  { %v5185_v58 = vsub.f32 %v5174_v6, %v5184_v51 }
 0x512   :  { %v5186_v60 = vmul.f32 %v5185_v58, %v5185_v58 }
 0x514   :  { %v5187_v62 = vsel %vm5175_vm3, %v5186_v60, 0.0 }
 0x515   :  { %v5188_v63 = vrot.slane %v5187_v62, 4 }
 0x517   :  { %v5189_v0 = vadd.f32 %v5188_v63, %v5187_v62 }
 0x519   :  { %v5190_v1 = vrot.slane %v5189_v0, 2 }
 0x51b   :  { %v5191_v53 = vadd.f32 %v5190_v1, %v5189_v0 }
 0x51d   :  { %v5192_v3 = vrot.slane %v5191_v53, 1 }
 0x51f   :  { %v5193_v4 = vadd.f32 %v5192_v3, %v5191_v53 }
 0x521   :  { %v5194_v26 = vmul.f32 0.5, %v5193_v4 }
 0x523   :  { %v5195_v30 = vadd.f32 1e-05, %v5194_v26 }
 0x525   :  { %6622 = vrsqrt.f32 %v5195_v30 }
 0x52f   :  { %v6623_v47 = vpop.eup %6622 }
 0x530   :  { %v5197_v33 = vmul.f32 %v6623_v47, %v5185_v58 }
 0x532   :  { %v5205_v54 = vmul.f32 %v5576_v41, %v5197_v33 }
 0x534   :  { %v5213_v8 = vadd.f32 %v5577_v15, %v5205_v54 }
 0x536   :  { %v5214_v28 = vmax.f32 %v5213_v8, 0.0 }
 0x538   :  { %v5215_v55 = vpack.c.bf16 %v5214_v28, %v5214_v28 }
 0x53a   :  { %6422 = vmatmul.mubr.bf16.vlgmr.msra.gmra.mrb[144].mxu0 %v5215_v55 }
 0x60d   :  { %v5321_v29 = vpop.f32.mrb[144].mxu0 }
 0x60e   :  { %v5322_v43 = vadd.f32 %v5578_v9, %v5321_v29  ;;  %v6423_v56 = vpop.f32.mrb[145].mxu0 }
 0x60f   :  { %v5324_v10 = vpop.f32.mrb[146].mxu0 }
 0x610   :  { %5327 = vst [vmem:[#allocation6] sm:$0x3] %v5322_v43  ;;  %v6424_v17 = vpop.f32.mrb[147].mxu0 }
 0x611   :  { %6657 = shalt.err (!%p6654_p12)
}
 0x612   :  { %s6658_s16 = scalar_lea.hbm %s7668_s18, 32 }
 0x613   :  { %p6659_p13 = scmp.ne.s32.totalorder %s7668_s18, %s6658_s16  ;;  %p6662_p0 = scmp.lt.u32.totalorder %s6658_s16, %s7668_s18 }
 0x615   :  { %p6664_p1 = pnand %p6662_p0, %p6659_p13 }
 0x617   :  { %6667 = shalt.err (!%p6664_p1)
}
 0x618   :  { %5339 = dma.vmem_to_hbm [thread:$0]  %s5337_s11, 32, %s7668_s18, [#allocation5]  }
 0x619   :  { %6670 = dma.done.wait [#allocation5], 32  }
 0x61a   :  { %6671 = vsyncadd [#allocation5], 4294967264 }
 0x61b   :  { %5345 = vsyncpa [#allocation4], 1 }
 0x61c   :  { %5346 = vsyncpa [#allocation5], 1 }

</bundles_post_ra>
